<compile_context>
chip_gen: v7x
topology: tpu7x:2x2x1
jax: 0.10.0
libtpu: 0.0.40
codegen_flags: <defaults>
</compile_context>

<pallas_src>
import math

import jax
import jax.numpy as jnp
from jax.experimental import pallas as pl
from jax.experimental.pallas import tpu as pltpu

# ----------------------------- config (small) -----------------------------
VOCAB = 100
HIDDEN = 32
NUM_LAYERS = 2
NUM_HEADS = 4
HEAD_DIM = HIDDEN // NUM_HEADS
INTERMEDIATE = 64
MAX_POS = 64
TYPE_VOCAB = 2
LN_EPS = 1e-12

BATCH = 2
SEQ = 8

F32 = jnp.float32
NEG_BIG = -1e30


# ----------------------------- in-kernel helpers -----------------------------
def _gelu(x):
    # tanh-form GELU: 0.5*x*(1 + tanh(sqrt(2/pi)*(x + 0.044715*x^3)))
    # (the reference module documents this as interchangeable with the erf form;
    #  tanh executes on the EUP slot, which is otherwise idle here).
    c = math.sqrt(2.0 / math.pi)
    return 0.5 * x * (1.0 + jnp.tanh(c * (x + 0.044715 * x * x * x)))


def _layernorm(x, gamma, beta):
    mean = jnp.mean(x, axis=-1, keepdims=True)
    var = jnp.mean((x - mean) ** 2, axis=-1, keepdims=True)
    return gamma * ((x - mean) / jnp.sqrt(var + LN_EPS)) + beta


# ----------------------------- the single fused kernel -----------------------------
def _bert_kernel(tok_ref, pos_ref, typ_ref, mask_ref, emb_g_ref, emb_b_ref,
                 wqkv_ref, bqkv_ref, wo_ref, bo_ref,
                 ln1g_ref, ln1b_ref, w1_ref, b1_ref, w2_ref, b2_ref,
                 ln2g_ref, ln2b_ref, pool_w_ref, pool_b_ref,
                 seq_out_ref, pooled_ref):
    B, S = mask_ref.shape
    H = tok_ref.shape[-1]
    nh = NUM_HEADS
    hd = H // nh

    # ---- embeddings: token + position + type, then LayerNorm (dropout = identity) ----
    pos = pos_ref[...]                                   # (S, H); broadcast in-kernel,
    pos_full = jnp.concatenate([pos] * B, axis=0)        # avoids DMA-ing B copies from HBM
    x = tok_ref[...] + pos_full + typ_ref[...]           # (B*S, H)
    x = _layernorm(x, emb_g_ref[...], emb_b_ref[...])

    # ---- additive attention mask, hoisted once for all layers and heads ----
    m = mask_ref[...]                                    # (B, S) float, 1.0 = attend
    neg = jnp.where(m > 0.5, 0.0, NEG_BIG)               # (B, S)
    add_mask = jnp.stack(
        [jnp.broadcast_to(neg[b:b + 1, :], (S, S)) for b in range(B) for _ in range(nh)],
        axis=0)                                          # (B*nh, S, S)

    scale = 1.0 / math.sqrt(hd)

    def split_heads(t):  # (B*S, H) -> (B*nh, S, hd)
        return jnp.stack(
            [t[b * S:(b + 1) * S, h * hd:(h + 1) * hd]
             for b in range(B) for h in range(nh)], axis=0)

    # ---- transformer layers (static Python loop; params indexed by layer) ----
    for li in range(NUM_LAYERS):
        wqkv, bqkv = wqkv_ref[li], bqkv_ref[li]          # (H, 3H), (1, 3H)
        wo, bo = wo_ref[li], bo_ref[li]                  # (H, H),  (1, H)
        ln1_g, ln1_b = ln1g_ref[li], ln1b_ref[li]
        w1, fb1 = w1_ref[li], b1_ref[li]                 # (H, I),  (1, I)
        w2, fb2 = w2_ref[li], b2_ref[li]                 # (I, H),  (1, H)
        ln2_g, ln2_b = ln2g_ref[li], ln2b_ref[li]

        # fused Q/K/V projection: one MXU matmul instead of three
        qkv = jnp.dot(x, wqkv, preferred_element_type=F32) + bqkv    # (B*S, 3H)
        q = qkv[:, 0 * H:1 * H] * scale
        k = qkv[:, 1 * H:2 * H]
        v = qkv[:, 2 * H:3 * H]

        qh, kh, vh = split_heads(q), split_heads(k), split_heads(v)  # (B*nh, S, hd)

        # scaled dot-product attention, batched over all (batch, head) pairs
        s = jnp.einsum('bqd,bkd->bqk', qh, kh, preferred_element_type=F32)
        s = s + add_mask
        s = s - jnp.max(s, axis=-1, keepdims=True)
        e = jnp.exp(s)
        p = e * pl.reciprocal(jnp.sum(e, axis=-1, keepdims=True), approx=True)
        # attention-prob dropout is identity (eval)
        ctx = jnp.einsum('bqk,bkd->bqd', p, vh, preferred_element_type=F32)  # (B*nh, S, hd)

        # merge heads back into one lane-dense (B*S, H) value
        attended = jnp.concatenate(
            [jnp.concatenate([ctx[b * nh + h] for h in range(nh)], axis=-1)
             for b in range(B)], axis=0)                                     # (B*S, H)

        ao = jnp.dot(attended, wo, preferred_element_type=F32) + bo
        # hidden dropout is identity (eval)
        h1 = _layernorm(ao + x, ln1_g, ln1_b)

        y = jnp.dot(h1, w1, preferred_element_type=F32) + fb1
        y = _gelu(y)
        y = jnp.dot(y, w2, preferred_element_type=F32) + fb2
        # hidden dropout is identity (eval)
        x = _layernorm(y + h1, ln2_g, ln2_b)

    seq_out_ref[...] = x                                  # (B*S, H)

    # ---- pooler: mean over the sequence -> dense -> tanh (matches the spec) ----
    xm = jnp.concatenate(
        [jnp.mean(x[b * S:(b + 1) * S, :], axis=0, keepdims=True) for b in range(B)],
        axis=0)                                           # (B, H)
    pooled_ref[...] = jnp.tanh(
        jnp.dot(xm, pool_w_ref[...], preferred_element_type=F32) + pool_b_ref[...])


# ----------------------------- parameter init (deterministic, synthetic) -----------------------------
def init_params(key):
    def nrm(k, shape):
        return (0.02 * jax.random.normal(k, shape)).astype(F32)

    keys = iter(jax.random.split(key, 64))
    params = {}

    tok = nrm(next(keys), (VOCAB, HIDDEN))
    tok = tok.at[0].set(0.0)                      # padding_idx=0 row is zero
    params["tok_emb"] = tok
    params["pos_emb"] = nrm(next(keys), (MAX_POS, HIDDEN))
    params["typ_emb"] = nrm(next(keys), (TYPE_VOCAB, HIDDEN))
    params["emb_gamma"] = jnp.ones((1, HIDDEN), F32)
    params["emb_beta"] = jnp.zeros((1, HIDDEN), F32)

    wqkv, bqkv, wo, bo = [], [], [], []
    ln1g, ln1b, w1, b1, w2, b2, ln2g, ln2b = [], [], [], [], [], [], [], []
    for _ in range(NUM_LAYERS):
        wq = nrm(next(keys), (HIDDEN, HIDDEN))
        wk = nrm(next(keys), (HIDDEN, HIDDEN))
        wv = nrm(next(keys), (HIDDEN, HIDDEN))
        wqkv.append(jnp.concatenate([wq, wk, wv], axis=1))        # (H, 3H)
        bqkv.append(jnp.zeros((1, 3 * HIDDEN), F32))
        wo.append(nrm(next(keys), (HIDDEN, HIDDEN)))
        bo.append(jnp.zeros((1, HIDDEN), F32))
        ln1g.append(jnp.ones((1, HIDDEN), F32))
        ln1b.append(jnp.zeros((1, HIDDEN), F32))
        w1.append(nrm(next(keys), (HIDDEN, INTERMEDIATE)))
        b1.append(jnp.zeros((1, INTERMEDIATE), F32))
        w2.append(nrm(next(keys), (INTERMEDIATE, HIDDEN)))
        b2.append(jnp.zeros((1, HIDDEN), F32))
        ln2g.append(jnp.ones((1, HIDDEN), F32))
        ln2b.append(jnp.zeros((1, HIDDEN), F32))

    params["layer_stacks"] = [jnp.stack(t, axis=0) for t in
                              (wqkv, bqkv, wo, bo, ln1g, ln1b, w1, b1, w2, b2, ln2g, ln2b)]

    params["pool_w"] = nrm(next(keys), (HIDDEN, HIDDEN))
    params["pool_b"] = jnp.zeros((1, HIDDEN), F32)
    return params


# ----------------------------- full forward (one fused pallas_call) -----------------------------
def bert_forward(params, input_ids, attention_mask=None, token_type_ids=None):
    B, S = input_ids.shape
    if attention_mask is None:
        attention_mask = jnp.ones((B, S), jnp.int32)
    if token_type_ids is None:
        token_type_ids = jnp.zeros_like(input_ids)

    # Embedding gathers are glue (plain JAX); everything else runs inside the fused kernel.
    tok = jnp.take(params["tok_emb"], input_ids, axis=0).astype(F32).reshape(B * S, HIDDEN)
    typ = jnp.take(params["typ_emb"], token_type_ids, axis=0).astype(F32).reshape(B * S, HIDDEN)
    pos = params["pos_emb"][:S].astype(F32)                  # (S, H), broadcast inside kernel
    mask = attention_mask.astype(F32)                        # (B, S)

    kernel_inputs = [tok, pos, typ, mask,
                     params["emb_gamma"], params["emb_beta"],
                     *params["layer_stacks"],
                     params["pool_w"], params["pool_b"]]

    vmem = pl.BlockSpec(memory_space=pltpu.MemorySpace.VMEM)

    seq_flat, pooled = pl.pallas_call(
        _bert_kernel,
        out_shape=(jax.ShapeDtypeStruct((B * S, HIDDEN), F32),
                   jax.ShapeDtypeStruct((B, HIDDEN), F32)),
        in_specs=[vmem] * len(kernel_inputs),
        out_specs=(vmem, vmem),
    )(*kernel_inputs)

    return seq_flat.reshape(B, S, HIDDEN), pooled


# ----------------------------- main -----------------------------
if __name__ == "__main__":
    key = jax.random.PRNGKey(0)
    k_param, k_ids = jax.random.split(key)

    params = init_params(k_param)

    input_ids = jax.random.randint(k_ids, (BATCH, SEQ), 1, VOCAB, dtype=jnp.int32)
    attention_mask = jnp.ones((BATCH, SEQ), dtype=jnp.int32)
    token_type_ids = jnp.zeros((BATCH, SEQ), dtype=jnp.int32)

    seq_out, pooled_out = bert_forward(params, input_ids, attention_mask, token_type_ids)
    jax.block_until_ready(seq_out)
    jax.block_until_ready(pooled_out)

    assert seq_out.shape == (BATCH, SEQ, HIDDEN)
    assert pooled_out.shape == (BATCH, HIDDEN)
    assert bool(jnp.all(jnp.isfinite(seq_out))) and bool(jnp.all(jnp.isfinite(pooled_out)))
    print("KERNEL_OK")
</pallas_src>

<mosaic_0001>
module attributes {stable_mosaic.version = 11 : i64} {
  func.func @_bert_kernel(%arg0: memref<16x32xf32, #tpu.memory_space<vmem>>, %arg1: memref<8x32xf32, #tpu.memory_space<vmem>>, %arg2: memref<16x32xf32, #tpu.memory_space<vmem>>, %arg3: memref<2x8xf32, #tpu.memory_space<vmem>>, %arg4: memref<1x32xf32, #tpu.memory_space<vmem>>, %arg5: memref<1x32xf32, #tpu.memory_space<vmem>>, %arg6: memref<2x32x96xf32, #tpu.memory_space<vmem>>, %arg7: memref<2x1x96xf32, #tpu.memory_space<vmem>>, %arg8: memref<2x32x32xf32, #tpu.memory_space<vmem>>, %arg9: memref<2x1x32xf32, #tpu.memory_space<vmem>>, %arg10: memref<2x1x32xf32, #tpu.memory_space<vmem>>, %arg11: memref<2x1x32xf32, #tpu.memory_space<vmem>>, %arg12: memref<2x32x64xf32, #tpu.memory_space<vmem>>, %arg13: memref<2x1x64xf32, #tpu.memory_space<vmem>>, %arg14: memref<2x64x32xf32, #tpu.memory_space<vmem>>, %arg15: memref<2x1x32xf32, #tpu.memory_space<vmem>>, %arg16: memref<2x1x32xf32, #tpu.memory_space<vmem>>, %arg17: memref<2x1x32xf32, #tpu.memory_space<vmem>>, %arg18: memref<32x32xf32, #tpu.memory_space<vmem>>, %arg19: memref<1x32xf32, #tpu.memory_space<vmem>>, %arg20: memref<16x32xf32, #tpu.memory_space<vmem>>, %arg21: memref<2x32xf32, #tpu.memory_space<vmem>>) attributes {dimension_semantics = [], scalar_prefetch = 0 : i64, scratch_operands = 0 : i64, tpu.core_type = #tpu.core_type<tc>} {
    %c0 = arith.constant 0 : index
    %c0_0 = arith.constant 0 : index
    %0 = vector.load %arg1[%c0, %c0_0] : memref<8x32xf32, #tpu.memory_space<vmem>>, vector<8x32xf32>
    %1 = tpu.concatenate %0, %0 in 0 : vector<8x32xf32>, vector<8x32xf32> -> vector<16x32xf32>
    %c0_1 = arith.constant 0 : index
    %c0_2 = arith.constant 0 : index
    %2 = vector.load %arg0[%c0_1, %c0_2] : memref<16x32xf32, #tpu.memory_space<vmem>>, vector<16x32xf32>
    %3 = arith.addf %2, %1 : vector<16x32xf32>
    %c0_3 = arith.constant 0 : index
    %c0_4 = arith.constant 0 : index
    %4 = vector.load %arg2[%c0_3, %c0_4] : memref<16x32xf32, #tpu.memory_space<vmem>>, vector<16x32xf32>
    %5 = arith.addf %3, %4 : vector<16x32xf32>
    %c0_5 = arith.constant 0 : index
    %c0_6 = arith.constant 0 : index
    %6 = vector.load %arg4[%c0_5, %c0_6] : memref<1x32xf32, #tpu.memory_space<vmem>>, vector<1x32xf32>
    %c0_7 = arith.constant 0 : index
    %c0_8 = arith.constant 0 : index
    %7 = vector.load %arg5[%c0_7, %c0_8] : memref<1x32xf32, #tpu.memory_space<vmem>>, vector<1x32xf32>
    %cst = arith.constant dense<0.000000e+00> : vector<16xf32>
    %8 = vector.multi_reduction <add>, %5, %cst [1] : vector<16x32xf32> to vector<16xf32>
    %9 = vector.shape_cast %8 : vector<16xf32> to vector<16x1xf32>
    %cst_9 = arith.constant 3.200000e+01 : f32
    %10 = vector.broadcast %cst_9 : f32 to vector<16x1xf32>
    %11 = arith.divf %9, %10 : vector<16x1xf32>
    %12 = vector.broadcast %11 : vector<16x1xf32> to vector<16x32xf32>
    %13 = arith.subf %5, %12 : vector<16x32xf32>
    %14 = arith.mulf %13, %13 : vector<16x32xf32>
    %cst_10 = arith.constant dense<0.000000e+00> : vector<16xf32>
    %15 = vector.multi_reduction <add>, %14, %cst_10 [1] : vector<16x32xf32> to vector<16xf32>
    %16 = vector.shape_cast %15 : vector<16xf32> to vector<16x1xf32>
    %cst_11 = arith.constant 3.200000e+01 : f32
    %17 = vector.broadcast %cst_11 : f32 to vector<16x1xf32>
    %18 = arith.divf %16, %17 : vector<16x1xf32>
    %19 = vector.broadcast %11 : vector<16x1xf32> to vector<16x32xf32>
    %20 = arith.subf %5, %19 : vector<16x32xf32>
    %cst_12 = arith.constant 9.99999996E-13 : f32
    %21 = vector.broadcast %cst_12 : f32 to vector<16x1xf32>
    %22 = arith.addf %18, %21 : vector<16x1xf32>
    %23 = math.sqrt %22 : vector<16x1xf32>
    %24 = vector.broadcast %23 : vector<16x1xf32> to vector<16x32xf32>
    %25 = arith.divf %20, %24 : vector<16x32xf32>
    %26 = vector.broadcast %6 : vector<1x32xf32> to vector<16x32xf32>
    %27 = arith.mulf %26, %25 : vector<16x32xf32>
    %28 = vector.broadcast %7 : vector<1x32xf32> to vector<16x32xf32>
    %29 = arith.addf %27, %28 : vector<16x32xf32>
    %c0_13 = arith.constant 0 : index
    %c0_14 = arith.constant 0 : index
    %30 = vector.load %arg3[%c0_13, %c0_14] : memref<2x8xf32, #tpu.memory_space<vmem>>, vector<2x8xf32>
    %cst_15 = arith.constant 5.000000e-01 : f32
    %31 = vector.broadcast %cst_15 : f32 to vector<2x8xf32>
    %32 = arith.cmpf ogt, %30, %31 : vector<2x8xf32>
    %cst_16 = arith.constant 0.000000e+00 : f32
    %cst_17 = arith.constant -1.000000e+30 : f32
    %33 = vector.broadcast %cst_16 : f32 to vector<2x8xf32>
    %34 = vector.broadcast %cst_17 : f32 to vector<2x8xf32>
    %35 = arith.select %32, %33, %34 : vector<2x8xi1>, vector<2x8xf32>
    %36 = vector.extract_strided_slice %35 {offsets = [0, 0], sizes = [1, 8], strides = [1, 1]} : vector<2x8xf32> to vector<1x8xf32>
    %37 = vector.shape_cast %36 : vector<1x8xf32> to vector<1x8xf32>
    %38 = vector.broadcast %37 : vector<1x8xf32> to vector<8x8xf32>
    %39 = vector.extract_strided_slice %35 {offsets = [0, 0], sizes = [1, 8], strides = [1, 1]} : vector<2x8xf32> to vector<1x8xf32>
    %40 = vector.shape_cast %39 : vector<1x8xf32> to vector<1x8xf32>
    %41 = vector.broadcast %40 : vector<1x8xf32> to vector<8x8xf32>
    %42 = vector.extract_strided_slice %35 {offsets = [0, 0], sizes = [1, 8], strides = [1, 1]} : vector<2x8xf32> to vector<1x8xf32>
    %43 = vector.shape_cast %42 : vector<1x8xf32> to vector<1x8xf32>
    %44 = vector.broadcast %43 : vector<1x8xf32> to vector<8x8xf32>
    %45 = vector.extract_strided_slice %35 {offsets = [0, 0], sizes = [1, 8], strides = [1, 1]} : vector<2x8xf32> to vector<1x8xf32>
    %46 = vector.shape_cast %45 : vector<1x8xf32> to vector<1x8xf32>
    %47 = vector.broadcast %46 : vector<1x8xf32> to vector<8x8xf32>
    %48 = vector.extract_strided_slice %35 {offsets = [1, 0], sizes = [1, 8], strides = [1, 1]} : vector<2x8xf32> to vector<1x8xf32>
    %49 = vector.shape_cast %48 : vector<1x8xf32> to vector<1x8xf32>
    %50 = vector.broadcast %49 : vector<1x8xf32> to vector<8x8xf32>
    %51 = vector.extract_strided_slice %35 {offsets = [1, 0], sizes = [1, 8], strides = [1, 1]} : vector<2x8xf32> to vector<1x8xf32>
    %52 = vector.shape_cast %51 : vector<1x8xf32> to vector<1x8xf32>
    %53 = vector.broadcast %52 : vector<1x8xf32> to vector<8x8xf32>
    %54 = vector.extract_strided_slice %35 {offsets = [1, 0], sizes = [1, 8], strides = [1, 1]} : vector<2x8xf32> to vector<1x8xf32>
    %55 = vector.shape_cast %54 : vector<1x8xf32> to vector<1x8xf32>
    %56 = vector.broadcast %55 : vector<1x8xf32> to vector<8x8xf32>
    %57 = vector.extract_strided_slice %35 {offsets = [1, 0], sizes = [1, 8], strides = [1, 1]} : vector<2x8xf32> to vector<1x8xf32>
    %58 = vector.shape_cast %57 : vector<1x8xf32> to vector<1x8xf32>
    %59 = vector.broadcast %58 : vector<1x8xf32> to vector<8x8xf32>
    %60 = vector.shape_cast %38 : vector<8x8xf32> to vector<1x8x8xf32>
    %61 = vector.shape_cast %41 : vector<8x8xf32> to vector<1x8x8xf32>
    %62 = vector.shape_cast %44 : vector<8x8xf32> to vector<1x8x8xf32>
    %63 = vector.shape_cast %47 : vector<8x8xf32> to vector<1x8x8xf32>
    %64 = vector.shape_cast %50 : vector<8x8xf32> to vector<1x8x8xf32>
    %65 = vector.shape_cast %53 : vector<8x8xf32> to vector<1x8x8xf32>
    %66 = vector.shape_cast %56 : vector<8x8xf32> to vector<1x8x8xf32>
    %67 = vector.shape_cast %59 : vector<8x8xf32> to vector<1x8x8xf32>
    %68 = tpu.concatenate %60, %61, %62, %63, %64, %65, %66, %67 in 0 : vector<1x8x8xf32>, vector<1x8x8xf32>, vector<1x8x8xf32>, vector<1x8x8xf32>, vector<1x8x8xf32>, vector<1x8x8xf32>, vector<1x8x8xf32>, vector<1x8x8xf32> -> vector<8x8x8xf32>
    %c0_18 = arith.constant 0 : index
    %c0_19 = arith.constant 0 : index
    %c0_20 = arith.constant 0 : index
    %69 = vector.load %arg6[%c0_18, %c0_19, %c0_20] : memref<2x32x96xf32, #tpu.memory_space<vmem>>, vector<1x32x96xf32>
    %70 = vector.shape_cast %69 : vector<1x32x96xf32> to vector<32x96xf32>
    %c0_21 = arith.constant 0 : index
    %c0_22 = arith.constant 0 : index
    %c0_23 = arith.constant 0 : index
    %71 = vector.load %arg7[%c0_21, %c0_22, %c0_23] : memref<2x1x96xf32, #tpu.memory_space<vmem>>, vector<1x1x96xf32>
    %72 = vector.shape_cast %71 : vector<1x1x96xf32> to vector<1x96xf32>
    %c0_24 = arith.constant 0 : index
    %c0_25 = arith.constant 0 : index
    %c0_26 = arith.constant 0 : index
    %73 = vector.load %arg8[%c0_24, %c0_25, %c0_26] : memref<2x32x32xf32, #tpu.memory_space<vmem>>, vector<1x32x32xf32>
    %74 = vector.shape_cast %73 : vector<1x32x32xf32> to vector<32x32xf32>
    %c0_27 = arith.constant 0 : index
    %c0_28 = arith.constant 0 : index
    %c0_29 = arith.constant 0 : index
    %75 = vector.load %arg9[%c0_27, %c0_28, %c0_29] : memref<2x1x32xf32, #tpu.memory_space<vmem>>, vector<1x1x32xf32>
    %76 = vector.shape_cast %75 : vector<1x1x32xf32> to vector<1x32xf32>
    %c0_30 = arith.constant 0 : index
    %c0_31 = arith.constant 0 : index
    %c0_32 = arith.constant 0 : index
    %77 = vector.load %arg10[%c0_30, %c0_31, %c0_32] : memref<2x1x32xf32, #tpu.memory_space<vmem>>, vector<1x1x32xf32>
    %78 = vector.shape_cast %77 : vector<1x1x32xf32> to vector<1x32xf32>
    %c0_33 = arith.constant 0 : index
    %c0_34 = arith.constant 0 : index
    %c0_35 = arith.constant 0 : index
    %79 = vector.load %arg11[%c0_33, %c0_34, %c0_35] : memref<2x1x32xf32, #tpu.memory_space<vmem>>, vector<1x1x32xf32>
    %80 = vector.shape_cast %79 : vector<1x1x32xf32> to vector<1x32xf32>
    %c0_36 = arith.constant 0 : index
    %c0_37 = arith.constant 0 : index
    %c0_38 = arith.constant 0 : index
    %81 = vector.load %arg12[%c0_36, %c0_37, %c0_38] : memref<2x32x64xf32, #tpu.memory_space<vmem>>, vector<1x32x64xf32>
    %82 = vector.shape_cast %81 : vector<1x32x64xf32> to vector<32x64xf32>
    %c0_39 = arith.constant 0 : index
    %c0_40 = arith.constant 0 : index
    %c0_41 = arith.constant 0 : index
    %83 = vector.load %arg13[%c0_39, %c0_40, %c0_41] : memref<2x1x64xf32, #tpu.memory_space<vmem>>, vector<1x1x64xf32>
    %84 = vector.shape_cast %83 : vector<1x1x64xf32> to vector<1x64xf32>
    %c0_42 = arith.constant 0 : index
    %c0_43 = arith.constant 0 : index
    %c0_44 = arith.constant 0 : index
    %85 = vector.load %arg14[%c0_42, %c0_43, %c0_44] : memref<2x64x32xf32, #tpu.memory_space<vmem>>, vector<1x64x32xf32>
    %86 = vector.shape_cast %85 : vector<1x64x32xf32> to vector<64x32xf32>
    %c0_45 = arith.constant 0 : index
    %c0_46 = arith.constant 0 : index
    %c0_47 = arith.constant 0 : index
    %87 = vector.load %arg15[%c0_45, %c0_46, %c0_47] : memref<2x1x32xf32, #tpu.memory_space<vmem>>, vector<1x1x32xf32>
    %88 = vector.shape_cast %87 : vector<1x1x32xf32> to vector<1x32xf32>
    %c0_48 = arith.constant 0 : index
    %c0_49 = arith.constant 0 : index
    %c0_50 = arith.constant 0 : index
    %89 = vector.load %arg16[%c0_48, %c0_49, %c0_50] : memref<2x1x32xf32, #tpu.memory_space<vmem>>, vector<1x1x32xf32>
    %90 = vector.shape_cast %89 : vector<1x1x32xf32> to vector<1x32xf32>
    %c0_51 = arith.constant 0 : index
    %c0_52 = arith.constant 0 : index
    %c0_53 = arith.constant 0 : index
    %91 = vector.load %arg17[%c0_51, %c0_52, %c0_53] : memref<2x1x32xf32, #tpu.memory_space<vmem>>, vector<1x1x32xf32>
    %92 = vector.shape_cast %91 : vector<1x1x32xf32> to vector<1x32xf32>
    %cst_54 = arith.constant dense<0.000000e+00> : vector<16x96xf32>
    %93 = tpu.matmul %29, %70, %cst_54 {dimension_numbers = #tpu.dot_dimension_numbers<[1], [0], [0], [1], [0, 0, 1, 1], [], []>} : vector<16x32xf32>, vector<32x96xf32>, vector<16x96xf32> -> vector<16x96xf32>
    %94 = vector.broadcast %72 : vector<1x96xf32> to vector<16x96xf32>
    %95 = arith.addf %93, %94 : vector<16x96xf32>
    %96 = vector.extract_strided_slice %95 {offsets = [0, 0], sizes = [16, 32], strides = [1, 1]} : vector<16x96xf32> to vector<16x32xf32>
    %cst_55 = arith.constant 0.353553385 : f32
    %97 = vector.broadcast %cst_55 : f32 to vector<16x32xf32>
    %98 = arith.mulf %96, %97 : vector<16x32xf32>
    %99 = vector.extract_strided_slice %95 {offsets = [0, 32], sizes = [16, 32], strides = [1, 1]} : vector<16x96xf32> to vector<16x32xf32>
    %100 = vector.extract_strided_slice %95 {offsets = [0, 64], sizes = [16, 32], strides = [1, 1]} : vector<16x96xf32> to vector<16x32xf32>
    %101 = vector.extract_strided_slice %98 {offsets = [0, 0], sizes = [8, 8], strides = [1, 1]} : vector<16x32xf32> to vector<8x8xf32>
    %102 = vector.extract_strided_slice %98 {offsets = [0, 8], sizes = [8, 8], strides = [1, 1]} : vector<16x32xf32> to vector<8x8xf32>
    %103 = vector.extract_strided_slice %98 {offsets = [0, 16], sizes = [8, 8], strides = [1, 1]} : vector<16x32xf32> to vector<8x8xf32>
    %104 = vector.extract_strided_slice %98 {offsets = [0, 24], sizes = [8, 8], strides = [1, 1]} : vector<16x32xf32> to vector<8x8xf32>
    %105 = vector.extract_strided_slice %98 {offsets = [8, 0], sizes = [8, 8], strides = [1, 1]} : vector<16x32xf32> to vector<8x8xf32>
    %106 = vector.extract_strided_slice %98 {offsets = [8, 8], sizes = [8, 8], strides = [1, 1]} : vector<16x32xf32> to vector<8x8xf32>
    %107 = vector.extract_strided_slice %98 {offsets = [8, 16], sizes = [8, 8], strides = [1, 1]} : vector<16x32xf32> to vector<8x8xf32>
    %108 = vector.extract_strided_slice %98 {offsets = [8, 24], sizes = [8, 8], strides = [1, 1]} : vector<16x32xf32> to vector<8x8xf32>
    %109 = vector.shape_cast %101 : vector<8x8xf32> to vector<1x8x8xf32>
    %110 = vector.shape_cast %102 : vector<8x8xf32> to vector<1x8x8xf32>
    %111 = vector.shape_cast %103 : vector<8x8xf32> to vector<1x8x8xf32>
    %112 = vector.shape_cast %104 : vector<8x8xf32> to vector<1x8x8xf32>
    %113 = vector.shape_cast %105 : vector<8x8xf32> to vector<1x8x8xf32>
    %114 = vector.shape_cast %106 : vector<8x8xf32> to vector<1x8x8xf32>
    %115 = vector.shape_cast %107 : vector<8x8xf32> to vector<1x8x8xf32>
    %116 = vector.shape_cast %108 : vector<8x8xf32> to vector<1x8x8xf32>
    %117 = tpu.concatenate %109, %110, %111, %112, %113, %114, %115, %116 in 0 : vector<1x8x8xf32>, vector<1x8x8xf32>, vector<1x8x8xf32>, vector<1x8x8xf32>, vector<1x8x8xf32>, vector<1x8x8xf32>, vector<1x8x8xf32>, vector<1x8x8xf32> -> vector<8x8x8xf32>
    %118 = vector.extract_strided_slice %99 {offsets = [0, 0], sizes = [8, 8], strides = [1, 1]} : vector<16x32xf32> to vector<8x8xf32>
    %119 = vector.extract_strided_slice %99 {offsets = [0, 8], sizes = [8, 8], strides = [1, 1]} : vector<16x32xf32> to vector<8x8xf32>
    %120 = vector.extract_strided_slice %99 {offsets = [0, 16], sizes = [8, 8], strides = [1, 1]} : vector<16x32xf32> to vector<8x8xf32>
    %121 = vector.extract_strided_slice %99 {offsets = [0, 24], sizes = [8, 8], strides = [1, 1]} : vector<16x32xf32> to vector<8x8xf32>
    %122 = vector.extract_strided_slice %99 {offsets = [8, 0], sizes = [8, 8], strides = [1, 1]} : vector<16x32xf32> to vector<8x8xf32>
    %123 = vector.extract_strided_slice %99 {offsets = [8, 8], sizes = [8, 8], strides = [1, 1]} : vector<16x32xf32> to vector<8x8xf32>
    %124 = vector.extract_strided_slice %99 {offsets = [8, 16], sizes = [8, 8], strides = [1, 1]} : vector<16x32xf32> to vector<8x8xf32>
    %125 = vector.extract_strided_slice %99 {offsets = [8, 24], sizes = [8, 8], strides = [1, 1]} : vector<16x32xf32> to vector<8x8xf32>
    %126 = vector.shape_cast %118 : vector<8x8xf32> to vector<1x8x8xf32>
    %127 = vector.shape_cast %119 : vector<8x8xf32> to vector<1x8x8xf32>
    %128 = vector.shape_cast %120 : vector<8x8xf32> to vector<1x8x8xf32>
    %129 = vector.shape_cast %121 : vector<8x8xf32> to vector<1x8x8xf32>
    %130 = vector.shape_cast %122 : vector<8x8xf32> to vector<1x8x8xf32>
    %131 = vector.shape_cast %123 : vector<8x8xf32> to vector<1x8x8xf32>
    %132 = vector.shape_cast %124 : vector<8x8xf32> to vector<1x8x8xf32>
    %133 = vector.shape_cast %125 : vector<8x8xf32> to vector<1x8x8xf32>
    %134 = tpu.concatenate %126, %127, %128, %129, %130, %131, %132, %133 in 0 : vector<1x8x8xf32>, vector<1x8x8xf32>, vector<1x8x8xf32>, vector<1x8x8xf32>, vector<1x8x8xf32>, vector<1x8x8xf32>, vector<1x8x8xf32>, vector<1x8x8xf32> -> vector<8x8x8xf32>
    %135 = vector.extract_strided_slice %100 {offsets = [0, 0], sizes = [8, 8], strides = [1, 1]} : vector<16x32xf32> to vector<8x8xf32>
    %136 = vector.extract_strided_slice %100 {offsets = [0, 8], sizes = [8, 8], strides = [1, 1]} : vector<16x32xf32> to vector<8x8xf32>
    %137 = vector.extract_strided_slice %100 {offsets = [0, 16], sizes = [8, 8], strides = [1, 1]} : vector<16x32xf32> to vector<8x8xf32>
    %138 = vector.extract_strided_slice %100 {offsets = [0, 24], sizes = [8, 8], strides = [1, 1]} : vector<16x32xf32> to vector<8x8xf32>
    %139 = vector.extract_strided_slice %100 {offsets = [8, 0], sizes = [8, 8], strides = [1, 1]} : vector<16x32xf32> to vector<8x8xf32>
    %140 = vector.extract_strided_slice %100 {offsets = [8, 8], sizes = [8, 8], strides = [1, 1]} : vector<16x32xf32> to vector<8x8xf32>
    %141 = vector.extract_strided_slice %100 {offsets = [8, 16], sizes = [8, 8], strides = [1, 1]} : vector<16x32xf32> to vector<8x8xf32>
    %142 = vector.extract_strided_slice %100 {offsets = [8, 24], sizes = [8, 8], strides = [1, 1]} : vector<16x32xf32> to vector<8x8xf32>
    %143 = vector.shape_cast %135 : vector<8x8xf32> to vector<1x8x8xf32>
    %144 = vector.shape_cast %136 : vector<8x8xf32> to vector<1x8x8xf32>
    %145 = vector.shape_cast %137 : vector<8x8xf32> to vector<1x8x8xf32>
    %146 = vector.shape_cast %138 : vector<8x8xf32> to vector<1x8x8xf32>
    %147 = vector.shape_cast %139 : vector<8x8xf32> to vector<1x8x8xf32>
    %148 = vector.shape_cast %140 : vector<8x8xf32> to vector<1x8x8xf32>
    %149 = vector.shape_cast %141 : vector<8x8xf32> to vector<1x8x8xf32>
    %150 = vector.shape_cast %142 : vector<8x8xf32> to vector<1x8x8xf32>
    %151 = tpu.concatenate %143, %144, %145, %146, %147, %148, %149, %150 in 0 : vector<1x8x8xf32>, vector<1x8x8xf32>, vector<1x8x8xf32>, vector<1x8x8xf32>, vector<1x8x8xf32>, vector<1x8x8xf32>, vector<1x8x8xf32>, vector<1x8x8xf32> -> vector<8x8x8xf32>
    "tpu.trace_start"() <{level = 10 : i32, message = "bqd,bkd->bqk"}> : () -> ()
    %cst_56 = arith.constant dense<0.000000e+00> : vector<8x8x8xf32>
    %152 = tpu.matmul %117, %134, %cst_56 {dimension_numbers = #tpu.dot_dimension_numbers<[2], [2], [1], [1], [0, 0, 0, 1, 1, 1], [0], [0]>} : vector<8x8x8xf32>, vector<8x8x8xf32>, vector<8x8x8xf32> -> vector<8x8x8xf32>
    "tpu.trace_stop"() : () -> ()
    %153 = arith.addf %152, %68 : vector<8x8x8xf32>
    %cst_57 = arith.constant dense<0xFF800000> : vector<8x8xf32>
    %154 = vector.multi_reduction <maximumf>, %153, %cst_57 [2] : vector<8x8x8xf32> to vector<8x8xf32>
    %155 = vector.shape_cast %154 : vector<8x8xf32> to vector<8x8x1xf32>
    %156 = vector.broadcast %155 : vector<8x8x1xf32> to vector<8x8x8xf32>
    %157 = arith.subf %153, %156 : vector<8x8x8xf32>
    %158 = math.exp %157 : vector<8x8x8xf32>
    %cst_58 = arith.constant dense<0.000000e+00> : vector<8x8xf32>
    %159 = vector.multi_reduction <add>, %158, %cst_58 [2] : vector<8x8x8xf32> to vector<8x8xf32>
    %160 = vector.shape_cast %159 : vector<8x8xf32> to vector<8x8x1xf32>
    %161 = tpu.reciprocal %160 {approx = true} : vector<8x8x1xf32> -> vector<8x8x1xf32>
    %162 = vector.broadcast %161 : vector<8x8x1xf32> to vector<8x8x8xf32>
    %163 = arith.mulf %158, %162 : vector<8x8x8xf32>
    "tpu.trace_start"() <{level = 10 : i32, message = "bqk,bkd->bqd"}> : () -> ()
    %cst_59 = arith.constant dense<0.000000e+00> : vector<8x8x8xf32>
    %164 = tpu.matmul %163, %151, %cst_59 {dimension_numbers = #tpu.dot_dimension_numbers<[2], [1], [1], [2], [0, 0, 0, 1, 1, 2], [0], [0]>} : vector<8x8x8xf32>, vector<8x8x8xf32>, vector<8x8x8xf32> -> vector<8x8x8xf32>
    "tpu.trace_stop"() : () -> ()
    %165 = vector.extract_strided_slice %164 {offsets = [0, 0, 0], sizes = [1, 8, 8], strides = [1, 1, 1]} : vector<8x8x8xf32> to vector<1x8x8xf32>
    %166 = vector.shape_cast %165 : vector<1x8x8xf32> to vector<8x8xf32>
    %167 = vector.extract_strided_slice %164 {offsets = [1, 0, 0], sizes = [1, 8, 8], strides = [1, 1, 1]} : vector<8x8x8xf32> to vector<1x8x8xf32>
    %168 = vector.shape_cast %167 : vector<1x8x8xf32> to vector<8x8xf32>
    %169 = vector.extract_strided_slice %164 {offsets = [2, 0, 0], sizes = [1, 8, 8], strides = [1, 1, 1]} : vector<8x8x8xf32> to vector<1x8x8xf32>
    %170 = vector.shape_cast %169 : vector<1x8x8xf32> to vector<8x8xf32>
    %171 = vector.extract_strided_slice %164 {offsets = [3, 0, 0], sizes = [1, 8, 8], strides = [1, 1, 1]} : vector<8x8x8xf32> to vector<1x8x8xf32>
    %172 = vector.shape_cast %171 : vector<1x8x8xf32> to vector<8x8xf32>
    %173 = tpu.concatenate %166, %168, %170, %172 in 1 : vector<8x8xf32>, vector<8x8xf32>, vector<8x8xf32>, vector<8x8xf32> -> vector<8x32xf32>
    %174 = vector.extract_strided_slice %164 {offsets = [4, 0, 0], sizes = [1, 8, 8], strides = [1, 1, 1]} : vector<8x8x8xf32> to vector<1x8x8xf32>
    %175 = vector.shape_cast %174 : vector<1x8x8xf32> to vector<8x8xf32>
    %176 = vector.extract_strided_slice %164 {offsets = [5, 0, 0], sizes = [1, 8, 8], strides = [1, 1, 1]} : vector<8x8x8xf32> to vector<1x8x8xf32>
    %177 = vector.shape_cast %176 : vector<1x8x8xf32> to vector<8x8xf32>
    %178 = vector.extract_strided_slice %164 {offsets = [6, 0, 0], sizes = [1, 8, 8], strides = [1, 1, 1]} : vector<8x8x8xf32> to vector<1x8x8xf32>
    %179 = vector.shape_cast %178 : vector<1x8x8xf32> to vector<8x8xf32>
    %180 = vector.extract_strided_slice %164 {offsets = [7, 0, 0], sizes = [1, 8, 8], strides = [1, 1, 1]} : vector<8x8x8xf32> to vector<1x8x8xf32>
    %181 = vector.shape_cast %180 : vector<1x8x8xf32> to vector<8x8xf32>
    %182 = tpu.concatenate %175, %177, %179, %181 in 1 : vector<8x8xf32>, vector<8x8xf32>, vector<8x8xf32>, vector<8x8xf32> -> vector<8x32xf32>
    %183 = tpu.concatenate %173, %182 in 0 : vector<8x32xf32>, vector<8x32xf32> -> vector<16x32xf32>
    %cst_60 = arith.constant dense<0.000000e+00> : vector<16x32xf32>
    %184 = tpu.matmul %183, %74, %cst_60 {dimension_numbers = #tpu.dot_dimension_numbers<[1], [0], [0], [1], [0, 0, 1, 1], [], []>} : vector<16x32xf32>, vector<32x32xf32>, vector<16x32xf32> -> vector<16x32xf32>
    %185 = vector.broadcast %76 : vector<1x32xf32> to vector<16x32xf32>
    %186 = arith.addf %184, %185 : vector<16x32xf32>
    %187 = arith.addf %186, %29 : vector<16x32xf32>
    %cst_61 = arith.constant dense<0.000000e+00> : vector<16xf32>
    %188 = vector.multi_reduction <add>, %187, %cst_61 [1] : vector<16x32xf32> to vector<16xf32>
    %189 = vector.shape_cast %188 : vector<16xf32> to vector<16x1xf32>
    %cst_62 = arith.constant 3.200000e+01 : f32
    %190 = vector.broadcast %cst_62 : f32 to vector<16x1xf32>
    %191 = arith.divf %189, %190 : vector<16x1xf32>
    %192 = vector.broadcast %191 : vector<16x1xf32> to vector<16x32xf32>
    %193 = arith.subf %187, %192 : vector<16x32xf32>
    %194 = arith.mulf %193, %193 : vector<16x32xf32>
    %cst_63 = arith.constant dense<0.000000e+00> : vector<16xf32>
    %195 = vector.multi_reduction <add>, %194, %cst_63 [1] : vector<16x32xf32> to vector<16xf32>
    %196 = vector.shape_cast %195 : vector<16xf32> to vector<16x1xf32>
    %cst_64 = arith.constant 3.200000e+01 : f32
    %197 = vector.broadcast %cst_64 : f32 to vector<16x1xf32>
    %198 = arith.divf %196, %197 : vector<16x1xf32>
    %199 = vector.broadcast %191 : vector<16x1xf32> to vector<16x32xf32>
    %200 = arith.subf %187, %199 : vector<16x32xf32>
    %cst_65 = arith.constant 9.99999996E-13 : f32
    %201 = vector.broadcast %cst_65 : f32 to vector<16x1xf32>
    %202 = arith.addf %198, %201 : vector<16x1xf32>
    %203 = math.sqrt %202 : vector<16x1xf32>
    %204 = vector.broadcast %203 : vector<16x1xf32> to vector<16x32xf32>
    %205 = arith.divf %200, %204 : vector<16x32xf32>
    %206 = vector.broadcast %78 : vector<1x32xf32> to vector<16x32xf32>
    %207 = arith.mulf %206, %205 : vector<16x32xf32>
    %208 = vector.broadcast %80 : vector<1x32xf32> to vector<16x32xf32>
    %209 = arith.addf %207, %208 : vector<16x32xf32>
    %cst_66 = arith.constant dense<0.000000e+00> : vector<16x64xf32>
    %210 = tpu.matmul %209, %82, %cst_66 {dimension_numbers = #tpu.dot_dimension_numbers<[1], [0], [0], [1], [0, 0, 1, 1], [], []>} : vector<16x32xf32>, vector<32x64xf32>, vector<16x64xf32> -> vector<16x64xf32>
    %211 = vector.broadcast %84 : vector<1x64xf32> to vector<16x64xf32>
    %212 = arith.addf %210, %211 : vector<16x64xf32>
    %cst_67 = arith.constant 5.000000e-01 : f32
    %213 = vector.broadcast %cst_67 : f32 to vector<16x64xf32>
    %214 = arith.mulf %213, %212 : vector<16x64xf32>
    %cst_68 = arith.constant 4.471500e-02 : f32
    %215 = vector.broadcast %cst_68 : f32 to vector<16x64xf32>
    %216 = arith.mulf %215, %212 : vector<16x64xf32>
    %217 = arith.mulf %216, %212 : vector<16x64xf32>
    %218 = arith.mulf %217, %212 : vector<16x64xf32>
    %219 = arith.addf %212, %218 : vector<16x64xf32>
    %cst_69 = arith.constant 0.797884583 : f32
    %220 = vector.broadcast %cst_69 : f32 to vector<16x64xf32>
    %221 = arith.mulf %220, %219 : vector<16x64xf32>
    %222 = math.tanh %221 : vector<16x64xf32>
    %cst_70 = arith.constant 1.000000e+00 : f32
    %223 = vector.broadcast %cst_70 : f32 to vector<16x64xf32>
    %224 = arith.addf %223, %222 : vector<16x64xf32>
    %225 = arith.mulf %214, %224 : vector<16x64xf32>
    %cst_71 = arith.constant dense<0.000000e+00> : vector<16x32xf32>
    %226 = tpu.matmul %225, %86, %cst_71 {dimension_numbers = #tpu.dot_dimension_numbers<[1], [0], [0], [1], [0, 0, 1, 1], [], []>} : vector<16x64xf32>, vector<64x32xf32>, vector<16x32xf32> -> vector<16x32xf32>
    %227 = vector.broadcast %88 : vector<1x32xf32> to vector<16x32xf32>
    %228 = arith.addf %226, %227 : vector<16x32xf32>
    %229 = arith.addf %228, %209 : vector<16x32xf32>
    %cst_72 = arith.constant dense<0.000000e+00> : vector<16xf32>
    %230 = vector.multi_reduction <add>, %229, %cst_72 [1] : vector<16x32xf32> to vector<16xf32>
    %231 = vector.shape_cast %230 : vector<16xf32> to vector<16x1xf32>
    %cst_73 = arith.constant 3.200000e+01 : f32
    %232 = vector.broadcast %cst_73 : f32 to vector<16x1xf32>
    %233 = arith.divf %231, %232 : vector<16x1xf32>
    %234 = vector.broadcast %233 : vector<16x1xf32> to vector<16x32xf32>
    %235 = arith.subf %229, %234 : vector<16x32xf32>
    %236 = arith.mulf %235, %235 : vector<16x32xf32>
    %cst_74 = arith.constant dense<0.000000e+00> : vector<16xf32>
    %237 = vector.multi_reduction <add>, %236, %cst_74 [1] : vector<16x32xf32> to vector<16xf32>
    %238 = vector.shape_cast %237 : vector<16xf32> to vector<16x1xf32>
    %cst_75 = arith.constant 3.200000e+01 : f32
    %239 = vector.broadcast %cst_75 : f32 to vector<16x1xf32>
    %240 = arith.divf %238, %239 : vector<16x1xf32>
    %241 = vector.broadcast %233 : vector<16x1xf32> to vector<16x32xf32>
    %242 = arith.subf %229, %241 : vector<16x32xf32>
    %cst_76 = arith.constant 9.99999996E-13 : f32
    %243 = vector.broadcast %cst_76 : f32 to vector<16x1xf32>
    %244 = arith.addf %240, %243 : vector<16x1xf32>
    %245 = math.sqrt %244 : vector<16x1xf32>
    %246 = vector.broadcast %245 : vector<16x1xf32> to vector<16x32xf32>
    %247 = arith.divf %242, %246 : vector<16x32xf32>
    %248 = vector.broadcast %90 : vector<1x32xf32> to vector<16x32xf32>
    %249 = arith.mulf %248, %247 : vector<16x32xf32>
    %250 = vector.broadcast %92 : vector<1x32xf32> to vector<16x32xf32>
    %251 = arith.addf %249, %250 : vector<16x32xf32>
    %c1 = arith.constant 1 : index
    %c0_77 = arith.constant 0 : index
    %c0_78 = arith.constant 0 : index
    %252 = vector.load %arg6[%c1, %c0_77, %c0_78] : memref<2x32x96xf32, #tpu.memory_space<vmem>>, vector<1x32x96xf32>
    %253 = vector.shape_cast %252 : vector<1x32x96xf32> to vector<32x96xf32>
    %c1_79 = arith.constant 1 : index
    %c0_80 = arith.constant 0 : index
    %c0_81 = arith.constant 0 : index
    %254 = vector.load %arg7[%c1_79, %c0_80, %c0_81] : memref<2x1x96xf32, #tpu.memory_space<vmem>>, vector<1x1x96xf32>
    %255 = vector.shape_cast %254 : vector<1x1x96xf32> to vector<1x96xf32>
    %c1_82 = arith.constant 1 : index
    %c0_83 = arith.constant 0 : index
    %c0_84 = arith.constant 0 : index
    %256 = vector.load %arg8[%c1_82, %c0_83, %c0_84] : memref<2x32x32xf32, #tpu.memory_space<vmem>>, vector<1x32x32xf32>
    %257 = vector.shape_cast %256 : vector<1x32x32xf32> to vector<32x32xf32>
    %c1_85 = arith.constant 1 : index
    %c0_86 = arith.constant 0 : index
    %c0_87 = arith.constant 0 : index
    %258 = vector.load %arg9[%c1_85, %c0_86, %c0_87] : memref<2x1x32xf32, #tpu.memory_space<vmem>>, vector<1x1x32xf32>
    %259 = vector.shape_cast %258 : vector<1x1x32xf32> to vector<1x32xf32>
    %c1_88 = arith.constant 1 : index
    %c0_89 = arith.constant 0 : index
    %c0_90 = arith.constant 0 : index
    %260 = vector.load %arg10[%c1_88, %c0_89, %c0_90] : memref<2x1x32xf32, #tpu.memory_space<vmem>>, vector<1x1x32xf32>
    %261 = vector.shape_cast %260 : vector<1x1x32xf32> to vector<1x32xf32>
    %c1_91 = arith.constant 1 : index
    %c0_92 = arith.constant 0 : index
    %c0_93 = arith.constant 0 : index
    %262 = vector.load %arg11[%c1_91, %c0_92, %c0_93] : memref<2x1x32xf32, #tpu.memory_space<vmem>>, vector<1x1x32xf32>
    %263 = vector.shape_cast %262 : vector<1x1x32xf32> to vector<1x32xf32>
    %c1_94 = arith.constant 1 : index
    %c0_95 = arith.constant 0 : index
    %c0_96 = arith.constant 0 : index
    %264 = vector.load %arg12[%c1_94, %c0_95, %c0_96] : memref<2x32x64xf32, #tpu.memory_space<vmem>>, vector<1x32x64xf32>
    %265 = vector.shape_cast %264 : vector<1x32x64xf32> to vector<32x64xf32>
    %c1_97 = arith.constant 1 : index
    %c0_98 = arith.constant 0 : index
    %c0_99 = arith.constant 0 : index
    %266 = vector.load %arg13[%c1_97, %c0_98, %c0_99] : memref<2x1x64xf32, #tpu.memory_space<vmem>>, vector<1x1x64xf32>
    %267 = vector.shape_cast %266 : vector<1x1x64xf32> to vector<1x64xf32>
    %c1_100 = arith.constant 1 : index
    %c0_101 = arith.constant 0 : index
    %c0_102 = arith.constant 0 : index
    %268 = vector.load %arg14[%c1_100, %c0_101, %c0_102] : memref<2x64x32xf32, #tpu.memory_space<vmem>>, vector<1x64x32xf32>
    %269 = vector.shape_cast %268 : vector<1x64x32xf32> to vector<64x32xf32>
    %c1_103 = arith.constant 1 : index
    %c0_104 = arith.constant 0 : index
    %c0_105 = arith.constant 0 : index
    %270 = vector.load %arg15[%c1_103, %c0_104, %c0_105] : memref<2x1x32xf32, #tpu.memory_space<vmem>>, vector<1x1x32xf32>
    %271 = vector.shape_cast %270 : vector<1x1x32xf32> to vector<1x32xf32>
    %c1_106 = arith.constant 1 : index
    %c0_107 = arith.constant 0 : index
    %c0_108 = arith.constant 0 : index
    %272 = vector.load %arg16[%c1_106, %c0_107, %c0_108] : memref<2x1x32xf32, #tpu.memory_space<vmem>>, vector<1x1x32xf32>
    %273 = vector.shape_cast %272 : vector<1x1x32xf32> to vector<1x32xf32>
    %c1_109 = arith.constant 1 : index
    %c0_110 = arith.constant 0 : index
    %c0_111 = arith.constant 0 : index
    %274 = vector.load %arg17[%c1_109, %c0_110, %c0_111] : memref<2x1x32xf32, #tpu.memory_space<vmem>>, vector<1x1x32xf32>
    %275 = vector.shape_cast %274 : vector<1x1x32xf32> to vector<1x32xf32>
    %cst_112 = arith.constant dense<0.000000e+00> : vector<16x96xf32>
    %276 = tpu.matmul %251, %253, %cst_112 {dimension_numbers = #tpu.dot_dimension_numbers<[1], [0], [0], [1], [0, 0, 1, 1], [], []>} : vector<16x32xf32>, vector<32x96xf32>, vector<16x96xf32> -> vector<16x96xf32>
    %277 = vector.broadcast %255 : vector<1x96xf32> to vector<16x96xf32>
    %278 = arith.addf %276, %277 : vector<16x96xf32>
    %279 = vector.extract_strided_slice %278 {offsets = [0, 0], sizes = [16, 32], strides = [1, 1]} : vector<16x96xf32> to vector<16x32xf32>
    %cst_113 = arith.constant 0.353553385 : f32
    %280 = vector.broadcast %cst_113 : f32 to vector<16x32xf32>
    %281 = arith.mulf %279, %280 : vector<16x32xf32>
    %282 = vector.extract_strided_slice %278 {offsets = [0, 32], sizes = [16, 32], strides = [1, 1]} : vector<16x96xf32> to vector<16x32xf32>
    %283 = vector.extract_strided_slice %278 {offsets = [0, 64], sizes = [16, 32], strides = [1, 1]} : vector<16x96xf32> to vector<16x32xf32>
    %284 = vector.extract_strided_slice %281 {offsets = [0, 0], sizes = [8, 8], strides = [1, 1]} : vector<16x32xf32> to vector<8x8xf32>
    %285 = vector.extract_strided_slice %281 {offsets = [0, 8], sizes = [8, 8], strides = [1, 1]} : vector<16x32xf32> to vector<8x8xf32>
    %286 = vector.extract_strided_slice %281 {offsets = [0, 16], sizes = [8, 8], strides = [1, 1]} : vector<16x32xf32> to vector<8x8xf32>
    %287 = vector.extract_strided_slice %281 {offsets = [0, 24], sizes = [8, 8], strides = [1, 1]} : vector<16x32xf32> to vector<8x8xf32>
    %288 = vector.extract_strided_slice %281 {offsets = [8, 0], sizes = [8, 8], strides = [1, 1]} : vector<16x32xf32> to vector<8x8xf32>
    %289 = vector.extract_strided_slice %281 {offsets = [8, 8], sizes = [8, 8], strides = [1, 1]} : vector<16x32xf32> to vector<8x8xf32>
    %290 = vector.extract_strided_slice %281 {offsets = [8, 16], sizes = [8, 8], strides = [1, 1]} : vector<16x32xf32> to vector<8x8xf32>
    %291 = vector.extract_strided_slice %281 {offsets = [8, 24], sizes = [8, 8], strides = [1, 1]} : vector<16x32xf32> to vector<8x8xf32>
    %292 = vector.shape_cast %284 : vector<8x8xf32> to vector<1x8x8xf32>
    %293 = vector.shape_cast %285 : vector<8x8xf32> to vector<1x8x8xf32>
    %294 = vector.shape_cast %286 : vector<8x8xf32> to vector<1x8x8xf32>
    %295 = vector.shape_cast %287 : vector<8x8xf32> to vector<1x8x8xf32>
    %296 = vector.shape_cast %288 : vector<8x8xf32> to vector<1x8x8xf32>
    %297 = vector.shape_cast %289 : vector<8x8xf32> to vector<1x8x8xf32>
    %298 = vector.shape_cast %290 : vector<8x8xf32> to vector<1x8x8xf32>
    %299 = vector.shape_cast %291 : vector<8x8xf32> to vector<1x8x8xf32>
    %300 = tpu.concatenate %292, %293, %294, %295, %296, %297, %298, %299 in 0 : vector<1x8x8xf32>, vector<1x8x8xf32>, vector<1x8x8xf32>, vector<1x8x8xf32>, vector<1x8x8xf32>, vector<1x8x8xf32>, vector<1x8x8xf32>, vector<1x8x8xf32> -> vector<8x8x8xf32>
    %301 = vector.extract_strided_slice %282 {offsets = [0, 0], sizes = [8, 8], strides = [1, 1]} : vector<16x32xf32> to vector<8x8xf32>
    %302 = vector.extract_strided_slice %282 {offsets = [0, 8], sizes = [8, 8], strides = [1, 1]} : vector<16x32xf32> to vector<8x8xf32>
    %303 = vector.extract_strided_slice %282 {offsets = [0, 16], sizes = [8, 8], strides = [1, 1]} : vector<16x32xf32> to vector<8x8xf32>
    %304 = vector.extract_strided_slice %282 {offsets = [0, 24], sizes = [8, 8], strides = [1, 1]} : vector<16x32xf32> to vector<8x8xf32>
    %305 = vector.extract_strided_slice %282 {offsets = [8, 0], sizes = [8, 8], strides = [1, 1]} : vector<16x32xf32> to vector<8x8xf32>
    %306 = vector.extract_strided_slice %282 {offsets = [8, 8], sizes = [8, 8], strides = [1, 1]} : vector<16x32xf32> to vector<8x8xf32>
    %307 = vector.extract_strided_slice %282 {offsets = [8, 16], sizes = [8, 8], strides = [1, 1]} : vector<16x32xf32> to vector<8x8xf32>
    %308 = vector.extract_strided_slice %282 {offsets = [8, 24], sizes = [8, 8], strides = [1, 1]} : vector<16x32xf32> to vector<8x8xf32>
    %309 = vector.shape_cast %301 : vector<8x8xf32> to vector<1x8x8xf32>
    %310 = vector.shape_cast %302 : vector<8x8xf32> to vector<1x8x8xf32>
    %311 = vector.shape_cast %303 : vector<8x8xf32> to vector<1x8x8xf32>
    %312 = vector.shape_cast %304 : vector<8x8xf32> to vector<1x8x8xf32>
    %313 = vector.shape_cast %305 : vector<8x8xf32> to vector<1x8x8xf32>
    %314 = vector.shape_cast %306 : vector<8x8xf32> to vector<1x8x8xf32>
    %315 = vector.shape_cast %307 : vector<8x8xf32> to vector<1x8x8xf32>
    %316 = vector.shape_cast %308 : vector<8x8xf32> to vector<1x8x8xf32>
    %317 = tpu.concatenate %309, %310, %311, %312, %313, %314, %315, %316 in 0 : vector<1x8x8xf32>, vector<1x8x8xf32>, vector<1x8x8xf32>, vector<1x8x8xf32>, vector<1x8x8xf32>, vector<1x8x8xf32>, vector<1x8x8xf32>, vector<1x8x8xf32> -> vector<8x8x8xf32>
    %318 = vector.extract_strided_slice %283 {offsets = [0, 0], sizes = [8, 8], strides = [1, 1]} : vector<16x32xf32> to vector<8x8xf32>
    %319 = vector.extract_strided_slice %283 {offsets = [0, 8], sizes = [8, 8], strides = [1, 1]} : vector<16x32xf32> to vector<8x8xf32>
    %320 = vector.extract_strided_slice %283 {offsets = [0, 16], sizes = [8, 8], strides = [1, 1]} : vector<16x32xf32> to vector<8x8xf32>
    %321 = vector.extract_strided_slice %283 {offsets = [0, 24], sizes = [8, 8], strides = [1, 1]} : vector<16x32xf32> to vector<8x8xf32>
    %322 = vector.extract_strided_slice %283 {offsets = [8, 0], sizes = [8, 8], strides = [1, 1]} : vector<16x32xf32> to vector<8x8xf32>
    %323 = vector.extract_strided_slice %283 {offsets = [8, 8], sizes = [8, 8], strides = [1, 1]} : vector<16x32xf32> to vector<8x8xf32>
    %324 = vector.extract_strided_slice %283 {offsets = [8, 16], sizes = [8, 8], strides = [1, 1]} : vector<16x32xf32> to vector<8x8xf32>
    %325 = vector.extract_strided_slice %283 {offsets = [8, 24], sizes = [8, 8], strides = [1, 1]} : vector<16x32xf32> to vector<8x8xf32>
    %326 = vector.shape_cast %318 : vector<8x8xf32> to vector<1x8x8xf32>
    %327 = vector.shape_cast %319 : vector<8x8xf32> to vector<1x8x8xf32>
    %328 = vector.shape_cast %320 : vector<8x8xf32> to vector<1x8x8xf32>
    %329 = vector.shape_cast %321 : vector<8x8xf32> to vector<1x8x8xf32>
    %330 = vector.shape_cast %322 : vector<8x8xf32> to vector<1x8x8xf32>
    %331 = vector.shape_cast %323 : vector<8x8xf32> to vector<1x8x8xf32>
    %332 = vector.shape_cast %324 : vector<8x8xf32> to vector<1x8x8xf32>
    %333 = vector.shape_cast %325 : vector<8x8xf32> to vector<1x8x8xf32>
    %334 = tpu.concatenate %326, %327, %328, %329, %330, %331, %332, %333 in 0 : vector<1x8x8xf32>, vector<1x8x8xf32>, vector<1x8x8xf32>, vector<1x8x8xf32>, vector<1x8x8xf32>, vector<1x8x8xf32>, vector<1x8x8xf32>, vector<1x8x8xf32> -> vector<8x8x8xf32>
    "tpu.trace_start"() <{level = 10 : i32, message = "bqd,bkd->bqk"}> : () -> ()
    %cst_114 = arith.constant dense<0.000000e+00> : vector<8x8x8xf32>
    %335 = tpu.matmul %300, %317, %cst_114 {dimension_numbers = #tpu.dot_dimension_numbers<[2], [2], [1], [1], [0, 0, 0, 1, 1, 1], [0], [0]>} : vector<8x8x8xf32>, vector<8x8x8xf32>, vector<8x8x8xf32> -> vector<8x8x8xf32>
    "tpu.trace_stop"() : () -> ()
    %336 = arith.addf %335, %68 : vector<8x8x8xf32>
    %cst_115 = arith.constant dense<0xFF800000> : vector<8x8xf32>
    %337 = vector.multi_reduction <maximumf>, %336, %cst_115 [2] : vector<8x8x8xf32> to vector<8x8xf32>
    %338 = vector.shape_cast %337 : vector<8x8xf32> to vector<8x8x1xf32>
    %339 = vector.broadcast %338 : vector<8x8x1xf32> to vector<8x8x8xf32>
    %340 = arith.subf %336, %339 : vector<8x8x8xf32>
    %341 = math.exp %340 : vector<8x8x8xf32>
    %cst_116 = arith.constant dense<0.000000e+00> : vector<8x8xf32>
    %342 = vector.multi_reduction <add>, %341, %cst_116 [2] : vector<8x8x8xf32> to vector<8x8xf32>
    %343 = vector.shape_cast %342 : vector<8x8xf32> to vector<8x8x1xf32>
    %344 = tpu.reciprocal %343 {approx = true} : vector<8x8x1xf32> -> vector<8x8x1xf32>
    %345 = vector.broadcast %344 : vector<8x8x1xf32> to vector<8x8x8xf32>
    %346 = arith.mulf %341, %345 : vector<8x8x8xf32>
    "tpu.trace_start"() <{level = 10 : i32, message = "bqk,bkd->bqd"}> : () -> ()
    %cst_117 = arith.constant dense<0.000000e+00> : vector<8x8x8xf32>
    %347 = tpu.matmul %346, %334, %cst_117 {dimension_numbers = #tpu.dot_dimension_numbers<[2], [1], [1], [2], [0, 0, 0, 1, 1, 2], [0], [0]>} : vector<8x8x8xf32>, vector<8x8x8xf32>, vector<8x8x8xf32> -> vector<8x8x8xf32>
    "tpu.trace_stop"() : () -> ()
    %348 = vector.extract_strided_slice %347 {offsets = [0, 0, 0], sizes = [1, 8, 8], strides = [1, 1, 1]} : vector<8x8x8xf32> to vector<1x8x8xf32>
    %349 = vector.shape_cast %348 : vector<1x8x8xf32> to vector<8x8xf32>
    %350 = vector.extract_strided_slice %347 {offsets = [1, 0, 0], sizes = [1, 8, 8], strides = [1, 1, 1]} : vector<8x8x8xf32> to vector<1x8x8xf32>
    %351 = vector.shape_cast %350 : vector<1x8x8xf32> to vector<8x8xf32>
    %352 = vector.extract_strided_slice %347 {offsets = [2, 0, 0], sizes = [1, 8, 8], strides = [1, 1, 1]} : vector<8x8x8xf32> to vector<1x8x8xf32>
    %353 = vector.shape_cast %352 : vector<1x8x8xf32> to vector<8x8xf32>
    %354 = vector.extract_strided_slice %347 {offsets = [3, 0, 0], sizes = [1, 8, 8], strides = [1, 1, 1]} : vector<8x8x8xf32> to vector<1x8x8xf32>
    %355 = vector.shape_cast %354 : vector<1x8x8xf32> to vector<8x8xf32>
    %356 = tpu.concatenate %349, %351, %353, %355 in 1 : vector<8x8xf32>, vector<8x8xf32>, vector<8x8xf32>, vector<8x8xf32> -> vector<8x32xf32>
    %357 = vector.extract_strided_slice %347 {offsets = [4, 0, 0], sizes = [1, 8, 8], strides = [1, 1, 1]} : vector<8x8x8xf32> to vector<1x8x8xf32>
    %358 = vector.shape_cast %357 : vector<1x8x8xf32> to vector<8x8xf32>
    %359 = vector.extract_strided_slice %347 {offsets = [5, 0, 0], sizes = [1, 8, 8], strides = [1, 1, 1]} : vector<8x8x8xf32> to vector<1x8x8xf32>
    %360 = vector.shape_cast %359 : vector<1x8x8xf32> to vector<8x8xf32>
    %361 = vector.extract_strided_slice %347 {offsets = [6, 0, 0], sizes = [1, 8, 8], strides = [1, 1, 1]} : vector<8x8x8xf32> to vector<1x8x8xf32>
    %362 = vector.shape_cast %361 : vector<1x8x8xf32> to vector<8x8xf32>
    %363 = vector.extract_strided_slice %347 {offsets = [7, 0, 0], sizes = [1, 8, 8], strides = [1, 1, 1]} : vector<8x8x8xf32> to vector<1x8x8xf32>
    %364 = vector.shape_cast %363 : vector<1x8x8xf32> to vector<8x8xf32>
    %365 = tpu.concatenate %358, %360, %362, %364 in 1 : vector<8x8xf32>, vector<8x8xf32>, vector<8x8xf32>, vector<8x8xf32> -> vector<8x32xf32>
    %366 = tpu.concatenate %356, %365 in 0 : vector<8x32xf32>, vector<8x32xf32> -> vector<16x32xf32>
    %cst_118 = arith.constant dense<0.000000e+00> : vector<16x32xf32>
    %367 = tpu.matmul %366, %257, %cst_118 {dimension_numbers = #tpu.dot_dimension_numbers<[1], [0], [0], [1], [0, 0, 1, 1], [], []>} : vector<16x32xf32>, vector<32x32xf32>, vector<16x32xf32> -> vector<16x32xf32>
    %368 = vector.broadcast %259 : vector<1x32xf32> to vector<16x32xf32>
    %369 = arith.addf %367, %368 : vector<16x32xf32>
    %370 = arith.addf %369, %251 : vector<16x32xf32>
    %cst_119 = arith.constant dense<0.000000e+00> : vector<16xf32>
    %371 = vector.multi_reduction <add>, %370, %cst_119 [1] : vector<16x32xf32> to vector<16xf32>
    %372 = vector.shape_cast %371 : vector<16xf32> to vector<16x1xf32>
    %cst_120 = arith.constant 3.200000e+01 : f32
    %373 = vector.broadcast %cst_120 : f32 to vector<16x1xf32>
    %374 = arith.divf %372, %373 : vector<16x1xf32>
    %375 = vector.broadcast %374 : vector<16x1xf32> to vector<16x32xf32>
    %376 = arith.subf %370, %375 : vector<16x32xf32>
    %377 = arith.mulf %376, %376 : vector<16x32xf32>
    %cst_121 = arith.constant dense<0.000000e+00> : vector<16xf32>
    %378 = vector.multi_reduction <add>, %377, %cst_121 [1] : vector<16x32xf32> to vector<16xf32>
    %379 = vector.shape_cast %378 : vector<16xf32> to vector<16x1xf32>
    %cst_122 = arith.constant 3.200000e+01 : f32
    %380 = vector.broadcast %cst_122 : f32 to vector<16x1xf32>
    %381 = arith.divf %379, %380 : vector<16x1xf32>
    %382 = vector.broadcast %374 : vector<16x1xf32> to vector<16x32xf32>
    %383 = arith.subf %370, %382 : vector<16x32xf32>
    %cst_123 = arith.constant 9.99999996E-13 : f32
    %384 = vector.broadcast %cst_123 : f32 to vector<16x1xf32>
    %385 = arith.addf %381, %384 : vector<16x1xf32>
    %386 = math.sqrt %385 : vector<16x1xf32>
    %387 = vector.broadcast %386 : vector<16x1xf32> to vector<16x32xf32>
    %388 = arith.divf %383, %387 : vector<16x32xf32>
    %389 = vector.broadcast %261 : vector<1x32xf32> to vector<16x32xf32>
    %390 = arith.mulf %389, %388 : vector<16x32xf32>
    %391 = vector.broadcast %263 : vector<1x32xf32> to vector<16x32xf32>
    %392 = arith.addf %390, %391 : vector<16x32xf32>
    %cst_124 = arith.constant dense<0.000000e+00> : vector<16x64xf32>
    %393 = tpu.matmul %392, %265, %cst_124 {dimension_numbers = #tpu.dot_dimension_numbers<[1], [0], [0], [1], [0, 0, 1, 1], [], []>} : vector<16x32xf32>, vector<32x64xf32>, vector<16x64xf32> -> vector<16x64xf32>
    %394 = vector.broadcast %267 : vector<1x64xf32> to vector<16x64xf32>
    %395 = arith.addf %393, %394 : vector<16x64xf32>
    %cst_125 = arith.constant 5.000000e-01 : f32
    %396 = vector.broadcast %cst_125 : f32 to vector<16x64xf32>
    %397 = arith.mulf %396, %395 : vector<16x64xf32>
    %cst_126 = arith.constant 4.471500e-02 : f32
    %398 = vector.broadcast %cst_126 : f32 to vector<16x64xf32>
    %399 = arith.mulf %398, %395 : vector<16x64xf32>
    %400 = arith.mulf %399, %395 : vector<16x64xf32>
    %401 = arith.mulf %400, %395 : vector<16x64xf32>
    %402 = arith.addf %395, %401 : vector<16x64xf32>
    %cst_127 = arith.constant 0.797884583 : f32
    %403 = vector.broadcast %cst_127 : f32 to vector<16x64xf32>
    %404 = arith.mulf %403, %402 : vector<16x64xf32>
    %405 = math.tanh %404 : vector<16x64xf32>
    %cst_128 = arith.constant 1.000000e+00 : f32
    %406 = vector.broadcast %cst_128 : f32 to vector<16x64xf32>
    %407 = arith.addf %406, %405 : vector<16x64xf32>
    %408 = arith.mulf %397, %407 : vector<16x64xf32>
    %cst_129 = arith.constant dense<0.000000e+00> : vector<16x32xf32>
    %409 = tpu.matmul %408, %269, %cst_129 {dimension_numbers = #tpu.dot_dimension_numbers<[1], [0], [0], [1], [0, 0, 1, 1], [], []>} : vector<16x64xf32>, vector<64x32xf32>, vector<16x32xf32> -> vector<16x32xf32>
    %410 = vector.broadcast %271 : vector<1x32xf32> to vector<16x32xf32>
    %411 = arith.addf %409, %410 : vector<16x32xf32>
    %412 = arith.addf %411, %392 : vector<16x32xf32>
    %cst_130 = arith.constant dense<0.000000e+00> : vector<16xf32>
    %413 = vector.multi_reduction <add>, %412, %cst_130 [1] : vector<16x32xf32> to vector<16xf32>
    %414 = vector.shape_cast %413 : vector<16xf32> to vector<16x1xf32>
    %cst_131 = arith.constant 3.200000e+01 : f32
    %415 = vector.broadcast %cst_131 : f32 to vector<16x1xf32>
    %416 = arith.divf %414, %415 : vector<16x1xf32>
    %417 = vector.broadcast %416 : vector<16x1xf32> to vector<16x32xf32>
    %418 = arith.subf %412, %417 : vector<16x32xf32>
    %419 = arith.mulf %418, %418 : vector<16x32xf32>
    %cst_132 = arith.constant dense<0.000000e+00> : vector<16xf32>
    %420 = vector.multi_reduction <add>, %419, %cst_132 [1] : vector<16x32xf32> to vector<16xf32>
    %421 = vector.shape_cast %420 : vector<16xf32> to vector<16x1xf32>
    %cst_133 = arith.constant 3.200000e+01 : f32
    %422 = vector.broadcast %cst_133 : f32 to vector<16x1xf32>
    %423 = arith.divf %421, %422 : vector<16x1xf32>
    %424 = vector.broadcast %416 : vector<16x1xf32> to vector<16x32xf32>
    %425 = arith.subf %412, %424 : vector<16x32xf32>
    %cst_134 = arith.constant 9.99999996E-13 : f32
    %426 = vector.broadcast %cst_134 : f32 to vector<16x1xf32>
    %427 = arith.addf %423, %426 : vector<16x1xf32>
    %428 = math.sqrt %427 : vector<16x1xf32>
    %429 = vector.broadcast %428 : vector<16x1xf32> to vector<16x32xf32>
    %430 = arith.divf %425, %429 : vector<16x32xf32>
    %431 = vector.broadcast %273 : vector<1x32xf32> to vector<16x32xf32>
    %432 = arith.mulf %431, %430 : vector<16x32xf32>
    %433 = vector.broadcast %275 : vector<1x32xf32> to vector<16x32xf32>
    %434 = arith.addf %432, %433 : vector<16x32xf32>
    %c0_135 = arith.constant 0 : index
    %c0_136 = arith.constant 0 : index
    %435 = vector.load %arg20[%c0_135, %c0_136] : memref<16x32xf32, #tpu.memory_space<vmem>>, vector<16x32xf32>
    tpu.vector_store %arg20[%c0_135, %c0_136], %434 {strides = array<i32>} : memref<16x32xf32, #tpu.memory_space<vmem>>, vector<16x32xf32>,
    %436 = vector.extract_strided_slice %434 {offsets = [0, 0], sizes = [8, 32], strides = [1, 1]} : vector<16x32xf32> to vector<8x32xf32>
    %cst_137 = arith.constant dense<0.000000e+00> : vector<32xf32>
    %437 = vector.multi_reduction <add>, %436, %cst_137 [0] : vector<8x32xf32> to vector<32xf32>
    %438 = vector.shape_cast %437 : vector<32xf32> to vector<1x32xf32>
    %cst_138 = arith.constant 8.000000e+00 : f32
    %439 = vector.broadcast %cst_138 : f32 to vector<1x32xf32>
    %440 = arith.divf %438, %439 : vector<1x32xf32>
    %441 = vector.extract_strided_slice %434 {offsets = [8, 0], sizes = [8, 32], strides = [1, 1]} : vector<16x32xf32> to vector<8x32xf32>
    %cst_139 = arith.constant dense<0.000000e+00> : vector<32xf32>
    %442 = vector.multi_reduction <add>, %441, %cst_139 [0] : vector<8x32xf32> to vector<32xf32>
    %443 = vector.shape_cast %442 : vector<32xf32> to vector<1x32xf32>
    %cst_140 = arith.constant 8.000000e+00 : f32
    %444 = vector.broadcast %cst_140 : f32 to vector<1x32xf32>
    %445 = arith.divf %443, %444 : vector<1x32xf32>
    %446 = tpu.concatenate %440, %445 in 0 : vector<1x32xf32>, vector<1x32xf32> -> vector<2x32xf32>
    %c0_141 = arith.constant 0 : index
    %c0_142 = arith.constant 0 : index
    %447 = vector.load %arg18[%c0_141, %c0_142] : memref<32x32xf32, #tpu.memory_space<vmem>>, vector<32x32xf32>
    %cst_143 = arith.constant dense<0.000000e+00> : vector<2x32xf32>
    %448 = tpu.matmul %446, %447, %cst_143 {dimension_numbers = #tpu.dot_dimension_numbers<[1], [0], [0], [1], [0, 0, 1, 1], [], []>} : vector<2x32xf32>, vector<32x32xf32>, vector<2x32xf32> -> vector<2x32xf32>
    %c0_144 = arith.constant 0 : index
    %c0_145 = arith.constant 0 : index
    %449 = vector.load %arg19[%c0_144, %c0_145] : memref<1x32xf32, #tpu.memory_space<vmem>>, vector<1x32xf32>
    %450 = vector.broadcast %449 : vector<1x32xf32> to vector<2x32xf32>
    %451 = arith.addf %448, %450 : vector<2x32xf32>
    %452 = math.tanh %451 : vector<2x32xf32>
    %c0_146 = arith.constant 0 : index
    %c0_147 = arith.constant 0 : index
    %453 = vector.load %arg21[%c0_146, %c0_147] : memref<2x32xf32, #tpu.memory_space<vmem>>, vector<2x32xf32>
    tpu.vector_store %arg21[%c0_146, %c0_147], %452 {strides = array<i32>} : memref<2x32xf32, #tpu.memory_space<vmem>>, vector<2x32xf32>,
    return
  }
}

</mosaic_0001>

<bundles_post_ra>
// kernel: tpu_custom_call.1
= control target key start
LH: loop header
LB: loop body
LE: loop exit
PB: predicated region body
PF: predicated region fallthrough
CT: control target
= control target key end

     0   :  { %s5956_s0 = inlined_call_operand.hbm [shape: f32[16,32], index: 0, kind: input, shape index: {}]   ;;  %s5957_s1 = inlined_call_operand.hbm [shape: f32[8,32], index: 1, kind: input, shape index: {}]   ;;  %s5958_s2 = inlined_call_operand.hbm [shape: f32[16,32], index: 2, kind: input, shape index: {}]   ;;  %s5959_s3 = inlined_call_operand.vmem [shape: f32[2,8], index: 3, kind: input, shape index: {}]   ;;  %s5960_s4 = inlined_call_operand.hbm [shape: f32[1,32], index: 4, kind: input, shape index: {}]   ;;  %s5961_s5 = inlined_call_operand.hbm [shape: f32[1,32], index: 5, kind: input, shape index: {}]   ;;  %s5962_s6 = inlined_call_operand.vmem [shape: f32[2,32,96], index: 6, kind: input, shape index: {}]   ;;  %s5963_s7 = inlined_call_operand.hbm [shape: f32[2,1,96], index: 7, kind: input, shape index: {}]   ;;  %s5964_s8 = inlined_call_operand.vmem [shape: f32[2,32,32], index: 8, kind: input, shape index: {}]   ;;  %s5965_s9 = inlined_call_operand.hbm [shape: f32[2,1,32], index: 9, kind: input, shape index: {}]   ;;  %s5966_s10 = inlined_call_operand.vmem [shape: f32[2,1,32], index: 10, kind: input, shape index: {}]   ;;  %s5967_s11 = inlined_call_operand.vmem [shape: f32[2,1,32], index: 11, kind: input, shape index: {}]   ;;  %s5968_s12 = inlined_call_operand.vmem [shape: f32[2,32,64], index: 12, kind: input, shape index: {}]   ;;  %s5969_s13 = inlined_call_operand.vmem [shape: f32[2,1,64], index: 13, kind: input, shape index: {}]   ;;  %s5970_s14 = inlined_call_operand.vmem [shape: f32[2,64,32], index: 14, kind: input, shape index: {}]   ;;  %s5971_s15 = inlined_call_operand.vmem [shape: f32[2,1,32], index: 15, kind: input, shape index: {}]   ;;  %s5972_s16 = inlined_call_operand.vmem [shape: f32[2,1,32], index: 16, kind: input, shape index: {}]   ;;  %s5973_s17 = inlined_call_operand.vmem [shape: f32[2,1,32], index: 17, kind: input, shape index: {}]   ;;  %s5974_s18 = inlined_call_operand.vmem [shape: f32[32,32], index: 18, kind: input, shape index: {}]   ;;  %s5975_s19 = inlined_call_operand.vmem [shape: f32[1,32], index: 19, kind: input, shape index: {}]   ;;  %s5976_s20 = inlined_call_operand.hbm [shape: f32[16,32], index: 20, kind: output, shape index: {0}]   ;;  %s5977_s21 = inlined_call_operand.hbm [shape: f32[2,32], index: 21, kind: output, shape index: {1}]  }
   0x1   :  { %5987 = sst [smem:[#allocation23_spill]] %s5956_s0 }
   0x2   :  { %5988 = sst [smem:[#allocation24_spill]] %s5957_s1 }
   0x3   :  { %5989 = sst [smem:[#allocation25_spill]] %s5958_s2 }
   0x4   :  { %5990 = sst [smem:[#allocation26_spill]] %s5959_s3 }
   0x5   :  { %5991 = sst [smem:[#allocation27_spill]] %s5960_s4 }
   0x6   :  { %5992 = sst [smem:[#allocation28_spill]] %s5961_s5 }
   0x7   :  { %5993 = sst [smem:[#allocation29_spill]] %s5975_s19 }
   0x8   :  { %5994 = sst [smem:[#allocation30_spill]] %s5977_s21 }
   0x9   :  { %27 = vsyncpa [#allocation3], 0 }
   0xa   :  { %28 = vsyncpa [#allocation6], 0 }
   0xb   :  { %29 = vsyncpa [#allocation9], 0 }
   0xc   :  { %30 = vsyncpa [#allocation12], 0 }
   0xd   :  { %31 = vsyncpa [#allocation4], 0 }
   0xe   :  { %32 = vsyncpa [#allocation16], 0  ;;  %s5087_s2 = smov [#allocation5]   ;;  %s5088_s26 = smov [#allocation8]  }
   0xf   :  { %s51_s25 = sshll.u32 %s5087_s2, 4  ;;  %s75_s27 = sshll.u32 %s5088_s26, 4  ;;  %s52_s25 = int_to_ptr.vmem [resolvable:$true] %s51_s25  ;;  %s76_s27 = int_to_ptr.vmem [resolvable:$true] %s75_s27 }
  0x10   :  { %s5995_s29 = sld [smem:[#allocation24_spill]] }
  0x16   :  { %s4877_s0 = scalar_lea.hbm %s5995_s29, 128 }
  0x17   :  { %p4878_p0 = scmp.ne.s32.totalorder %s5995_s29, %s4877_s0  ;;  %p4881_p1 = scmp.lt.u32.totalorder %s4877_s0, %s5995_s29 }
  0x19   :  { %p4883_p2 = pnand %p4881_p1, %p4878_p0 }
  0x1b   :  { %4886 = shalt.err (!%p4883_p2)
}
  0x1c   :  { %s4887_s23 = scalar_lea.vmem %s52_s25, 128  ;;  %p4892_p4 = scmp.lt.s32.totalorder %s52_s25, %s52_s25 }
  0x1d   :  { %p4888_p3 = scmp.ne.s32.totalorder %s52_s25, %s4887_s23  ;;  %p4893_p5 = scmp.lt.s32.totalorder %s4887_s23, %s4887_s23 }
  0x1f   :  { %p4894_p6 = por %p4893_p5, %p4892_p4 }
  0x21   :  { %p4895_p7 = pnand %p4894_p6, %p4888_p3 }
  0x23   :  { %4898 = shalt.err (!%p4895_p7)
}
  0x24   :  { %54 = dma.hbm_to_vmem [thread:$0]  %s5995_s29, 128, %s52_s25, [#allocation6]  }
  0x25   :  { %s5996_s3 = sld [smem:[#allocation27_spill]] }
  0x2b   :  { %s4899_s28 = scalar_lea.hbm %s5996_s3, 16 }
  0x2c   :  { %p4900_p8 = scmp.ne.s32.totalorder %s5996_s3, %s4899_s28  ;;  %p4903_p9 = scmp.lt.u32.totalorder %s4899_s28, %s5996_s3 }
  0x2e   :  { %p4905_p10 = pnand %p4903_p9, %p4900_p8 }
  0x30   :  { %4908 = shalt.err (!%p4905_p10)
}
  0x31   :  { %s4909_s22 = scalar_lea.vmem %s76_s27, 16  ;;  %s4913_s23 = scalar_lea.vmem %s76_s27, 32 }
  0x32   :  { %p4910_p11 = scmp.ne.s32.totalorder %s76_s27, %s4909_s22  ;;  %p4914_p12 = scmp.lt.s32.totalorder %s76_s27, %s76_s27 }
  0x33   :  { %p4915_p13 = scmp.lt.s32.totalorder %s4913_s23, %s4909_s22 }
  0x35   :  { %p4916_p0 = por %p4915_p13, %p4914_p12 }
  0x37   :  { %p4917_p1 = pnand %p4916_p0, %p4910_p11 }
  0x39   :  { %4920 = shalt.err (!%p4917_p1)
}
  0x3a   :  { %78 = dma.hbm_to_vmem [thread:$0]  %s5996_s3, 16, %s76_s27, [#allocation9]  }
  0x3b   :  { %s5089_s1 = smov [#allocation11]   ;;  %s4921_s28 = scalar_lea.hbm %s5963_s7, 32 }
  0x3c   :  { %s96_s24 = sshll.u32 %s5089_s1, 4  ;;  %p4922_p2 = scmp.ne.s32.totalorder %s5963_s7, %s4921_s28  ;;  %s97_s24 = int_to_ptr.vmem [resolvable:$true] %s96_s24 }
  0x3d   :  { %p4925_p3 = scmp.lt.u32.totalorder %s4921_s28, %s5963_s7 }
  0x3f   :  { %p4927_p4 = pnand %p4925_p3, %p4922_p2 }
  0x41   :  { %4930 = shalt.err (!%p4927_p4)
}
  0x42   :  { %s4931_s22 = scalar_lea.vmem %s97_s24, 32  ;;  %p4936_p6 = scmp.lt.s32.totalorder %s97_s24, %s97_s24 }
  0x43   :  { %p4932_p5 = scmp.ne.s32.totalorder %s97_s24, %s4931_s22  ;;  %p4937_p7 = scmp.lt.s32.totalorder %s4931_s22, %s4931_s22 }
  0x45   :  { %p4938_p8 = por %p4937_p7, %p4936_p6 }
  0x47   :  { %p4939_p9 = pnand %p4938_p8, %p4932_p5 }
  0x49   :  { %4942 = shalt.err (!%p4939_p9)
}
  0x4a   :  { %s5984_s27 = smov 16   ;;  %s5986_s3 = smov 1  }
  0x4b   :  { %102 = dma.hbm_to_vmem [thread:$0]  %s5963_s7, 32, %s97_s24, [#allocation12], %s5984_s27, %s5984_s27, %s5986_s3  }
  0x4c   :  { %s5092_s29 = smov [#allocation2]   ;;  %s5997_s28 = sld [smem:[#allocation23_spill]] }
  0x4d   :  { %s38_s1 = sshll.u32 %s5092_s29, 4  ;;  %s39_s1 = int_to_ptr.vmem [resolvable:$true] %s38_s1 }
  0x52   :  { %s4943_s4 = scalar_lea.hbm %s5997_s28, 256 }
  0x53   :  { %p4944_p10 = scmp.ne.s32.totalorder %s5997_s28, %s4943_s4  ;;  %p4947_p11 = scmp.lt.u32.totalorder %s4943_s4, %s5997_s28 }
  0x55   :  { %p4949_p12 = pnand %p4947_p11, %p4944_p10 }
  0x57   :  { %4952 = shalt.err (!%p4949_p12)
}
  0x58   :  { %s4953_s21 = scalar_lea.vmem %s39_s1, 256  ;;  %p4958_p0 = scmp.lt.s32.totalorder %s39_s1, %s39_s1 }
  0x59   :  { %p4954_p13 = scmp.ne.s32.totalorder %s39_s1, %s4953_s21  ;;  %p4959_p1 = scmp.lt.s32.totalorder %s4953_s21, %s4953_s21 }
  0x5b   :  { %p4960_p2 = por %p4959_p1, %p4958_p0 }
  0x5d   :  { %p4961_p3 = pnand %p4960_p2, %p4954_p13 }
  0x5f   :  { %4964 = shalt.err (!%p4961_p3)
}
  0x60   :  { %s5093_s7 = smov 128   ;;  %s5094_s24 = smov 8  }
  0x61   :  { %44 = dma.hbm_to_vmem [thread:$0]  %s5997_s28, 256, %s39_s1, [#allocation3], %s5093_s7, %s5093_s7, %s5094_s24  }
  0x62   :  { %s5095_s29 = smov [#allocation7]   ;;  %s5096_s26 = smov [#allocation10]  }
  0x63   :  { %s60_s2 = sshll.u32 %s5095_s29, 4  ;;  %s85_s4 = sshll.u32 %s5096_s26, 4  ;;  %s61_s2 = int_to_ptr.vmem [resolvable:$true] %s60_s2  ;;  %s86_s4 = int_to_ptr.vmem [resolvable:$true] %s85_s4 }
  0x64   :  { %s5998_s0 = sld [smem:[#allocation25_spill]] }
  0x6a   :  { %s4965_s5 = scalar_lea.hbm %s5998_s0, 256 }
  0x6b   :  { %p4966_p4 = scmp.ne.s32.totalorder %s5998_s0, %s4965_s5  ;;  %p4969_p5 = scmp.lt.u32.totalorder %s4965_s5, %s5998_s0 }
  0x6d   :  { %p4971_p6 = pnand %p4969_p5, %p4966_p4 }
  0x6f   :  { %4974 = shalt.err (!%p4971_p6)
}
  0x70   :  { %s4975_s1 = scalar_lea.vmem %s61_s2, 256  ;;  %p4980_p8 = scmp.lt.s32.totalorder %s61_s2, %s61_s2 }
  0x71   :  { %p4976_p7 = scmp.ne.s32.totalorder %s61_s2, %s4975_s1  ;;  %p4981_p9 = scmp.lt.s32.totalorder %s4975_s1, %s4975_s1 }
  0x73   :  { %p4982_p10 = por %p4981_p9, %p4980_p8 }
  0x75   :  { %p4983_p11 = pnand %p4982_p10, %p4976_p7 }
  0x77   :  { %4986 = shalt.err (!%p4983_p11)
}
  0x78   :  { %66 = dma.hbm_to_vmem [thread:$0]  %s5998_s0, 256, %s61_s2, [#allocation6], %s5093_s7, %s5093_s7, %s5094_s24  }
  0x79   :  { %s5999_s19 = sld [smem:[#allocation28_spill]] }
  0x7f   :  { %s4987_s3 = scalar_lea.hbm %s5999_s19, 16 }
  0x80   :  { %p4988_p12 = scmp.ne.s32.totalorder %s5999_s19, %s4987_s3  ;;  %p4991_p13 = scmp.lt.u32.totalorder %s4987_s3, %s5999_s19 }
  0x82   :  { %p4993_p0 = pnand %p4991_p13, %p4988_p12 }
  0x84   :  { %4996 = shalt.err (!%p4993_p0)
}
  0x85   :  { %s4997_s5 = scalar_lea.vmem %s86_s4, 16  ;;  %s5001_s22 = scalar_lea.vmem %s86_s4, 32 }
  0x86   :  { %p4998_p1 = scmp.ne.s32.totalorder %s86_s4, %s4997_s5  ;;  %p5002_p2 = scmp.lt.s32.totalorder %s86_s4, %s86_s4 }
  0x87   :  { %p5003_p3 = scmp.lt.s32.totalorder %s5001_s22, %s4997_s5 }
  0x89   :  { %p5004_p4 = por %p5003_p3, %p5002_p2 }
  0x8b   :  { %p5005_p5 = pnand %p5004_p4, %p4998_p1 }
  0x8d   :  { %5008 = shalt.err (!%p5005_p5)
}
  0x8e   :  { %88 = dma.hbm_to_vmem [thread:$0]  %s5999_s19, 16, %s86_s4, [#allocation9]  }
  0x8f   :  { %s5097_s1 = smov [#allocation13]   ;;  %s5009_s25 = scalar_lea.hbm %s5965_s9, 32 }
  0x90   :  { %s110_s28 = sshll.u32 %s5097_s1, 4  ;;  %p5010_p6 = scmp.ne.s32.totalorder %s5965_s9, %s5009_s25  ;;  %s111_s28 = int_to_ptr.vmem [resolvable:$true] %s110_s28 }
  0x91   :  { %p5013_p7 = scmp.lt.u32.totalorder %s5009_s25, %s5965_s9 }
  0x93   :  { %p5015_p8 = pnand %p5013_p7, %p5010_p6 }
  0x95   :  { %5018 = shalt.err (!%p5015_p8)
}
  0x96   :  { %s5019_s21 = scalar_lea.vmem %s111_s28, 32  ;;  %p5024_p10 = scmp.lt.s32.totalorder %s111_s28, %s111_s28 }
  0x97   :  { %p5020_p9 = scmp.ne.s32.totalorder %s111_s28, %s5019_s21  ;;  %p5025_p11 = scmp.lt.s32.totalorder %s5019_s21, %s5019_s21 }
  0x99   :  { %p5026_p12 = por %p5025_p11, %p5024_p10 }
  0x9b   :  { %p5027_p13 = pnand %p5026_p12, %p5020_p9 }
  0x9d   :  { %5030 = shalt.err (!%p5027_p13)
}
  0x9e   :  { %s6000_s4 = smov 1   ;;  %s6001_s19 = smov 16  }
  0x9f   :  { %116 = dma.hbm_to_vmem [thread:$0]  %s5965_s9, 32, %s111_s28, [#allocation12], %s6001_s19, %s6001_s19, %s6000_s4  }
  0xa0   :  { %5075 = dma.done.wait [#allocation3], 256  }
  0xa1   :  { %5076 = vsyncadd [#allocation3], 4294967040 }
  0xa2   :  { %5077 = dma.done.wait [#allocation6], 384  }
  0xa3   :  { %5078 = vsyncadd [#allocation6], 4294966912 }
  0xa4   :  { %5079 = dma.done.wait [#allocation9], 32  }
  0xa5   :  { %5080 = vsyncadd [#allocation9], 4294967264 }
  0xa6   :  { %5081 = dma.done.wait [#allocation12], 64  }
  0xa7   :  { %5082 = vsyncadd [#allocation12], 4294967232  ;;  %v158_v0 = vld [vmem:[#allocation5] sm:$0xff]  ;;  %v159_v1 = vld [vmem:[#allocation2] sm:$0xff]  ;;  %vm169_vm0 = vcmask 261120   ;;  %v5098_v53 = vmov 0.0  }
  0xa8   :  { %v163_v2 = vld [vmem:[#allocation7] sm:$0xff]  ;;  %v161_v3 = vadd.f32 %v159_v1, %v158_v0  ;;  %v160_v4 = vld [vmem:[#allocation2 + $0x8] sm:$0xff]  ;;  %v164_v5 = vld [vmem:[#allocation7 + $0x8] sm:$0xff]  ;;  %4390 = vmatprep.subr.mxu1 %v5098_v53  ;;  %vm5099_vm5 = vmmov 0   ;;  %s5100_s3 = smov 112   ;;  %s5101_s29 = smov 120  }
  0xa9   :  { %v162_v6 = vadd.f32 %v160_v4, %v158_v0  ;;  %v238_v21 = vld [vmem:[%s5962_s6] sm:$0xff]  ;;  %v239_v22 = vld [vmem:[%s5962_s6 + $0x8] sm:$0xff]  ;;  %v240_v23 = vld [vmem:[%s5962_s6 + $0x10] sm:$0xff]  ;;  %4392 = vmatprep.mubr.msk.f32.mxu1 %vm5099_vm5, %v5098_v53  ;;  %s5102_s26 = smov 104   ;;  %s5103_s30 = smov 96   ;;  %vm385_vm6 = vcmask 64512  }
  0xaa   :  { %v165_v7 = vadd.f32 %v163_v2, %v161_v3  ;;  %v4654_v24 = vpack.c.bf16 %v239_v22, %v238_v21  ;;  %v241_v25 = vld [vmem:[%s5962_s6 + $0x18] sm:$0xff]  ;;  %v4144_v44 = vld [vmem:[#allocation8] ss:$0 sm:$0xff]  ;;  %v4145_v46 = vld [vmem:[#allocation10] ss:$0 sm:$0xff]  ;;  %s6002_s5 = sld [smem:[#allocation26_spill]] }
  0xab   :  { %v166_v8 = vadd.f32 %v164_v5, %v162_v6  ;;  %v4658_v26 = vpack.c.bf16 %v241_v25, %v240_v23  ;;  %v4146_v54 = vld [vmem:[#allocation11] ss:$0 sm:$0xff]  ;;  %v5104_v21 = vmov -1e+30   ;;  %s5105_s22 = smov 64   ;;  %s5106_s21 = smov 24  }
  0xac   :  { %v170_v9 = vsel %vm169_vm0, %v165_v7, 0.0  ;;  %4655 = vmatprep.subr.bf16.mxu0 %v4654_v24  ;;  %vm1701_vm8 = vcmask 130048   ;;  %vm1703_vm9 = vcmask 195584   ;;  %vm1976_vm14 = vcmask 523264  }
  0xad   :  { %171 = vadd.xlane.f32.xlu0 %v170_v9  ;;  %v173_v10 = vsel %vm169_vm0, %v166_v8, 0.0  ;;  %4657 = vmatpush3.bf16.msra.mxu0 %v4654_v24 }
  0xae   :  { %4659 = vmatprep.subr.bf16.mxu0 %v4658_v26 }
  0xb1   :  { %174 = vadd.xlane.f32.xlu0 %v173_v10  ;;  %4661 = vmatpush3.bf16.msra.mxu0 %v4658_v26 }
  0xb2   :  { %4410 = vmatprep.subr.mxu0 %v5098_v53 }
 0x13a   :  { %v172_v11 = vpop.xlane.xlu0 %171 }
 0x13b   :  { %v177_v12 = vmul.f32 0.03125, %v172_v11 }
 0x13d   :  { %v179_v13 = vsub.f32 %v165_v7, %v177_v12 }
 0x13e   :  { %v175_v14 = vpop.xlane.xlu0 %174 }
 0x13f   :  { %v178_v15 = vmul.f32 0.03125, %v175_v14  ;;  %v181_v16 = vmul.f32 %v179_v13, %v179_v13 }
 0x141   :  { %v180_v17 = vsub.f32 %v166_v8, %v178_v15  ;;  %v183_v18 = vsel %vm169_vm0, %v181_v16, 0.0 }
 0x142   :  { %184 = vadd.xlane.f32.xlu1 %v183_v18  ;;  %v227_v18 = vld [vmem:[%s6002_s5] sm:$0x3] }
 0x143   :  { %v182_v19 = vmul.f32 %v180_v17, %v180_v17  ;;  %vm228_vm7 = vcmp.gt.f32.partialorder %v227_v18, 0.5 }
 0x144   :  { %v229_v22 = vsel %vm228_vm7, 0.0, %v5104_v21 }
 0x145   :  { %v186_v20 = vsel %vm169_vm0, %v182_v19, 0.0 }
 0x146   :  { %187 = vadd.xlane.f32.xlu1 %v186_v20 }
 0x1cf   :  { %v185_v27 = vpop.xlane.xlu1 %184 }
 0x1d0   :  { %v189_v28 = vmul.f32 0.03125, %v185_v27 }
 0x1d2   :  { %v191_v29 = vadd.f32 1e-12, %v189_v28 }
 0x1d3   :  { %v188_v30 = vpop.xlane.xlu1 %187 }
 0x1d4   :  { %4763 = vrsqrt.f32 %v191_v29  ;;  %v190_v31 = vmul.f32 0.03125, %v188_v30  ;;  %vm195_vm1 = vcmp.eq.f32.partialorder %v191_v29, inf  ;;  %v198_v35 = vand.u32 2147483648, %v191_v29 }
 0x1d5   :  { %vm197_vm2 = vcmp.eq.f32.partialorder %v191_v29, 0.0 }
 0x1d6   :  { %v192_v32 = vadd.f32 1e-12, %v190_v31 }
 0x1d8   :  { %4765 = vrsqrt.f32 %v192_v32  ;;  %vm202_vm3 = vcmp.eq.f32.partialorder %v192_v32, inf  ;;  %v205_v40 = vand.u32 2147483648, %v192_v32  ;;  %vm204_vm4 = vcmp.eq.f32.partialorder %v192_v32, 0.0 }
 0x1de   :  { %v4764_v33 = vpop.eup %4763 }
 0x1df   :  { %v194_v34 = vmul.f32 %v4764_v33, %v191_v29 }
 0x1e1   :  { %v196_v36 = vsel %vm195_vm1, %v191_v29, %v194_v34 }
 0x1e2   :  { %v4766_v37 = vpop.eup %4765  ;;  %v199_v38 = vsel %vm197_vm2, %v198_v35, %v196_v36 }
 0x1e3   :  { %v201_v39 = vmul.f32 %v4766_v37, %v192_v32  ;;  %4767 = vrcp.f32 %v199_v38 }
 0x1e5   :  { %v203_v41 = vsel %vm202_vm3, %v192_v32, %v201_v39 }
 0x1e6   :  { %v206_v42 = vsel %vm204_vm4, %v205_v40, %v203_v41 }
 0x1e7   :  { %4769 = vrcp.f32 %v206_v42 }
 0x1ed   :  { %v4768_v43 = vpop.eup %4767 }
 0x1ee   :  { %v208_v45 = vmul.f32 %v4768_v43, %v179_v13 }
 0x1f0   :  { %v217_v47 = vmul.f32 %v4144_v44, %v208_v45 }
 0x1f1   :  { %v4770_v48 = vpop.eup %4769 }
 0x1f2   :  { %v210_v49 = vmul.f32 %v4770_v48, %v180_v17  ;;  %v5332_v50 = vadd.f32 %v4145_v46, %v217_v47  ;;  %v230_v17 = vlaneseq }
 0x1f4   :  { %v218_v51 = vmul.f32 %v4144_v44, %v210_v49  ;;  %4387 = vmatprep.mubr.msk.f32.mxu0 %vm169_vm0, %v5332_v50  ;;  %v231_v19 = vshrl.u32 %v230_v17, 7 }
 0x1f6   :  { %v5336_v52 = vadd.f32 %v4145_v46, %v218_v51  ;;  %v232_v20 = vsub.s32 0, %v231_v19  ;;  %v236_v33 = vsub.s32 1, %v231_v19 }
 0x1f8   :  { %4388 = vmatmul.mubr.msk.f32.vlgmr.msra.gmra.mrb[0].mxu0 %vm169_vm0, %v5336_v52  ;;  %v5441_v23 = vrot.slane %v229_v22, %v232_v20  ;;  %v5448_v38 = vrot.slane %v229_v22, %v236_v33 }
 0x1f9   :  { %4412 = vmatprep.mubr.msk.f32.mxu0 %vm5099_vm5, %v5098_v53 }
 0x2cb   :  { %v4389_v55 = vpop.f32.mrb[0].mxu0 }
 0x2cc   :  { %v344_v56 = vpop.f32.mrb[1].mxu0  ;;  %v5352_v58 = vadd.f32 %v4389_v55, %v4146_v54 }
 0x2cd   :  { %v5346_v57 = vadd.f32 %v4146_v54, %v344_v56 }
 0x2ce   :  { %v354_v2 = vmul.f32 0.35355338, %v5352_v58 }
 0x2cf   :  { %372 = vrot.lane.b32.xlu1 %v5346_v57, %s5100_s3  ;;  %370 = vrot.lane.b32.xlu0 %v5346_v57, %s5101_s29  ;;  %v353_v59 = vmul.f32 0.35355338, %v5346_v57 }
 0x2d3   :  { %374 = vrot.lane.b32.xlu1 %v5346_v57, %s5102_s26  ;;  %379 = vrot.lane.b32.xlu0 %v5352_v58, %s5100_s3 }
 0x2d7   :  { %377 = vrot.lane.b32.xlu1 %v5352_v58, %s5101_s29  ;;  %383 = vrot.lane.b32.xlu0 %v5346_v57, %s5103_s30 }
 0x2db   :  { %381 = vrot.lane.b32.xlu1 %v5352_v58, %s5102_s26  ;;  %356 = vrot.lane.b32.xlu0 %v353_v59, %s5101_s29 }
 0x2df   :  { %688 = vrot.lane.b32.xlu1 %v5352_v58, %s5103_s30  ;;  %358 = vrot.lane.b32.xlu0 %v353_v59, %s5100_s3 }
 0x2e3   :  { %360 = vrot.lane.b32.xlu0 %v353_v59, %s5102_s26 }
 0x341   :  { %v5370_v60 = vpop.permute.xlu1 %372  ;;  %v5372_v61 = vpop.permute.xlu0 %370 }
 0x342   :  { %460 = vrot.lane.b32.xlu1 %v5372_v61, %s5103_s30 }
 0x345   :  { %v5376_v62 = vpop.permute.xlu1 %374  ;;  %v5378_v63 = vpop.permute.xlu0 %379 }
 0x346   :  { %536 = vrot.lane.b32.xlu1 %v5370_v60, %s5103_s30 }
 0x349   :  { %v5382_v0 = vpop.permute.xlu1 %377  ;;  %v384_v1 = vpop.permute.xlu0 %383 }
 0x34a   :  { %612 = vrot.lane.b32.xlu1 %v5376_v62, %s5103_s30  ;;  %4391 = vmatpush3.xpose.msk.msra.mxu1 %vm385_vm6, %v384_v1 }
 0x34b   :  { %764 = vrot.lane.b32.xlu0 %v5382_v0, %s5103_s30  ;;  %4395 = vmatprep.subr.mxu1 %v5098_v53 }
 0x34d   :  { %v5391_v3 = vpop.permute.xlu1 %381  ;;  %4393 = vmatmul.mubr.msk.f32.vlgmr.msra.gmra.mrb[0].mxu1 %vm385_vm6, %v353_v59  ;;  %v357_v5 = vpop.permute.xlu0 %356 }
 0x34e   :  { %363 = vrot.lane.b32.xlu1 %v354_v2, %s5101_s29  ;;  %4397 = vmatprep.mubr.msk.f32.mxu1 %vm5099_vm5, %v5098_v53 }
 0x34f   :  { %840 = vrot.lane.b32.xlu0 %v5378_v63, %s5103_s30 }
 0x351   :  { %v689_v4 = vpop.permute.xlu1 %688  ;;  %v359_v6 = vpop.permute.xlu0 %358 }
 0x352   :  { %4411 = vmatpush3.xpose.msk.msra.mxu0 %vm385_vm6, %v689_v4  ;;  %916 = vrot.lane.b32.xlu1 %v5391_v3, %s5103_s30 }
 0x353   :  { %365 = vrot.lane.b32.xlu0 %v354_v2, %s5100_s3  ;;  %4420 = vmatprep.subr.mxu0 %v5098_v53 }
 0x355   :  { %4413 = vmatmul.mubr.msk.f32.vlgmr.msra.gmra.mrb[2].mxu0 %vm385_vm6, %v354_v2  ;;  %v361_v9 = vpop.permute.xlu0 %360 }
 0x356   :  { %367 = vrot.lane.b32.xlu1 %v354_v2, %s5102_s26  ;;  %4422 = vmatprep.mubr.msk.f32.mxu0 %vm5099_vm5, %v5098_v53 }
 0x3b4   :  { %v461_v7 = vpop.permute.xlu1 %460 }
 0x3b5   :  { %4396 = vmatpush3.xpose.msk.msra.mxu1 %vm385_vm6, %v461_v7 }
 0x3b6   :  { %4400 = vmatprep.subr.mxu1 %v5098_v53 }
 0x3b8   :  { %v537_v8 = vpop.permute.xlu1 %536  ;;  %4398 = vmatmul.mubr.msk.f32.vlgmr.msra.gmra.mrb[2].mxu1 %vm385_vm6, %v357_v5 }
 0x3b9   :  { %4401 = vmatpush3.xpose.msk.msra.mxu1 %vm385_vm6, %v537_v8  ;;  %4402 = vmatprep.mubr.msk.f32.mxu1 %vm5099_vm5, %v5098_v53 }
 0x3ba   :  { %4405 = vmatprep.subr.mxu1 %v5098_v53 }
 0x3bc   :  { %v613_v10 = vpop.permute.xlu1 %612  ;;  %4403 = vmatmul.mubr.msk.f32.vlgmr.msra.gmra.mrb[4].mxu1 %vm385_vm6, %v359_v6 }
 0x3bd   :  { %v765_v11 = vpop.permute.xlu0 %764  ;;  %4406 = vmatpush3.xpose.msk.msra.mxu1 %vm385_vm6, %v613_v10  ;;  %4407 = vmatprep.mubr.msk.f32.mxu1 %vm5099_vm5, %v5098_v53 }
 0x3be   :  { %4415 = vmatprep.subr.mxu1 %v5098_v53 }
 0x3c0   :  { %v364_v12 = vpop.permute.xlu1 %363  ;;  %4408 = vmatmul.mubr.msk.f32.vlgmr.msra.gmra.mrb[6].mxu1 %vm385_vm6, %v361_v9 }
 0x3c1   :  { %v841_v13 = vpop.permute.xlu0 %840  ;;  %4416 = vmatpush3.xpose.msk.msra.mxu1 %vm385_vm6, %v765_v11  ;;  %4417 = vmatprep.mubr.msk.f32.mxu1 %vm5099_vm5, %v5098_v53 }
 0x3c2   :  { %4421 = vmatpush3.xpose.msk.msra.mxu0 %vm385_vm6, %v841_v13  ;;  %4425 = vmatprep.subr.mxu1 %v5098_v53 }
 0x3c3   :  { %4430 = vmatprep.subr.mxu0 %v5098_v53 }
 0x3c4   :  { %v917_v14 = vpop.permute.xlu1 %916  ;;  %4418 = vmatmul.mubr.msk.f32.vlgmr.msra.gmra.mrb[8].mxu1 %vm385_vm6, %v364_v12 }
 0x3c5   :  { %v366_v15 = vpop.permute.xlu0 %365  ;;  %4426 = vmatpush3.xpose.msk.msra.mxu1 %vm385_vm6, %v917_v14  ;;  %4427 = vmatprep.mubr.msk.f32.mxu1 %vm5099_vm5, %v5098_v53 }
 0x3c6   :  { %4423 = vmatmul.mubr.msk.f32.vlgmr.msra.gmra.mrb[4].mxu0 %vm385_vm6, %v366_v15  ;;  %4435 = vmatprep.subr.mxu1 %v5098_v53 }
 0x3c7   :  { %4432 = vmatprep.mubr.msk.f32.mxu0 %vm5099_vm5, %v5098_v53 }
 0x3c8   :  { %v368_v16 = vpop.permute.xlu1 %367 }
 0x3c9   :  { %4428 = vmatmul.mubr.msk.f32.vlgmr.msra.gmra.mrb[10].mxu1 %vm385_vm6, %v368_v16 }
 0x3ca   :  { %4437 = vmatprep.mubr.msk.f32.mxu1 %vm5099_vm5, %v5098_v53 }
 0x420   :  { %v456_v24 = vpop.f32.mrb[0].mxu1 }
 0x421   :  { %v457_v25 = vadd.f32 %v456_v24, %v5441_v23  ;;  %v4394_v26 = vpop.f32.mrb[1].mxu1 }
 0x423   :  { %v992_v27 = vsel %vm385_vm6, %v457_v25, -inf }
 0x424   :  { %993 = vmax.xlane.f32.xlu0 %v992_v27 }
 0x428   :  { %v760_v28 = vpop.f32.mrb[2].mxu0 }
 0x429   :  { %v4414_v29 = vpop.f32.mrb[3].mxu0  ;;  %v761_v43 = vadd.f32 %v760_v28, %v5448_v38 }
 0x42b   :  { %v1004_v51 = vsel %vm385_vm6, %v761_v43, -inf }
 0x48b   :  { %v532_v30 = vpop.f32.mrb[2].mxu1 }
 0x48c   :  { %v533_v31 = vadd.f32 %v532_v30, %v5441_v23  ;;  %v4399_v32 = vpop.f32.mrb[3].mxu1 }
 0x48e   :  { %v995_v34 = vsel %vm385_vm6, %v533_v31, -inf }
 0x48f   :  { %996 = vmax.xlane.f32.xlu1 %v995_v34  ;;  %v608_v35 = vpop.f32.mrb[4].mxu1 }
 0x490   :  { %v609_v36 = vadd.f32 %v608_v35, %v5441_v23  ;;  %v4404_v37 = vpop.f32.mrb[5].mxu1 }
 0x492   :  { %v998_v39 = vsel %vm385_vm6, %v609_v36, -inf }
 0x493   :  { %999 = vmax.xlane.f32.xlu0 %v998_v39  ;;  %v684_v40 = vpop.f32.mrb[6].mxu1 }
 0x494   :  { %v5452_v41 = vadd.f32 %v684_v40, %v5441_v23  ;;  %v4409_v42 = vpop.f32.mrb[7].mxu1 }
 0x496   :  { %v1001_v44 = vsel %vm385_vm6, %v5452_v41, -inf }
 0x497   :  { %1002 = vmax.xlane.f32.xlu0 %v1001_v44  ;;  %v836_v45 = vpop.f32.mrb[8].mxu1 }
 0x498   :  { %v4419_v46 = vpop.f32.mrb[9].mxu1  ;;  %v837_v59 = vadd.f32 %v836_v45, %v5448_v38 }
 0x499   :  { %v912_v47 = vpop.f32.mrb[4].mxu0 }
 0x49a   :  { %v913_v48 = vadd.f32 %v912_v47, %v5448_v38  ;;  %v4424_v49 = vpop.f32.mrb[5].mxu0  ;;  %v1007_v2 = vsel %vm385_vm6, %v837_v59, -inf }
 0x49b   :  { %1005 = vmax.xlane.f32.xlu0 %v1004_v51 }
 0x49c   :  { %v988_v54 = vpop.f32.mrb[10].mxu1  ;;  %v1010_v56 = vsel %vm385_vm6, %v913_v48, -inf }
 0x49d   :  { %v4429_v55 = vpop.f32.mrb[11].mxu1  ;;  %v989_v1 = vadd.f32 %v988_v54, %v5448_v38 }
 0x49f   :  { %1011 = vmax.xlane.f32.xlu0 %v1010_v56  ;;  %v1013_v4 = vsel %vm385_vm6, %v989_v1, -inf }
 0x4a0   :  { %1156 = vrot.lane.b32.xlu1 %v5372_v61, %s5105_s22 }
 0x4a4   :  { %1232 = vrot.lane.b32.xlu1 %v5370_v60, %s5105_s22 }
 0x4b1   :  { %v994_v61 = vpop.xlane.xlu0 %993 }
 0x4b2   :  { %v1016_v9 = vsub.f32 %v457_v25, %v994_v61 }
 0x4b4   :  { %v1024_v13 = vmul.f32 1.442695, %v1016_v9 }
 0x4b5   :  { %1080 = vrot.lane.b32.xlu0 %v5346_v57, %s5105_s22 }
 0x4c8   :  { %1008 = vmax.xlane.f32.xlu1 %v1007_v2 }
 0x4cc   :  { %1014 = vmax.xlane.f32.xlu1 %v1013_v4 }
 0x4dd   :  { %1308 = vrot.lane.b32.xlu1 %v5376_v62, %s5105_s22 }
 0x51c   :  { %v997_v5 = vpop.xlane.xlu1 %996 }
 0x51d   :  { %v1017_v6 = vsub.f32 %v533_v31, %v997_v5 }
 0x51f   :  { %v1026_v60 = vmul.f32 1.442695, %v1017_v6 }
 0x520   :  { %v1157_v7 = vpop.permute.xlu1 %1156  ;;  %v1000_v8 = vpop.xlane.xlu0 %999 }
 0x521   :  { %4771 = vpow2.f32 %v1026_v60  ;;  %4436 = vmatpush3.msra.mxu1 %v1157_v7  ;;  %v1018_v17 = vsub.f32 %v609_v36, %v1000_v8 }
 0x522   :  { %4445 = vmatprep.subr.mxu1 %v5098_v53 }
 0x523   :  { %v1028_v20 = vmul.f32 1.442695, %v1018_v17 }
 0x524   :  { %v1003_v57 = vpop.xlane.xlu0 %1002  ;;  %v1233_v32 = vpop.permute.xlu1 %1232 }
 0x525   :  { %v1019_v30 = vsub.f32 %v5452_v41, %v1003_v57 }
 0x527   :  { %v1030_v31 = vmul.f32 1.442695, %v1019_v30 }
 0x528   :  { %v1006_v10 = vpop.xlane.xlu0 %1005 }
 0x529   :  { %v1020_v11 = vsub.f32 %v761_v43, %v1006_v10 }
 0x52b   :  { %v4772_v12 = vpop.eup %4771  ;;  %v1032_v14 = vmul.f32 1.442695, %v1020_v11 }
 0x52c   :  { %v1012_v15 = vpop.xlane.xlu0 %1011  ;;  %v1043_v62 = vsel %vm385_vm6, %v4772_v12, 0.0 }
 0x52d   :  { %4773 = vpow2.f32 %v1032_v14  ;;  %v1022_v16 = vsub.f32 %v913_v48, %v1012_v15  ;;  %1044 = vadd.xlane.f32.xlu1 %v1043_v62 }
 0x52e   :  { %4775 = vpow2.f32 %v1024_v13 }
 0x52f   :  { %v1036_v18 = vmul.f32 1.442695, %v1022_v16 }
 0x530   :  { %v1081_v19 = vpop.permute.xlu0 %1080 }
 0x531   :  { %4431 = vmatpush3.msra.mxu0 %v1081_v19  ;;  %4777 = vpow2.f32 %v1036_v18 }
 0x532   :  { %4440 = vmatprep.subr.mxu0 %v5098_v53  ;;  %4779 = vpow2.f32 %v1028_v20 }
 0x533   :  { %4781 = vpow2.f32 %v1030_v31 }
 0x537   :  { %v5475_v21 = vpop.eup %4773 }
 0x538   :  { %v1052_v22 = vsel %vm385_vm6, %v5475_v21, 0.0  ;;  %v4776_v24 = vpop.eup %4775 }
 0x539   :  { %1053 = vadd.xlane.f32.xlu0 %v1052_v22  ;;  %v1040_v25 = vsel %vm385_vm6, %v4776_v24, 0.0 }
 0x53b   :  { %v5480_v26 = vpop.eup %4777 }
 0x53c   :  { %v1058_v27 = vsel %vm385_vm6, %v5480_v26, 0.0  ;;  %v4780_v28 = vpop.eup %4779 }
 0x53d   :  { %1041 = vadd.xlane.f32.xlu0 %v1040_v25  ;;  %v1046_v29 = vsel %vm385_vm6, %v4780_v28, 0.0  ;;  %v4782_v39 = vpop.eup %4781  ;;  %v243_v25 = vld [vmem:[%s5964_s8] sm:$0xff] }
 0x53e   :  { %1460 = vrot.lane.b32.xlu1 %v5382_v0, %s5105_s22  ;;  %v1049_v40 = vsel %vm385_vm6, %v4782_v39, 0.0 }
 0x541   :  { %1059 = vadd.xlane.f32.xlu0 %v1058_v27 }
 0x545   :  { %1047 = vadd.xlane.f32.xlu0 %v1046_v29  ;;  %v246_v29 = vld [vmem:[%s5964_s8 + $0x18] sm:$0xff] }
 0x555   :  { %v1009_v33 = vpop.xlane.xlu1 %1008 }
 0x556   :  { %v1021_v34 = vsub.f32 %v837_v59, %v1009_v33 }
 0x558   :  { %v1034_v35 = vmul.f32 1.442695, %v1021_v34 }
 0x559   :  { %v1015_v36 = vpop.xlane.xlu1 %1014 }
 0x55a   :  { %4783 = vpow2.f32 %v1034_v35  ;;  %v1023_v37 = vsub.f32 %v989_v1, %v1015_v36 }
 0x55b   :  { %1384 = vrot.lane.b32.xlu0 %v5352_v58, %s5105_s22 }
 0x55c   :  { %v1038_v0 = vmul.f32 1.442695, %v1023_v37 }
 0x55d   :  { %v1309_v58 = vpop.permute.xlu1 %1308 }
 0x55e   :  { %4785 = vpow2.f32 %v1038_v0 }
 0x55f   :  { %1536 = vrot.lane.b32.xlu0 %v5378_v63, %s5105_s22 }
 0x562   :  { %1050 = vadd.xlane.f32.xlu1 %v1049_v40 }
 0x564   :  { %v4784_v41 = vpop.eup %4783 }
 0x565   :  { %v1055_v42 = vsel %vm385_vm6, %v4784_v41, 0.0 }
 0x566   :  { %1056 = vadd.xlane.f32.xlu1 %v1055_v42 }
 0x568   :  { %v5494_v43 = vpop.eup %4785 }
 0x569   :  { %v1061_v44 = vsel %vm385_vm6, %v5494_v43, 0.0 }
 0x56a   :  { %1062 = vadd.xlane.f32.xlu1 %v1061_v44 }
 0x57b   :  { %1612 = vrot.lane.b32.xlu1 %v5391_v3, %s5105_s22 }
 0x5ba   :  { %v1045_v45 = vpop.xlane.xlu1 %1044 }
 0x5bb   :  { %4787 = vrcp.f32 %v1045_v45 }
 0x5be   :  { %v1461_v6 = vpop.permute.xlu1 %1460 }
 0x5c5   :  { %v4788_v63 = vpop.eup %4787 }
 0x5c6   :  { %v1073_v46 = vmul.f32 %v4788_v63, %v4772_v12  ;;  %v1054_v47 = vpop.xlane.xlu0 %1053 }
 0x5c8   :  { %4438 = vmatmul.mubr.msk.f32.vlgmr.msra.gmra.mrb[12].mxu1 %vm385_vm6, %v1073_v46 }
 0x5c9   :  { %4446 = vmatpush3.msra.mxu1 %v1309_v58  ;;  %4447 = vmatprep.mubr.msk.f32.mxu1 %vm5099_vm5, %v5098_v53 }
 0x5ca   :  { %v1042_v48 = vpop.xlane.xlu0 %1041  ;;  %4455 = vmatprep.subr.mxu1 %v5098_v53 }
 0x5cb   :  { %4789 = vrcp.f32 %v1042_v48 }
 0x5ce   :  { %v1060_v49 = vpop.xlane.xlu0 %1059 }
 0x5d2   :  { %v1048_v51 = vpop.xlane.xlu0 %1047 }
 0x5d3   :  { %4791 = vrcp.f32 %v1048_v51 }
 0x5d4   :  { %4793 = vrcp.f32 %v1054_v47  ;;  %v4173_v47 = vld [vmem:[#allocation13] ss:$0 sm:$0xff] }
 0x5d5   :  { %v4790_v3 = vpop.eup %4789  ;;  %4795 = vrcp.f32 %v1060_v49 }
 0x5d6   :  { %v1072_v54 = vmul.f32 %v4790_v3, %v4776_v24  ;;  %v1385_v59 = vpop.permute.xlu0 %1384 }
 0x5d8   :  { %4433 = vmatmul.mubr.msk.f32.vlgmr.msra.gmra.mrb[6].mxu0 %vm385_vm6, %v1072_v54 }
 0x5d9   :  { %4441 = vmatpush3.msra.mxu0 %v1233_v32  ;;  %4442 = vmatprep.mubr.msk.f32.mxu0 %vm5099_vm5, %v5098_v53 }
 0x5da   :  { %4450 = vmatprep.subr.mxu0 %v5098_v53  ;;  %v1537_v61 = vpop.permute.xlu0 %1536 }
 0x5dd   :  { %v4792_v55 = vpop.eup %4791 }
 0x5de   :  { %v1074_v56 = vmul.f32 %v4792_v55, %v4780_v28  ;;  %v4794_v1 = vpop.eup %4793  ;;  %v245_v28 = vld [vmem:[%s5964_s8 + $0x10] sm:$0xff] }
 0x5df   :  { %v1076_v2 = vmul.f32 %v4794_v1, %v5475_v21  ;;  %v4796_v4 = vpop.eup %4795  ;;  %v4666_v30 = vpack.c.bf16 %v246_v29, %v245_v28 }
 0x5e0   :  { %4443 = vmatmul.mubr.msk.f32.vlgmr.msra.gmra.mrb[8].mxu0 %vm385_vm6, %v1074_v56  ;;  %v1078_v5 = vmul.f32 %v4796_v4, %v5480_v26  ;;  %v244_v26 = vld [vmem:[%s5964_s8 + $0x8] sm:$0xff] }
 0x5e1   :  { %4451 = vmatpush3.msra.mxu0 %v1385_v59  ;;  %4452 = vmatprep.mubr.msk.f32.mxu0 %vm5099_vm5, %v5098_v53  ;;  %v4662_v27 = vpack.c.bf16 %v244_v26, %v243_v25 }
 0x5e2   :  { %4460 = vmatprep.subr.mxu0 %v5098_v53 }
 0x5e4   :  { %4453 = vmatmul.mubr.msk.f32.vlgmr.msra.gmra.mrb[10].mxu0 %vm385_vm6, %v1076_v2 }
 0x5e5   :  { %4461 = vmatpush3.msra.mxu0 %v1537_v61  ;;  %4462 = vmatprep.mubr.msk.f32.mxu0 %vm5099_vm5, %v5098_v53 }
 0x5e6   :  { %4663 = vmatprep.subr.bf16.mxu0 %v4662_v27 }
 0x5e8   :  { %4463 = vmatmul.mubr.msk.f32.vlgmr.msra.gmra.mrb[12].mxu0 %vm385_vm6, %v1078_v5 }
 0x5e9   :  { %4665 = vmatpush3.bf16.msra.mxu0 %v4662_v27 }
 0x5ea   :  { %4667 = vmatprep.subr.bf16.mxu0 %v4666_v30 }
 0x5ed   :  { %4669 = vmatpush3.bf16.msra.mxu0 %v4666_v30  ;;  %v4176_v30 = vld [vmem:[%s5966_s10] ss:$0 sm:$0xff] }
 0x5ef   :  { %v1051_v60 = vpop.xlane.xlu1 %1050 }
 0x5f0   :  { %4797 = vrcp.f32 %v1051_v60 }
 0x5f3   :  { %v1057_v7 = vpop.xlane.xlu1 %1056 }
 0x5f4   :  { %4799 = vrcp.f32 %v1057_v7 }
 0x5f7   :  { %v1063_v8 = vpop.xlane.xlu1 %1062 }
 0x5f8   :  { %4801 = vrcp.f32 %v1063_v8 }
 0x5fa   :  { %v4798_v57 = vpop.eup %4797 }
 0x5fb   :  { %v1075_v9 = vmul.f32 %v4798_v57, %v4782_v39  ;;  %v1613_v12 = vpop.permute.xlu1 %1612  ;;  %v251_v57 = vld [vmem:[%s5968_s12 + $0x8] sm:$0xff] }
 0x5fd   :  { %4448 = vmatmul.mubr.msk.f32.vlgmr.msra.gmra.mrb[14].mxu1 %vm385_vm6, %v1075_v9  ;;  %v252_v9 = vld [vmem:[%s5968_s12 + $0x10] sm:$0xff] }
 0x5fe   :  { %v4800_v10 = vpop.eup %4799  ;;  %4456 = vmatpush3.msra.mxu1 %v1461_v6  ;;  %4457 = vmatprep.mubr.msk.f32.mxu1 %vm5099_vm5, %v5098_v53 }
 0x5ff   :  { %v1077_v11 = vmul.f32 %v4800_v10, %v4784_v41  ;;  %4465 = vmatprep.subr.mxu1 %v5098_v53 }
 0x601   :  { %4458 = vmatmul.mubr.msk.f32.vlgmr.msra.gmra.mrb[16].mxu1 %vm385_vm6, %v1077_v11  ;;  %v253_v11 = vld [vmem:[%s5968_s12 + $0x18] sm:$0xff] }
 0x602   :  { %v4802_v13 = vpop.eup %4801  ;;  %4466 = vmatpush3.msra.mxu1 %v1613_v12  ;;  %4467 = vmatprep.mubr.msk.f32.mxu1 %vm5099_vm5, %v5098_v53  ;;  %v4674_v12 = vpack.c.bf16 %v253_v11, %v252_v9 }
 0x603   :  { %v1079_v14 = vmul.f32 %v4802_v13, %v5494_v43 }
 0x605   :  { %4468 = vmatmul.mubr.msk.f32.vlgmr.msra.gmra.mrb[18].mxu1 %vm385_vm6, %v1079_v14 }
 0x69b   :  { %v1228_v15 = vpop.f32.mrb[12].mxu1 }
 0x69c   :  { %1689 = vrot.lane.b32.xlu0 %v1228_v15, %s5094_s24  ;;  %v4439_v62 = vpop.f32.mrb[13].mxu1 }
 0x6ab   :  { %v1152_v16 = vpop.f32.mrb[6].mxu0 }
 0x6ac   :  { %v4434_v17 = vpop.f32.mrb[7].mxu0 }
 0x6b3   :  { %v1304_v18 = vpop.f32.mrb[8].mxu0 }
 0x6b4   :  { %v4444_v19 = vpop.f32.mrb[9].mxu0  ;;  %1693 = vrot.lane.b32.xlu1 %v1304_v18, %s6001_s19 }
 0x6b7   :  { %v1456_v20 = vpop.f32.mrb[10].mxu0 }
 0x6b8   :  { %v4454_v21 = vpop.f32.mrb[11].mxu0 }
 0x6bb   :  { %v1608_v22 = vpop.f32.mrb[12].mxu0 }
 0x6bc   :  { %v4464_v24 = vpop.f32.mrb[13].mxu0 }
 0x6d0   :  { %v1380_v31 = vpop.f32.mrb[14].mxu1 }
 0x6d1   :  { %1697 = vrot.lane.b32.xlu1 %v1380_v31, %s5106_s21  ;;  %v4449_v32 = vpop.f32.mrb[15].mxu1 }
 0x6d2   :  { %v4177_v32 = vld [vmem:[%s5967_s11] ss:$0 sm:$0xff] }
 0x6d4   :  { %v1532_v33 = vpop.f32.mrb[16].mxu1 }
 0x6d5   :  { %1706 = vrot.lane.b32.xlu0 %v1532_v33, %s5094_s24  ;;  %v4459_v34 = vpop.f32.mrb[17].mxu1 }
 0x6d8   :  { %v1684_v35 = vpop.f32.mrb[18].mxu1 }
 0x6d9   :  { %1710 = vrot.lane.b32.xlu0 %v1608_v22, %s6001_s19  ;;  %1714 = vrot.lane.b32.xlu1 %v1684_v35, %s5106_s21  ;;  %v4469_v36 = vpop.f32.mrb[19].mxu1 }
 0x70e   :  { %v1690_v37 = vpop.permute.xlu0 %1689 }
 0x70f   :  { %v1700_v39 = vsel %vm385_vm6, %v1152_v16, %v1690_v37 }
 0x726   :  { %v1694_v0 = vpop.permute.xlu1 %1693 }
 0x727   :  { %v1702_v40 = vsel %vm1701_vm8, %v1700_v39, %v1694_v0  ;;  %v255_v39 = vld [vmem:[%s5970_s14] sm:$0xff] }
 0x743   :  { %v1698_v41 = vpop.permute.xlu1 %1697 }
 0x744   :  { %v1704_v42 = vsel %vm1703_vm9, %v1702_v40, %v1698_v41  ;;  %v256_v40 = vld [vmem:[%s5970_s14 + $0x8] sm:$0xff] }
 0x745   :  { %4478 = vmatprep.mubr.msk.f32.mxu0 %vm169_vm0, %v1704_v42  ;;  %v4678_v41 = vpack.c.bf16 %v256_v40, %v255_v39  ;;  %v257_v42 = vld [vmem:[%s5970_s14 + $0x10] sm:$0xff] }
 0x747   :  { %v1707_v43 = vpop.permute.xlu0 %1706  ;;  %4679 = vmatprep.subr.bf16.mxu0 %v4678_v41 }
 0x748   :  { %v1717_v44 = vsel %vm385_vm6, %v1456_v20, %v1707_v43  ;;  %v258_v43 = vld [vmem:[%s5970_s14 + $0x18] sm:$0xff] }
 0x74b   :  { %v1711_v58 = vpop.permute.xlu0 %1710  ;;  %v1715_v45 = vpop.permute.xlu1 %1714 }
 0x74c   :  { %v1718_v63 = vsel %vm1701_vm8, %v1717_v44, %v1711_v58  ;;  %v259_v44 = vld [vmem:[%s5970_s14 + $0x20] sm:$0xff]  ;;  %v4682_v58 = vpack.c.bf16 %v258_v43, %v257_v42 }
 0x74d   :  { %v1719_v46 = vsel %vm1703_vm9, %v1718_v63, %v1715_v45  ;;  %v260_v45 = vld [vmem:[%s5970_s14 + $0x28] sm:$0xff] }
 0x74e   :  { %4479 = vmatmul.mubr.msk.f32.vlgmr.msra.gmra.mrb[14].mxu0 %vm169_vm0, %v1719_v46  ;;  %v4686_v63 = vpack.c.bf16 %v260_v45, %v259_v44  ;;  %v261_v46 = vld [vmem:[%s5970_s14 + $0x30] sm:$0xff] }
 0x74f   :  { %4681 = vmatpush3.bf16.msra.mxu0 %v4678_v41 }
 0x750   :  { %4683 = vmatprep.subr.bf16.mxu0 %v4682_v58 }
 0x753   :  { %4685 = vmatpush3.bf16.msra.mxu0 %v4682_v58 }
 0x754   :  { %4687 = vmatprep.subr.bf16.mxu0 %v4686_v63 }
 0x757   :  { %4689 = vmatpush3.bf16.msra.mxu0 %v4686_v63 }
 0x821   :  { %v4480_v48 = vpop.f32.mrb[14].mxu0 }
 0x822   :  { %v1804_v49 = vadd.f32 %v4480_v48, %v4173_v47  ;;  %v1798_v51 = vpop.f32.mrb[15].mxu0 }
 0x823   :  { %v1799_v3 = vadd.f32 %v4173_v47, %v1798_v51  ;;  %v262_v47 = vld [vmem:[%s5970_s14 + $0x38] sm:$0xff] }
 0x824   :  { %v1808_v54 = vadd.f32 %v1804_v49, %v5336_v52  ;;  %v4690_v48 = vpack.c.bf16 %v262_v47, %v261_v46  ;;  %v4178_v49 = vld [vmem:[%s5969_s13] ss:$0 sm:$0xff] }
 0x825   :  { %v1807_v55 = vadd.f32 %v1799_v3, %v5332_v50  ;;  %v250_v50 = vld [vmem:[%s5968_s12] sm:$0xff] }
 0x826   :  { %v1812_v56 = vsel %vm169_vm0, %v1808_v54, 0.0  ;;  %v4670_v10 = vpack.c.bf16 %v251_v57, %v250_v50  ;;  %4691 = vmatprep.subr.bf16.mxu0 %v4690_v48 }
 0x827   :  { %1813 = vadd.xlane.f32.xlu1 %v1812_v56  ;;  %v1809_v59 = vsel %vm169_vm0, %v1807_v55, 0.0  ;;  %4693 = vmatpush3.bf16.msra.mxu0 %v4690_v48 }
 0x828   :  { %1810 = vadd.xlane.f32.xlu0 %v1809_v59  ;;  %4671 = vmatprep.subr.bf16.mxu1 %v4670_v10 }
 0x829   :  { %4673 = vmatpush3.bf16.msra.mxu1 %v4670_v10  ;;  %4532 = vmatprep.subr.mxu0 %v5098_v53 }
 0x82a   :  { %4675 = vmatprep.subr.bf16.mxu1 %v4674_v12 }
 0x82d   :  { %4677 = vmatpush3.bf16.msra.mxu1 %v4674_v12 }
 0x8b4   :  { %v1814_v1 = vpop.xlane.xlu1 %1813 }
 0x8b5   :  { %v1816_v2 = vmul.f32 0.03125, %v1814_v1  ;;  %v1811_v4 = vpop.xlane.xlu0 %1810 }
 0x8b6   :  { %v1815_v61 = vmul.f32 0.03125, %v1811_v4 }
 0x8b7   :  { %v1818_v5 = vsub.f32 %v1808_v54, %v1816_v2 }
 0x8b8   :  { %v1817_v6 = vsub.f32 %v1807_v55, %v1815_v61 }
 0x8b9   :  { %v1820_v8 = vmul.f32 %v1818_v5, %v1818_v5 }
 0x8ba   :  { %v1819_v60 = vmul.f32 %v1817_v6, %v1817_v6 }
 0x8bb   :  { %v1824_v52 = vsel %vm169_vm0, %v1820_v8, 0.0 }
 0x8bc   :  { %v1821_v7 = vsel %vm169_vm0, %v1819_v60, 0.0 }
 0x8bd   :  { %1822 = vadd.xlane.f32.xlu0 %v1821_v7 }
 0x8c1   :  { %1825 = vadd.xlane.f32.xlu0 %v1824_v52 }
 0x94a   :  { %v1823_v13 = vpop.xlane.xlu0 %1822 }
 0x94b   :  { %v1827_v14 = vmul.f32 0.03125, %v1823_v13  ;;  %v4181_v13 = vld [vmem:[%s5971_s15] ss:$0 sm:$0xff] }
 0x94d   :  { %v1829_v15 = vadd.f32 1e-12, %v1827_v14 }
 0x94e   :  { %v1826_v62 = vpop.xlane.xlu0 %1825 }
 0x94f   :  { %4803 = vrsqrt.f32 %v1829_v15  ;;  %v1828_v16 = vmul.f32 0.03125, %v1826_v62  ;;  %vm1833_vm10 = vcmp.eq.f32.partialorder %v1829_v15, inf  ;;  %v1836_v20 = vand.u32 2147483648, %v1829_v15 }
 0x950   :  { %vm1835_vm11 = vcmp.eq.f32.partialorder %v1829_v15, 0.0 }
 0x951   :  { %v1830_v17 = vadd.f32 1e-12, %v1828_v16 }
 0x953   :  { %4805 = vrsqrt.f32 %v1830_v17  ;;  %vm1840_vm12 = vcmp.eq.f32.partialorder %v1830_v17, inf  ;;  %v1843_v26 = vand.u32 2147483648, %v1830_v17  ;;  %vm1842_vm13 = vcmp.eq.f32.partialorder %v1830_v17, 0.0 }
 0x959   :  { %v4804_v18 = vpop.eup %4803 }
 0x95a   :  { %v1832_v19 = vmul.f32 %v4804_v18, %v1829_v15 }
 0x95c   :  { %v1834_v21 = vsel %vm1833_vm10, %v1829_v15, %v1832_v19 }
 0x95d   :  { %v1837_v22 = vsel %vm1835_vm11, %v1836_v20, %v1834_v21  ;;  %v4806_v24 = vpop.eup %4805 }
 0x95e   :  { %4807 = vrcp.f32 %v1837_v22  ;;  %v1839_v25 = vmul.f32 %v4806_v24, %v1830_v17 }
 0x960   :  { %v1841_v27 = vsel %vm1840_vm12, %v1830_v17, %v1839_v25  ;;  %vm4021_vm12 = vcmask 1040384  }
 0x961   :  { %v1844_v28 = vsel %vm1842_vm13, %v1843_v26, %v1841_v27 }
 0x962   :  { %4809 = vrcp.f32 %v1844_v28 }
 0x968   :  { %v4808_v29 = vpop.eup %4807 }
 0x969   :  { %v1846_v31 = vmul.f32 %v4808_v29, %v1817_v6 }
 0x96b   :  { %v1855_v33 = vmul.f32 %v4176_v30, %v1846_v31 }
 0x96c   :  { %v4810_v34 = vpop.eup %4809 }
 0x96d   :  { %v1863_v35 = vadd.f32 %v4177_v32, %v1855_v33  ;;  %v1848_v36 = vmul.f32 %v4810_v34, %v1818_v5  ;;  %v4187_v33 = vld [vmem:[%s5962_s6 + $0x28] sm:$0xff]  ;;  %v4188_v34 = vld [vmem:[%s5962_s6 + $0x30] sm:$0xff] }
 0x96f   :  { %4489 = vmatprep.mubr.msk.f32.mxu1 %vm169_vm0, %v1863_v35  ;;  %v1856_v37 = vmul.f32 %v4176_v30, %v1848_v36  ;;  %v4189_v36 = vld [vmem:[%s5962_s6 + $0x38] sm:$0xff] }
 0x971   :  { %v1864_v0 = vadd.f32 %v4177_v32, %v1856_v37  ;;  %v4186_v32 = vld [vmem:[%s5962_s6 + $0x20] sm:$0xff]  ;;  %v4698_v37 = vpack.c.bf16 %v4189_v36, %v4188_v34 }
 0x973   :  { %4490 = vmatmul.mubr.msk.f32.vlgmr.msra.gmra.mrb[20].mxu1 %vm169_vm0, %v1864_v0 }
 0xa46   :  { %v4491_v51 = vpop.f32.mrb[20].mxu1 }
 0xa47   :  { %v1949_v3 = vadd.f32 %v4491_v51, %v4178_v49  ;;  %v1943_v54 = vpop.f32.mrb[21].mxu1 }
 0xa48   :  { %v1944_v55 = vadd.f32 %v4178_v49, %v1943_v54 }
 0xa49   :  { %v1955_v56 = vmul.f32 0.044715, %v1949_v3  ;;  %v1953_v10 = vmul.f32 0.5, %v1949_v3 }
 0xa4a   :  { %v1954_v59 = vmul.f32 0.044715, %v1944_v55  ;;  %v1952_v57 = vmul.f32 0.5, %v1944_v55 }
 0xa4b   :  { %v1957_v1 = vmul.f32 %v1955_v56, %v1949_v3 }
 0xa4c   :  { %v1956_v2 = vmul.f32 %v1954_v59, %v1944_v55 }
 0xa4d   :  { %v1959_v4 = vmul.f32 %v1957_v1, %v1949_v3 }
 0xa4e   :  { %v1958_v61 = vmul.f32 %v1956_v2, %v1944_v55  ;;  %v4185_v2 = vld [vmem:[%s5973_s17] ss:$0 sm:$0xff] }
 0xa4f   :  { %v1961_v5 = vadd.f32 %v1959_v4, %v1949_v3 }
 0xa50   :  { %v1960_v6 = vadd.f32 %v1958_v61, %v1944_v55  ;;  %v4184_v55 = vld [vmem:[%s5972_s16] ss:$0 sm:$0xff] }
 0xa51   :  { %v1963_v60 = vmul.f32 0.7978846, %v1961_v5 }
 0xa52   :  { %v1962_v7 = vmul.f32 0.7978846, %v1960_v6 }
 0xa53   :  { %4811 = vtanh.f32 %v1963_v60  ;;  %v4212_v60 = vld [vmem:[#allocation11 + $0x1] ss:$0 sm:$0xff] }
 0xa54   :  { %4813 = vtanh.f32 %v1962_v7 }
 0xa5d   :  { %v4812_v8 = vpop.eup %4811 }
 0xa5e   :  { %v4814_v52 = vpop.eup %4813  ;;  %v1967_v50 = vadd.f32 1.0, %v4812_v8 }
 0xa5f   :  { %v1966_v9 = vadd.f32 1.0, %v4814_v52 }
 0xa60   :  { %v1969_v12 = vmul.f32 %v1967_v50, %v1953_v10 }
 0xa61   :  { %v1968_v11 = vmul.f32 %v1966_v9, %v1952_v57 }
 0xa63   :  { %4508 = vmatprep.mubr.msk.f32.mxu0 %vm1976_vm14, %v1968_v11 }
 0xa64   :  { %4509 = vmatmul.mubr.msk.f32.vlgmr.msra.gmra.mrb[16].mxu0 %vm1976_vm14, %v1969_v12 }
 0xa65   :  { %4534 = vmatprep.mubr.msk.f32.mxu0 %vm5099_vm5, %v5098_v53 }
 0xb37   :  { %v4510_v14 = vpop.f32.mrb[16].mxu0 }
 0xb38   :  { %v2055_v15 = vadd.f32 %v4510_v14, %v4181_v13  ;;  %v2049_v62 = vpop.f32.mrb[17].mxu0 }
 0xb39   :  { %v2050_v16 = vadd.f32 %v4181_v13, %v2049_v62 }
 0xb3a   :  { %v2059_v17 = vadd.f32 %v2055_v15, %v1864_v0 }
 0xb3b   :  { %v2058_v18 = vadd.f32 %v2050_v16, %v1863_v35  ;;  %v4694_v35 = vpack.c.bf16 %v4187_v33, %v4186_v32 }
 0xb3c   :  { %v2063_v19 = vsel %vm169_vm0, %v2059_v17, 0.0 }
 0xb3d   :  { %2064 = vadd.xlane.f32.xlu1 %v2063_v19  ;;  %v2060_v20 = vsel %vm169_vm0, %v2058_v18, 0.0  ;;  %4695 = vmatprep.subr.bf16.mxu1 %v4694_v35 }
 0xb3e   :  { %2061 = vadd.xlane.f32.xlu0 %v2060_v20  ;;  %4697 = vmatpush3.bf16.msra.mxu1 %v4694_v35 }
 0xb3f   :  { %4699 = vmatprep.subr.bf16.mxu1 %v4698_v37 }
 0xb42   :  { %4701 = vmatpush3.bf16.msra.mxu1 %v4698_v37 }
 0xb43   :  { %4522 = vmatprep.subr.mxu1 %v5098_v53 }
 0xbca   :  { %v2065_v21 = vpop.xlane.xlu1 %2064 }
 0xbcb   :  { %v2067_v22 = vmul.f32 0.03125, %v2065_v21  ;;  %v2062_v24 = vpop.xlane.xlu0 %2061 }
 0xbcc   :  { %v2066_v25 = vmul.f32 0.03125, %v2062_v24 }
 0xbcd   :  { %v2069_v26 = vsub.f32 %v2059_v17, %v2067_v22 }
 0xbce   :  { %v2068_v27 = vsub.f32 %v2058_v18, %v2066_v25 }
 0xbcf   :  { %v2071_v28 = vmul.f32 %v2069_v26, %v2069_v26 }
 0xbd0   :  { %v2070_v29 = vmul.f32 %v2068_v27, %v2068_v27 }
 0xbd1   :  { %v2075_v30 = vsel %vm169_vm0, %v2071_v28, 0.0 }
 0xbd2   :  { %2076 = vadd.xlane.f32.xlu1 %v2075_v30  ;;  %v2072_v31 = vsel %vm169_vm0, %v2070_v29, 0.0 }
 0xbd3   :  { %2073 = vadd.xlane.f32.xlu0 %v2072_v31 }
 0xc5f   :  { %v2077_v0 = vpop.xlane.xlu1 %2076 }
 0xc60   :  { %v2079_v39 = vmul.f32 0.03125, %v2077_v0  ;;  %v2074_v40 = vpop.xlane.xlu0 %2073 }
 0xc61   :  { %v2078_v41 = vmul.f32 0.03125, %v2074_v40 }
 0xc62   :  { %v2081_v42 = vadd.f32 1e-12, %v2079_v39 }
 0xc63   :  { %v2080_v43 = vadd.f32 1e-12, %v2078_v41 }
 0xc64   :  { %4815 = vrsqrt.f32 %v2081_v42  ;;  %vm2091_vm15 = vcmp.eq.f32.partialorder %v2081_v42, inf  ;;  %v2094_v63 = vand.u32 2147483648, %v2081_v42  ;;  %vm2093_vm1 = vcmp.eq.f32.partialorder %v2081_v42, 0.0 }
 0xc65   :  { %4817 = vrsqrt.f32 %v2080_v43  ;;  %vm2084_vm2 = vcmp.eq.f32.partialorder %v2080_v43, inf  ;;  %v2087_v48 = vand.u32 2147483648, %v2080_v43  ;;  %vm2086_vm3 = vcmp.eq.f32.partialorder %v2080_v43, 0.0 }
 0xc6e   :  { %v4816_v44 = vpop.eup %4815 }
 0xc6f   :  { %v4818_v58 = vpop.eup %4817  ;;  %v2090_v45 = vmul.f32 %v4816_v44, %v2081_v42 }
 0xc70   :  { %v2083_v46 = vmul.f32 %v4818_v58, %v2080_v43 }
 0xc71   :  { %v2092_v47 = vsel %vm2091_vm15, %v2081_v42, %v2090_v45 }
 0xc72   :  { %v2095_v49 = vsel %vm2093_vm1, %v2094_v63, %v2092_v47  ;;  %v2085_v51 = vsel %vm2084_vm2, %v2080_v43, %v2083_v46 }
 0xc73   :  { %4819 = vrcp.f32 %v2095_v49  ;;  %v2088_v3 = vsel %vm2086_vm3, %v2087_v48, %v2085_v51 }
 0xc74   :  { %4821 = vrcp.f32 %v2088_v3 }
 0xc7d   :  { %v4820_v54 = vpop.eup %4819 }
 0xc7e   :  { %v4822_v56 = vpop.eup %4821  ;;  %v2099_v59 = vmul.f32 %v4820_v54, %v2069_v26 }
 0xc7f   :  { %v2097_v1 = vmul.f32 %v4822_v56, %v2068_v27 }
 0xc80   :  { %v2107_v4 = vmul.f32 %v4184_v55, %v2099_v59 }
 0xc81   :  { %v2106_v61 = vmul.f32 %v4184_v55, %v2097_v1 }
 0xc82   :  { %v5639_v6 = vadd.f32 %v4185_v2, %v2107_v4 }
 0xc83   :  { %v5637_v5 = vadd.f32 %v4185_v2, %v2106_v61 }
 0xc85   :  { %4519 = vmatprep.mubr.msk.f32.mxu1 %vm169_vm0, %v5637_v5 }
 0xc86   :  { %4520 = vmatmul.mubr.msk.f32.vlgmr.msra.gmra.mrb[22].mxu1 %vm169_vm0, %v5639_v6 }
 0xc87   :  { %4524 = vmatprep.mubr.msk.f32.mxu1 %vm5099_vm5, %v5098_v53 }
 0xd59   :  { %v4521_v7 = vpop.f32.mrb[22].mxu1 }
 0xd5a   :  { %v2234_v8 = vpop.f32.mrb[23].mxu1  ;;  %v5653_v50 = vadd.f32 %v4521_v7, %v4212_v60 }
 0xd5b   :  { %v5647_v52 = vadd.f32 %v4212_v60, %v2234_v8 }
 0xd5c   :  { %v2244_v13 = vmul.f32 0.35355338, %v5653_v50 }
 0xd5d   :  { %2262 = vrot.lane.b32.xlu1 %v5647_v52, %s5100_s3  ;;  %2260 = vrot.lane.b32.xlu0 %v5647_v52, %s5101_s29  ;;  %v2243_v57 = vmul.f32 0.35355338, %v5647_v52 }
 0xd61   :  { %2264 = vrot.lane.b32.xlu1 %v5647_v52, %s5102_s26  ;;  %2269 = vrot.lane.b32.xlu0 %v5653_v50, %s5100_s3 }
 0xd65   :  { %2267 = vrot.lane.b32.xlu1 %v5653_v50, %s5101_s29  ;;  %2273 = vrot.lane.b32.xlu0 %v5647_v52, %s5103_s30 }
 0xd69   :  { %2271 = vrot.lane.b32.xlu1 %v5653_v50, %s5102_s26  ;;  %2246 = vrot.lane.b32.xlu0 %v2243_v57, %s5101_s29 }
 0xd6d   :  { %2577 = vrot.lane.b32.xlu1 %v5653_v50, %s5103_s30  ;;  %2250 = vrot.lane.b32.xlu0 %v2243_v57, %s5102_s26 }
 0xd71   :  { %2248 = vrot.lane.b32.xlu1 %v2243_v57, %s5100_s3 }
 0xdcf   :  { %v5671_v9 = vpop.permute.xlu1 %2262  ;;  %v5673_v10 = vpop.permute.xlu0 %2260 }
 0xdd0   :  { %2349 = vrot.lane.b32.xlu1 %v5673_v10, %s5103_s30 }
 0xdd3   :  { %v5677_v11 = vpop.permute.xlu1 %2264  ;;  %v5679_v12 = vpop.permute.xlu0 %2269 }
 0xdd4   :  { %2425 = vrot.lane.b32.xlu1 %v5671_v9, %s5103_s30  ;;  %2501 = vrot.lane.b32.xlu0 %v5677_v11, %s5103_s30 }
 0xdd7   :  { %v5686_v14 = vpop.permute.xlu1 %2267  ;;  %v2274_v15 = vpop.permute.xlu0 %2273 }
 0xdd8   :  { %4523 = vmatpush3.xpose.msk.msra.mxu1 %vm385_vm6, %v2274_v15  ;;  %2253 = vrot.lane.b32.xlu1 %v2244_v13, %s5101_s29 }
 0xdd9   :  { %2653 = vrot.lane.b32.xlu0 %v5686_v14, %s5103_s30  ;;  %4527 = vmatprep.subr.mxu1 %v5098_v53 }
 0xddb   :  { %v5693_v62 = vpop.permute.xlu1 %2271  ;;  %4525 = vmatmul.mubr.msk.f32.vlgmr.msra.gmra.mrb[24].mxu1 %vm385_vm6, %v2243_v57  ;;  %v2247_v17 = vpop.permute.xlu0 %2246 }
 0xddc   :  { %2805 = vrot.lane.b32.xlu1 %v5693_v62, %s5103_s30  ;;  %4529 = vmatprep.mubr.msk.f32.mxu1 %vm5099_vm5, %v5098_v53 }
 0xddd   :  { %2729 = vrot.lane.b32.xlu0 %v5679_v12, %s5103_s30 }
 0xddf   :  { %v2578_v16 = vpop.permute.xlu1 %2577  ;;  %v2251_v19 = vpop.permute.xlu0 %2250 }
 0xde0   :  { %2257 = vrot.lane.b32.xlu1 %v2244_v13, %s5102_s26 }
 0xde1   :  { %2255 = vrot.lane.b32.xlu0 %v2244_v13, %s5100_s3 }
 0xde3   :  { %v2249_v18 = vpop.permute.xlu1 %2248 }
 0xe42   :  { %v2350_v20 = vpop.permute.xlu1 %2349 }
 0xe43   :  { %4528 = vmatpush3.xpose.msk.msra.mxu1 %vm385_vm6, %v2350_v20 }
 0xe44   :  { %4537 = vmatprep.subr.mxu1 %v5098_v53 }
 0xe46   :  { %v2426_v21 = vpop.permute.xlu1 %2425  ;;  %v2502_v22 = vpop.permute.xlu0 %2501  ;;  %4530 = vmatmul.mubr.msk.f32.vlgmr.msra.gmra.mrb[26].mxu1 %vm385_vm6, %v2247_v17 }
 0xe47   :  { %4533 = vmatpush3.xpose.msk.msra.mxu0 %vm385_vm6, %v2426_v21  ;;  %4538 = vmatpush3.xpose.msk.msra.mxu1 %vm385_vm6, %v2502_v22 }
 0xe48   :  { %4539 = vmatprep.mubr.msk.f32.mxu1 %vm5099_vm5, %v5098_v53  ;;  %4542 = vmatprep.subr.mxu0 %v5098_v53 }
 0xe49   :  { %4547 = vmatprep.subr.mxu1 %v5098_v53 }
 0xe4a   :  { %4535 = vmatmul.mubr.msk.f32.vlgmr.msra.gmra.mrb[18].mxu0 %vm385_vm6, %v2249_v18  ;;  %v2254_v24 = vpop.permute.xlu1 %2253  ;;  %4540 = vmatmul.mubr.msk.f32.vlgmr.msra.gmra.mrb[28].mxu1 %vm385_vm6, %v2251_v19 }
 0xe4b   :  { %v2654_v25 = vpop.permute.xlu0 %2653  ;;  %4543 = vmatpush3.xpose.msk.msra.mxu0 %vm385_vm6, %v2578_v16  ;;  %4544 = vmatprep.mubr.msk.f32.mxu0 %vm5099_vm5, %v5098_v53 }
 0xe4c   :  { %4548 = vmatpush3.xpose.msk.msra.mxu1 %vm385_vm6, %v2654_v25  ;;  %4549 = vmatprep.mubr.msk.f32.mxu1 %vm5099_vm5, %v5098_v53 }
 0xe4d   :  { %4552 = vmatprep.subr.mxu0 %v5098_v53  ;;  %4557 = vmatprep.subr.mxu1 %v5098_v53 }
 0xe4e   :  { %4545 = vmatmul.mubr.msk.f32.vlgmr.msra.gmra.mrb[20].mxu0 %vm385_vm6, %v2244_v13  ;;  %v2806_v26 = vpop.permute.xlu1 %2805 }
 0xe4f   :  { %v2730_v27 = vpop.permute.xlu0 %2729  ;;  %4550 = vmatmul.mubr.msk.f32.vlgmr.msra.gmra.mrb[30].mxu1 %vm385_vm6, %v2254_v24  ;;  %4554 = vmatprep.mubr.msk.f32.mxu0 %vm5099_vm5, %v5098_v53 }
 0xe50   :  { %4553 = vmatpush3.xpose.msk.msra.mxu0 %vm385_vm6, %v2730_v27  ;;  %4558 = vmatpush3.xpose.msk.msra.mxu1 %vm385_vm6, %v2806_v26 }
 0xe51   :  { %4559 = vmatprep.mubr.msk.f32.mxu1 %vm5099_vm5, %v5098_v53  ;;  %4567 = vmatprep.subr.mxu1 %v5098_v53 }
 0xe52   :  { %v2258_v28 = vpop.permute.xlu1 %2257  ;;  %4562 = vmatprep.subr.mxu0 %v5098_v53 }
 0xe53   :  { %v2256_v29 = vpop.permute.xlu0 %2255  ;;  %4560 = vmatmul.mubr.msk.f32.vlgmr.msra.gmra.mrb[32].mxu1 %vm385_vm6, %v2258_v28 }
 0xe54   :  { %4555 = vmatmul.mubr.msk.f32.vlgmr.msra.gmra.mrb[22].mxu0 %vm385_vm6, %v2256_v29  ;;  %4569 = vmatprep.mubr.msk.f32.mxu1 %vm5099_vm5, %v5098_v53 }
 0xe55   :  { %4564 = vmatprep.mubr.msk.f32.mxu0 %vm5099_vm5, %v5098_v53 }
 0xeae   :  { %v2345_v30 = vpop.f32.mrb[24].mxu1 }
 0xeaf   :  { %v2346_v31 = vadd.f32 %v2345_v30, %v5441_v23  ;;  %v4526_v32 = vpop.f32.mrb[25].mxu1 }
 0xeb1   :  { %v2881_v33 = vsel %vm385_vm6, %v2346_v31, -inf }
 0xeb2   :  { %2882 = vmax.xlane.f32.xlu0 %v2881_v33 }
 0xf19   :  { %v2421_v34 = vpop.f32.mrb[26].mxu1 }
 0xf1a   :  { %v2422_v35 = vadd.f32 %v2421_v34, %v5441_v23  ;;  %v4531_v36 = vpop.f32.mrb[27].mxu1 }
 0xf1c   :  { %v2884_v37 = vsel %vm385_vm6, %v2422_v35, -inf }
 0xf1d   :  { %v2497_v0 = vpop.f32.mrb[18].mxu0  ;;  %2885 = vmax.xlane.f32.xlu1 %v2884_v37  ;;  %v2573_v39 = vpop.f32.mrb[28].mxu1 }
 0xf1e   :  { %v2498_v40 = vadd.f32 %v2497_v0, %v5441_v23  ;;  %v4536_v41 = vpop.f32.mrb[19].mxu0  ;;  %v4541_v42 = vpop.f32.mrb[29].mxu1  ;;  %v2574_v43 = vadd.f32 %v2573_v39, %v5441_v23 }
 0xf20   :  { %v2887_v44 = vsel %vm385_vm6, %v2498_v40, -inf  ;;  %v2890_v49 = vsel %vm385_vm6, %v2574_v43, -inf }
 0xf21   :  { %v2649_v58 = vpop.f32.mrb[20].mxu0  ;;  %2888 = vmax.xlane.f32.xlu0 %v2887_v44 }
 0xf22   :  { %v2725_v45 = vpop.f32.mrb[30].mxu1  ;;  %v4546_v63 = vpop.f32.mrb[21].mxu0  ;;  %v2650_v48 = vadd.f32 %v2649_v58, %v5448_v38 }
 0xf23   :  { %v2726_v46 = vadd.f32 %v2725_v45, %v5448_v38  ;;  %v4551_v47 = vpop.f32.mrb[31].mxu1 }
 0xf24   :  { %v2893_v1 = vsel %vm385_vm6, %v2650_v48, -inf }
 0xf25   :  { %2891 = vmax.xlane.f32.xlu0 %v2890_v49  ;;  %v2896_v51 = vsel %vm385_vm6, %v2726_v46, -inf }
 0xf26   :  { %2897 = vmax.xlane.f32.xlu1 %v2896_v51  ;;  %v2877_v3 = vpop.f32.mrb[32].mxu1 }
 0xf27   :  { %v2801_v54 = vpop.f32.mrb[22].mxu0  ;;  %v2878_v23 = vadd.f32 %v2877_v3, %v5448_v38  ;;  %v4561_v55 = vpop.f32.mrb[33].mxu1 }
 0xf28   :  { %v2802_v56 = vadd.f32 %v2801_v54, %v5448_v38  ;;  %v4556_v59 = vpop.f32.mrb[23].mxu0 }
 0xf29   :  { %2894 = vmax.xlane.f32.xlu0 %v2893_v1  ;;  %v2902_v2 = vsel %vm385_vm6, %v2878_v23, -inf }
 0xf2a   :  { %2903 = vmax.xlane.f32.xlu1 %v2902_v2  ;;  %v2899_v4 = vsel %vm385_vm6, %v2802_v56, -inf }
 0xf2d   :  { %2900 = vmax.xlane.f32.xlu0 %v2899_v4 }
 0xf3b   :  { %3045 = vrot.lane.b32.xlu1 %v5673_v10, %s5105_s22 }
 0xf3f   :  { %3121 = vrot.lane.b32.xlu1 %v5671_v9, %s5105_s22  ;;  %v2883_v38 = vpop.xlane.xlu0 %2882 }
 0xf40   :  { %v2905_v61 = vsub.f32 %v2346_v31, %v2883_v38 }
 0xf42   :  { %v2913_v60 = vmul.f32 1.442695, %v2905_v61 }
 0xf43   :  { %2969 = vrot.lane.b32.xlu0 %v5647_v52, %s5105_s22  ;;  %3197 = vrot.lane.b32.xlu1 %v5677_v11, %s5105_s22 }
 0xf44   :  { %4823 = vpow2.f32 %v2913_v60 }
 0xf47   :  { %3273 = vrot.lane.b32.xlu0 %v5653_v50, %s5105_s22  ;;  %3349 = vrot.lane.b32.xlu1 %v5686_v14, %s5105_s22 }
 0xf4e   :  { %v5767_v7 = vpop.eup %4823 }
 0xf4f   :  { %v2929_v8 = vsel %vm385_vm6, %v5767_v7, 0.0 }
 0xf66   :  { %2930 = vadd.xlane.f32.xlu0 %v2929_v8 }
 0xfaa   :  { %v2886_v52 = vpop.xlane.xlu1 %2885 }
 0xfab   :  { %v2906_v57 = vsub.f32 %v2422_v35, %v2886_v52 }
 0xfad   :  { %v2915_v9 = vmul.f32 1.442695, %v2906_v57 }
 0xfae   :  { %v2889_v10 = vpop.xlane.xlu0 %2888 }
 0xfaf   :  { %4825 = vpow2.f32 %v2915_v9  ;;  %v2907_v11 = vsub.f32 %v2498_v40, %v2889_v10 }
 0xfb1   :  { %v2917_v50 = vmul.f32 1.442695, %v2907_v11 }
 0xfb2   :  { %v2892_v13 = vpop.xlane.xlu0 %2891 }
 0xfb3   :  { %4827 = vpow2.f32 %v2917_v50  ;;  %v2908_v14 = vsub.f32 %v2574_v43, %v2892_v13  ;;  %v2898_v15 = vpop.xlane.xlu1 %2897 }
 0xfb4   :  { %v2910_v16 = vsub.f32 %v2726_v46, %v2898_v15  ;;  %v4190_v15 = vld [vmem:[%s5964_s8 + $0x20] sm:$0xff] }
 0xfb5   :  { %v2919_v17 = vmul.f32 1.442695, %v2908_v14 }
 0xfb6   :  { %v2923_v18 = vmul.f32 1.442695, %v2910_v16  ;;  %v2895_v19 = vpop.xlane.xlu0 %2894  ;;  %v4191_v16 = vld [vmem:[%s5964_s8 + $0x28] sm:$0xff] }
 0xfb7   :  { %4829 = vpow2.f32 %v2919_v17  ;;  %v2909_v20 = vsub.f32 %v2650_v48, %v2895_v19  ;;  %v2904_v21 = vpop.xlane.xlu1 %2903  ;;  %v4702_v17 = vpack.c.bf16 %v4191_v16, %v4190_v15 }
 0xfb8   :  { %v2912_v22 = vsub.f32 %v2878_v23, %v2904_v21  ;;  %4831 = vpow2.f32 %v2923_v18  ;;  %v4193_v21 = vld [vmem:[%s5964_s8 + $0x38] sm:$0xff] }
 0xfb9   :  { %v4826_v24 = vpop.eup %4825  ;;  %v2921_v25 = vmul.f32 1.442695, %v2909_v20  ;;  %v4192_v20 = vld [vmem:[%s5964_s8 + $0x30] sm:$0xff] }
 0xfba   :  { %v2927_v26 = vmul.f32 1.442695, %v2912_v22  ;;  %v2901_v27 = vpop.xlane.xlu0 %2900  ;;  %v2932_v28 = vsel %vm385_vm6, %v4826_v24, 0.0  ;;  %v4706_v22 = vpack.c.bf16 %v4193_v21, %v4192_v20 }
 0xfbb   :  { %4833 = vpow2.f32 %v2921_v25  ;;  %v2911_v29 = vsub.f32 %v2802_v56, %v2901_v27  ;;  %2933 = vadd.xlane.f32.xlu1 %v2932_v28  ;;  %v3046_v30 = vpop.permute.xlu1 %3045 }
 0xfbc   :  { %4568 = vmatpush3.msra.mxu1 %v3046_v30  ;;  %4835 = vpow2.f32 %v2927_v26 }
 0xfbd   :  { %v4828_v31 = vpop.eup %4827  ;;  %v2925_v32 = vmul.f32 1.442695, %v2911_v29  ;;  %4577 = vmatprep.subr.mxu1 %v5098_v53 }
 0xfbe   :  { %v2970_v33 = vpop.permute.xlu0 %2969  ;;  %v2935_v34 = vsel %vm385_vm6, %v4828_v31, 0.0 }
 0xfbf   :  { %4837 = vpow2.f32 %v2925_v32  ;;  %2936 = vadd.xlane.f32.xlu0 %v2935_v34  ;;  %4563 = vmatpush3.msra.mxu0 %v2970_v33  ;;  %v3122_v47 = vpop.permute.xlu1 %3121 }
 0xfc0   :  { %4572 = vmatprep.subr.mxu0 %v5098_v53 }
 0xfc1   :  { %v4830_v35 = vpop.eup %4829 }
 0xfc2   :  { %v2938_v36 = vsel %vm385_vm6, %v4830_v35, 0.0  ;;  %v4832_v37 = vpop.eup %4831  ;;  %v3274_v58 = vpop.permute.xlu0 %3273 }
 0xfc3   :  { %2939 = vadd.xlane.f32.xlu1 %v2938_v36  ;;  %v2944_v40 = vsel %vm385_vm6, %v4832_v37, 0.0  ;;  %v3198_v48 = vpop.permute.xlu1 %3197 }
 0xfc5   :  { %v4834_v0 = vpop.eup %4833 }
 0xfc6   :  { %v2941_v39 = vsel %vm385_vm6, %v4834_v0, 0.0  ;;  %v5778_v41 = vpop.eup %4835 }
 0xfc7   :  { %2942 = vadd.xlane.f32.xlu0 %v2941_v39  ;;  %2945 = vadd.xlane.f32.xlu1 %v2944_v40  ;;  %v2950_v44 = vsel %vm385_vm6, %v5778_v41, 0.0 }
 0xfc9   :  { %v4838_v42 = vpop.eup %4837 }
 0xfca   :  { %v2947_v43 = vsel %vm385_vm6, %v4838_v42, 0.0 }
 0xfcb   :  { %2948 = vadd.xlane.f32.xlu0 %v2947_v43  ;;  %2951 = vadd.xlane.f32.xlu1 %v2950_v44 }
 0xfdc   :  { %3501 = vrot.lane.b32.xlu1 %v5693_v62, %s5105_s22  ;;  %v3350_v62 = vpop.permute.xlu1 %3349 }
 0xfe1   :  { %3425 = vrot.lane.b32.xlu0 %v5679_v12, %s5105_s22 }
 0xff3   :  { %v2931_v45 = vpop.xlane.xlu0 %2930 }
 0xff4   :  { %4839 = vrcp.f32 %v2931_v45 }
 0xffe   :  { %v4840_v63 = vpop.eup %4839 }
 0xfff   :  { %v2961_v46 = vmul.f32 %v4840_v63, %v5767_v7 }
0x1001   :  { %4565 = vmatmul.mubr.msk.f32.vlgmr.msra.gmra.mrb[24].mxu0 %vm385_vm6, %v2961_v46  ;;  %v4239_v46 = vld [vmem:[#allocation13 + $0x1] ss:$0 sm:$0xff] }
0x1002   :  { %4573 = vmatpush3.msra.mxu0 %v3122_v47  ;;  %4574 = vmatprep.mubr.msk.f32.mxu0 %vm5099_vm5, %v5098_v53 }
0x1003   :  { %4582 = vmatprep.subr.mxu0 %v5098_v53 }
0x1048   :  { %v2934_v49 = vpop.xlane.xlu1 %2933 }
0x1049   :  { %4841 = vrcp.f32 %v2934_v49 }
0x104c   :  { %v2937_v12 = vpop.xlane.xlu0 %2936 }
0x104d   :  { %4843 = vrcp.f32 %v2937_v12 }
0x1050   :  { %v2940_v51 = vpop.xlane.xlu1 %2939 }
0x1051   :  { %4845 = vrcp.f32 %v2940_v51 }
0x1053   :  { %v4842_v3 = vpop.eup %4841 }
0x1054   :  { %v2962_v54 = vmul.f32 %v4842_v3, %v4826_v24  ;;  %v2943_v23 = vpop.xlane.xlu0 %2942  ;;  %v2946_v55 = vpop.xlane.xlu1 %2945 }
0x1055   :  { %4847 = vrcp.f32 %v2943_v23 }
0x1056   :  { %4849 = vrcp.f32 %v2946_v55  ;;  %4570 = vmatmul.mubr.msk.f32.vlgmr.msra.gmra.mrb[34].mxu1 %vm385_vm6, %v2962_v54 }
0x1057   :  { %v4844_v56 = vpop.eup %4843  ;;  %4578 = vmatpush3.msra.mxu1 %v3198_v48  ;;  %4579 = vmatprep.mubr.msk.f32.mxu1 %vm5099_vm5, %v5098_v53 }
0x1058   :  { %v2963_v59 = vmul.f32 %v4844_v56, %v4828_v31  ;;  %v2949_v1 = vpop.xlane.xlu0 %2948  ;;  %v2952_v2 = vpop.xlane.xlu1 %2951  ;;  %4587 = vmatprep.subr.mxu1 %v5098_v53 }
0x1059   :  { %4851 = vrcp.f32 %v2949_v1 }
0x105a   :  { %4853 = vrcp.f32 %v2952_v2  ;;  %4575 = vmatmul.mubr.msk.f32.vlgmr.msra.gmra.mrb[26].mxu0 %vm385_vm6, %v2963_v59 }
0x105b   :  { %v4846_v4 = vpop.eup %4845  ;;  %4583 = vmatpush3.msra.mxu0 %v3274_v58  ;;  %4584 = vmatprep.mubr.msk.f32.mxu0 %vm5099_vm5, %v5098_v53 }
0x105c   :  { %v2964_v38 = vmul.f32 %v4846_v4, %v4830_v35  ;;  %4592 = vmatprep.subr.mxu0 %v5098_v53  ;;  %v3426_v52 = vpop.permute.xlu0 %3425  ;;  %v3502_v9 = vpop.permute.xlu1 %3501 }
0x105e   :  { %4580 = vmatmul.mubr.msk.f32.vlgmr.msra.gmra.mrb[36].mxu1 %vm385_vm6, %v2964_v38 }
0x105f   :  { %v4848_v61 = vpop.eup %4847  ;;  %4588 = vmatpush3.msra.mxu1 %v3350_v62  ;;  %4589 = vmatprep.mubr.msk.f32.mxu1 %vm5099_vm5, %v5098_v53 }
0x1060   :  { %v4850_v60 = vpop.eup %4849  ;;  %v2965_v7 = vmul.f32 %v4848_v61, %v4834_v0  ;;  %4597 = vmatprep.subr.mxu1 %v5098_v53 }
0x1061   :  { %v2966_v8 = vmul.f32 %v4850_v60, %v4832_v37  ;;  %v4197_v60 = vld [vmem:[%s5968_s12 + $0x28] sm:$0xff] }
0x1062   :  { %4585 = vmatmul.mubr.msk.f32.vlgmr.msra.gmra.mrb[28].mxu0 %vm385_vm6, %v2965_v7  ;;  %v4198_v7 = vld [vmem:[%s5968_s12 + $0x30] sm:$0xff] }
0x1063   :  { %v4852_v57 = vpop.eup %4851  ;;  %4590 = vmatmul.mubr.msk.f32.vlgmr.msra.gmra.mrb[38].mxu1 %vm385_vm6, %v2966_v8  ;;  %4593 = vmatpush3.msra.mxu0 %v3426_v52  ;;  %v4199_v52 = vld [vmem:[%s5968_s12 + $0x38] sm:$0xff] }
0x1064   :  { %v4854_v10 = vpop.eup %4853  ;;  %v2967_v11 = vmul.f32 %v4852_v57, %v4838_v42  ;;  %4598 = vmatpush3.msra.mxu1 %v3502_v9  ;;  %4594 = vmatprep.mubr.msk.f32.mxu0 %vm5099_vm5, %v5098_v53  ;;  %v4714_v57 = vpack.c.bf16 %v4199_v52, %v4198_v7 }
0x1065   :  { %v2968_v50 = vmul.f32 %v4854_v10, %v5778_v41  ;;  %4599 = vmatprep.mubr.msk.f32.mxu1 %vm5099_vm5, %v5098_v53  ;;  %4703 = vmatprep.subr.bf16.mxu0 %v4702_v17 }
0x1066   :  { %4595 = vmatmul.mubr.msk.f32.vlgmr.msra.gmra.mrb[30].mxu0 %vm385_vm6, %v2967_v11 }
0x1067   :  { %4600 = vmatmul.mubr.msk.f32.vlgmr.msra.gmra.mrb[40].mxu1 %vm385_vm6, %v2968_v50  ;;  %4705 = vmatpush3.bf16.msra.mxu0 %v4702_v17 }
0x1068   :  { %4707 = vmatprep.subr.bf16.mxu0 %v4706_v22 }
0x106b   :  { %4709 = vmatpush3.bf16.msra.mxu0 %v4706_v22 }
0x10d4   :  { %v3041_v13 = vpop.f32.mrb[24].mxu0 }
0x10d5   :  { %v4566_v14 = vpop.f32.mrb[25].mxu0 }
0x1129   :  { %v3117_v18 = vpop.f32.mrb[34].mxu1 }
0x112a   :  { %3578 = vrot.lane.b32.xlu0 %v3117_v18, %s5094_s24  ;;  %v4571_v19 = vpop.f32.mrb[35].mxu1 }
0x112d   :  { %v3193_v24 = vpop.f32.mrb[26].mxu0 }
0x112e   :  { %3582 = vrot.lane.b32.xlu1 %v3193_v24, %s6001_s19  ;;  %v4576_v25 = vpop.f32.mrb[27].mxu0 }
0x1131   :  { %v3269_v26 = vpop.f32.mrb[36].mxu1 }
0x1132   :  { %3586 = vrot.lane.b32.xlu1 %v3269_v26, %s5106_s21  ;;  %v4581_v27 = vpop.f32.mrb[37].mxu1 }
0x1133   :  { %v4242_v27 = vld [vmem:[%s5966_s10 + $0x1] ss:$0 sm:$0xff] }
0x1135   :  { %v3345_v28 = vpop.f32.mrb[28].mxu0 }
0x1136   :  { %v3421_v29 = vpop.f32.mrb[38].mxu1  ;;  %v4586_v30 = vpop.f32.mrb[29].mxu0 }
0x1137   :  { %3593 = vrot.lane.b32.xlu0 %v3421_v29, %s5094_s24  ;;  %v4591_v31 = vpop.f32.mrb[39].mxu1  ;;  %v4243_v29 = vld [vmem:[%s5967_s11 + $0x1] ss:$0 sm:$0xff] }
0x1139   :  { %v3497_v32 = vpop.f32.mrb[30].mxu0 }
0x113a   :  { %v3573_v33 = vpop.f32.mrb[40].mxu1  ;;  %v4596_v34 = vpop.f32.mrb[31].mxu0 }
0x113b   :  { %3597 = vrot.lane.b32.xlu0 %v3497_v32, %s6001_s19  ;;  %3601 = vrot.lane.b32.xlu1 %v3573_v33, %s5106_s21  ;;  %v4601_v35 = vpop.f32.mrb[41].mxu1 }
0x119c   :  { %v3579_v36 = vpop.permute.xlu0 %3578 }
0x119d   :  { %v3589_v0 = vsel %vm385_vm6, %v3041_v13, %v3579_v36  ;;  %v4201_v36 = vld [vmem:[%s5970_s14 + $0x40] sm:$0xff] }
0x11a0   :  { %v3583_v37 = vpop.permute.xlu1 %3582 }
0x11a1   :  { %v3590_v39 = vsel %vm1701_vm8, %v3589_v0, %v3583_v37  ;;  %v4202_v37 = vld [vmem:[%s5970_s14 + $0x48] sm:$0xff] }
0x11a2   :  { %v4718_v0 = vpack.c.bf16 %v4202_v37, %v4201_v36 }
0x11a4   :  { %v3587_v40 = vpop.permute.xlu1 %3586  ;;  %4719 = vmatprep.subr.bf16.mxu0 %v4718_v0 }
0x11a5   :  { %v3591_v41 = vsel %vm1703_vm9, %v3590_v39, %v3587_v40  ;;  %v4203_v39 = vld [vmem:[%s5970_s14 + $0x50] sm:$0xff]  ;;  %v4204_v40 = vld [vmem:[%s5970_s14 + $0x58] sm:$0xff] }
0x11a6   :  { %4610 = vmatprep.mubr.msk.f32.mxu0 %vm169_vm0, %v3591_v41  ;;  %v4722_v41 = vpack.c.bf16 %v4204_v40, %v4203_v39 }
0x11a9   :  { %v3594_v42 = vpop.permute.xlu0 %3593 }
0x11aa   :  { %v3604_v43 = vsel %vm385_vm6, %v3345_v28, %v3594_v42  ;;  %v4206_v42 = vld [vmem:[%s5970_s14 + $0x68] sm:$0xff] }
0x11ad   :  { %v3598_v44 = vpop.permute.xlu0 %3597  ;;  %v3602_v58 = vpop.permute.xlu1 %3601 }
0x11ae   :  { %v3605_v45 = vsel %vm1701_vm8, %v3604_v43, %v3598_v44  ;;  %v4207_v44 = vld [vmem:[%s5970_s14 + $0x70] sm:$0xff] }
0x11af   :  { %v3606_v63 = vsel %vm1703_vm9, %v3605_v45, %v3602_v58  ;;  %v4208_v58 = vld [vmem:[%s5970_s14 + $0x78] sm:$0xff] }
0x11b0   :  { %4611 = vmatmul.mubr.msk.f32.vlgmr.msra.gmra.mrb[32].mxu0 %vm169_vm0, %v3606_v63  ;;  %v4730_v45 = vpack.c.bf16 %v4208_v58, %v4207_v44  ;;  %v4244_v63 = vld [vmem:[%s5969_s13 + $0x1] ss:$0 sm:$0xff] }
0x11b1   :  { %4721 = vmatpush3.bf16.msra.mxu0 %v4718_v0 }
0x11b2   :  { %4723 = vmatprep.subr.bf16.mxu0 %v4722_v41 }
0x11b5   :  { %4725 = vmatpush3.bf16.msra.mxu0 %v4722_v41 }
0x1283   :  { %v4612_v47 = vpop.f32.mrb[32].mxu0 }
0x1284   :  { %v3691_v48 = vadd.f32 %v4612_v47, %v4239_v46  ;;  %v3685_v62 = vpop.f32.mrb[33].mxu0 }
0x1285   :  { %v3686_v49 = vadd.f32 %v4239_v46, %v3685_v62 }
0x1286   :  { %v3695_v12 = vadd.f32 %v3691_v48, %v5639_v6 }
0x1287   :  { %v3694_v51 = vadd.f32 %v3686_v49, %v5637_v5  ;;  %v4196_v5 = vld [vmem:[%s5968_s12 + $0x20] sm:$0xff] }
0x1288   :  { %v3699_v3 = vsel %vm169_vm0, %v3695_v12, 0.0  ;;  %v4710_v8 = vpack.c.bf16 %v4197_v60, %v4196_v5 }
0x1289   :  { %3700 = vadd.xlane.f32.xlu1 %v3699_v3  ;;  %v3696_v54 = vsel %vm169_vm0, %v3694_v51, 0.0 }
0x128a   :  { %3697 = vadd.xlane.f32.xlu0 %v3696_v54  ;;  %4711 = vmatprep.subr.bf16.mxu1 %v4710_v8 }
0x128b   :  { %4713 = vmatpush3.bf16.msra.mxu1 %v4710_v8  ;;  %v4247_v8 = vld [vmem:[%s5971_s15 + $0x1] ss:$0 sm:$0xff] }
0x128c   :  { %4715 = vmatprep.subr.bf16.mxu1 %v4714_v57 }
0x128f   :  { %4717 = vmatpush3.bf16.msra.mxu1 %v4714_v57 }
0x1316   :  { %v3701_v23 = vpop.xlane.xlu1 %3700 }
0x1317   :  { %v3703_v55 = vmul.f32 0.03125, %v3701_v23  ;;  %v3698_v56 = vpop.xlane.xlu0 %3697 }
0x1318   :  { %v3702_v59 = vmul.f32 0.03125, %v3698_v56 }
0x1319   :  { %v3705_v1 = vsub.f32 %v3695_v12, %v3703_v55 }
0x131a   :  { %v3704_v2 = vsub.f32 %v3694_v51, %v3702_v59 }
0x131b   :  { %v3707_v61 = vmul.f32 %v3705_v1, %v3705_v1 }
0x131c   :  { %v3706_v4 = vmul.f32 %v3704_v2, %v3704_v2 }
0x131d   :  { %v3711_v6 = vsel %vm169_vm0, %v3707_v61, 0.0 }
0x131e   :  { %v3708_v38 = vsel %vm169_vm0, %v3706_v4, 0.0 }
0x131f   :  { %3709 = vadd.xlane.f32.xlu0 %v3708_v38 }
0x1323   :  { %3712 = vadd.xlane.f32.xlu0 %v3711_v6 }
0x13ac   :  { %v3710_v9 = vpop.xlane.xlu0 %3709 }
0x13ad   :  { %v3714_v10 = vmul.f32 0.03125, %v3710_v9 }
0x13af   :  { %v3716_v11 = vadd.f32 1e-12, %v3714_v10 }
0x13b0   :  { %v3713_v50 = vpop.xlane.xlu0 %3712 }
0x13b1   :  { %4855 = vrsqrt.f32 %v3716_v11  ;;  %v3715_v13 = vmul.f32 0.03125, %v3713_v50  ;;  %vm3720_vm4 = vcmp.eq.f32.partialorder %v3716_v11, inf  ;;  %v3723_v17 = vand.u32 2147483648, %v3716_v11 }
0x13b2   :  { %vm3722_vm6 = vcmp.eq.f32.partialorder %v3716_v11, 0.0 }
0x13b3   :  { %v3717_v14 = vadd.f32 1e-12, %v3715_v13 }
0x13b5   :  { %4857 = vrsqrt.f32 %v3717_v14  ;;  %vm3727_vm7 = vcmp.eq.f32.partialorder %v3717_v14, inf  ;;  %v3730_v22 = vand.u32 2147483648, %v3717_v14  ;;  %vm3729_vm8 = vcmp.eq.f32.partialorder %v3717_v14, 0.0 }
0x13bb   :  { %v4856_v15 = vpop.eup %4855 }
0x13bc   :  { %v3719_v16 = vmul.f32 %v4856_v15, %v3716_v11 }
0x13be   :  { %v3721_v18 = vsel %vm3720_vm4, %v3716_v11, %v3719_v16 }
0x13bf   :  { %v3724_v19 = vsel %vm3722_vm6, %v3723_v17, %v3721_v18  ;;  %v4858_v20 = vpop.eup %4857 }
0x13c0   :  { %4859 = vrcp.f32 %v3724_v19  ;;  %v3726_v21 = vmul.f32 %v4858_v20, %v3717_v14 }
0x13c2   :  { %v3728_v24 = vsel %vm3727_vm7, %v3717_v14, %v3726_v21 }
0x13c3   :  { %v3731_v25 = vsel %vm3729_vm8, %v3730_v22, %v3728_v24 }
0x13c4   :  { %4861 = vrcp.f32 %v3731_v25 }
0x13ca   :  { %v4860_v26 = vpop.eup %4859 }
0x13cb   :  { %v3733_v28 = vmul.f32 %v4860_v26, %v3704_v2  ;;  %v4023_v26 = vld [vmem:[%s5974_s18] sm:$0xff] }
0x13cd   :  { %v3742_v30 = vmul.f32 %v4242_v27, %v3733_v28  ;;  %v4025_v28 = vld [vmem:[%s5974_s18 + $0x10] sm:$0xff] }
0x13ce   :  { %v4862_v31 = vpop.eup %4861 }
0x13cf   :  { %v3750_v32 = vadd.f32 %v4243_v29, %v3742_v30  ;;  %v3735_v33 = vmul.f32 %v4862_v31, %v3705_v1  ;;  %v4026_v31 = vld [vmem:[%s5974_s18 + $0x18] sm:$0xff] }
0x13d1   :  { %4621 = vmatprep.mubr.msk.f32.mxu1 %vm169_vm0, %v3750_v32  ;;  %v3743_v34 = vmul.f32 %v4242_v27, %v3735_v33  ;;  %v4024_v27 = vld [vmem:[%s5974_s18 + $0x8] sm:$0xff] }
0x13d2   :  { %v4735_v30 = vpack.c.bf16 %v4024_v27, %v4023_v26 }
0x13d3   :  { %v3751_v35 = vadd.f32 %v4243_v29, %v3743_v34  ;;  %v5107_v29 = vmov 0.0|0.0  }
0x13d4   :  { %4734 = vmatprep.subr.bf16.mxu1 %v5107_v29 }
0x13d5   :  { %4622 = vmatmul.mubr.msk.f32.vlgmr.msra.gmra.mrb[42].mxu1 %vm169_vm0, %v3751_v35 }
0x13d6   :  { %4651 = vmatprep.mubr.msk.f32.mxu1 %vm5099_vm5, %v5098_v53  ;;  %v4205_v53 = vld [vmem:[%s5970_s14 + $0x60] sm:$0xff]  ;;  %4736 = vmatpush3.bf16.msra.mxu1 %v4735_v30 }
0x13d7   :  { %v4726_v43 = vpack.c.bf16 %v4206_v42, %v4205_v53  ;;  %4737 = vmatprep.subr.bf16.mxu1 %v5107_v29 }
0x13d9   :  { %4727 = vmatprep.subr.bf16.mxu0 %v4726_v43 }
0x13da   :  { %4729 = vmatpush3.bf16.msra.mxu0 %v4726_v43 }
0x13db   :  { %4731 = vmatprep.subr.bf16.mxu0 %v4730_v45 }
0x13de   :  { %4733 = vmatpush3.bf16.msra.mxu0 %v4730_v45 }
0x14a8   :  { %v4623_v46 = vpop.f32.mrb[42].mxu1 }
0x14a9   :  { %v3836_v47 = vadd.f32 %v4623_v46, %v4244_v63  ;;  %v3830_v48 = vpop.f32.mrb[43].mxu1 }
0x14aa   :  { %v3831_v62 = vadd.f32 %v4244_v63, %v3830_v48 }
0x14ab   :  { %v3842_v49 = vmul.f32 0.044715, %v3836_v47  ;;  %v3840_v5 = vmul.f32 0.5, %v3836_v47 }
0x14ac   :  { %v3841_v12 = vmul.f32 0.044715, %v3831_v62  ;;  %v3839_v61 = vmul.f32 0.5, %v3831_v62 }
0x14ad   :  { %v3844_v51 = vmul.f32 %v3842_v49, %v3836_v47  ;;  %v4251_v49 = vld [vmem:[%s5973_s17 + $0x1] ss:$0 sm:$0xff] }
0x14ae   :  { %v3843_v3 = vmul.f32 %v3841_v12, %v3831_v62 }
0x14af   :  { %v3846_v54 = vmul.f32 %v3844_v51, %v3836_v47 }
0x14b0   :  { %v3845_v23 = vmul.f32 %v3843_v3, %v3831_v62 }
0x14b1   :  { %v3848_v55 = vadd.f32 %v3846_v54, %v3836_v47  ;;  %v4250_v47 = vld [vmem:[%s5972_s16 + $0x1] ss:$0 sm:$0xff]  ;;  %s5108_s16 = smov [#allocation14]  }
0x14b2   :  { %v3847_v56 = vadd.f32 %v3845_v23, %v3831_v62  ;;  %s4115_s17 = sshll.u32 %s5108_s16, 4  ;;  %s4116_s17 = int_to_ptr.vmem [resolvable:$true] %s4115_s17 }
0x14b3   :  { %v3850_v59 = vmul.f32 0.7978846, %v3848_v55  ;;  %s5031_s22 = scalar_lea.vmem %s4116_s17, 256  ;;  %p5036_p1 = scmp.lt.s32.totalorder %s4116_s17, %s4116_s17 }
0x14b4   :  { %v3849_v1 = vmul.f32 0.7978846, %v3847_v56  ;;  %p5032_p0 = scmp.ne.s32.totalorder %s4116_s17, %s5031_s22  ;;  %p5037_p2 = scmp.lt.s32.totalorder %s5031_s22, %s5031_s22 }
0x14b5   :  { %4863 = vtanh.f32 %v3850_v59 }
0x14b6   :  { %4865 = vtanh.f32 %v3849_v1  ;;  %p5038_p3 = por %p5037_p2, %p5036_p1 }
0x14b8   :  { %p5039_p4 = pnand %p5038_p3, %p5032_p0 }
0x14bf   :  { %v4864_v2 = vpop.eup %4863 }
0x14c0   :  { %v4866_v4 = vpop.eup %4865  ;;  %v3854_v38 = vadd.f32 1.0, %v4864_v2 }
0x14c1   :  { %v3853_v6 = vadd.f32 1.0, %v4866_v4 }
0x14c2   :  { %v3856_v7 = vmul.f32 %v3854_v38, %v3840_v5 }
0x14c3   :  { %v3855_v60 = vmul.f32 %v3853_v6, %v3839_v61 }
0x14c5   :  { %4640 = vmatprep.mubr.msk.f32.mxu0 %vm1976_vm14, %v3855_v60 }
0x14c6   :  { %4641 = vmatmul.mubr.msk.f32.vlgmr.msra.gmra.mrb[34].mxu0 %vm1976_vm14, %v3856_v7 }
0x1599   :  { %v4642_v52 = vpop.f32.mrb[34].mxu0 }
0x159a   :  { %v3941_v57 = vadd.f32 %v4642_v52, %v4247_v8  ;;  %v3935_v9 = vpop.f32.mrb[35].mxu0 }
0x159b   :  { %v3936_v10 = vadd.f32 %v4247_v8, %v3935_v9 }
0x159c   :  { %v3945_v11 = vadd.f32 %v3941_v57, %v3751_v35 }
0x159d   :  { %v3944_v50 = vadd.f32 %v3936_v10, %v3750_v32  ;;  %v4738_v32 = vpack.c.bf16 %v4026_v31, %v4025_v28 }
0x159e   :  { %v3949_v13 = vsel %vm169_vm0, %v3945_v11, 0.0 }
0x159f   :  { %3950 = vadd.xlane.f32.xlu1 %v3949_v13  ;;  %v3946_v14 = vsel %vm169_vm0, %v3944_v50, 0.0  ;;  %4739 = vmatpush3.bf16.msra.mxu1 %v4738_v32 }
0x15a0   :  { %3947 = vadd.xlane.f32.xlu0 %v3946_v14 }
0x162c   :  { %v3951_v15 = vpop.xlane.xlu1 %3950 }
0x162d   :  { %v3953_v16 = vmul.f32 0.03125, %v3951_v15  ;;  %v3948_v17 = vpop.xlane.xlu0 %3947 }
0x162e   :  { %v3952_v18 = vmul.f32 0.03125, %v3948_v17 }
0x162f   :  { %v3955_v19 = vsub.f32 %v3945_v11, %v3953_v16 }
0x1630   :  { %v3954_v20 = vsub.f32 %v3944_v50, %v3952_v18 }
0x1631   :  { %v3957_v21 = vmul.f32 %v3955_v19, %v3955_v19 }
0x1632   :  { %v3956_v22 = vmul.f32 %v3954_v20, %v3954_v20 }
0x1633   :  { %v3961_v24 = vsel %vm169_vm0, %v3957_v21, 0.0 }
0x1634   :  { %3962 = vadd.xlane.f32.xlu1 %v3961_v24  ;;  %v3958_v25 = vsel %vm169_vm0, %v3956_v22, 0.0 }
0x1635   :  { %3959 = vadd.xlane.f32.xlu0 %v3958_v25 }
0x16c1   :  { %v3963_v33 = vpop.xlane.xlu1 %3962 }
0x16c2   :  { %v3965_v34 = vmul.f32 0.03125, %v3963_v33  ;;  %v3960_v35 = vpop.xlane.xlu0 %3959 }
0x16c3   :  { %v3964_v36 = vmul.f32 0.03125, %v3960_v35 }
0x16c4   :  { %v3967_v37 = vadd.f32 1e-12, %v3965_v34 }
0x16c5   :  { %v3966_v0 = vadd.f32 1e-12, %v3964_v36 }
0x16c6   :  { %4867 = vrsqrt.f32 %v3967_v37  ;;  %vm3977_vm5 = vcmp.eq.f32.partialorder %v3967_v37, inf  ;;  %v3980_v41 = vand.u32 2147483648, %v3967_v37  ;;  %vm3979_vm9 = vcmp.eq.f32.partialorder %v3967_v37, 0.0 }
0x16c7   :  { %4869 = vrsqrt.f32 %v3966_v0  ;;  %vm3970_vm10 = vcmp.eq.f32.partialorder %v3966_v0, inf  ;;  %v3973_v44 = vand.u32 2147483648, %v3966_v0  ;;  %vm3972_vm11 = vcmp.eq.f32.partialorder %v3966_v0, 0.0 }
0x16d0   :  { %v4868_v39 = vpop.eup %4867 }
0x16d1   :  { %v4870_v40 = vpop.eup %4869  ;;  %v3976_v53 = vmul.f32 %v4868_v39, %v3967_v37 }
0x16d2   :  { %v3969_v42 = vmul.f32 %v4870_v40, %v3966_v0 }
0x16d3   :  { %v3978_v43 = vsel %vm3977_vm5, %v3967_v37, %v3976_v53 }
0x16d4   :  { %v3981_v58 = vsel %vm3979_vm9, %v3980_v41, %v3978_v43  ;;  %v3971_v45 = vsel %vm3970_vm10, %v3966_v0, %v3969_v42 }
0x16d5   :  { %4871 = vrcp.f32 %v3981_v58  ;;  %v3974_v63 = vsel %vm3972_vm11, %v3973_v44, %v3971_v45 }
0x16d6   :  { %4873 = vrcp.f32 %v3974_v63 }
0x16df   :  { %v4872_v46 = vpop.eup %4871 }
0x16e0   :  { %v4874_v48 = vpop.eup %4873  ;;  %v3985_v62 = vmul.f32 %v4872_v46, %v3955_v19 }
0x16e1   :  { %v3983_v12 = vmul.f32 %v4874_v48, %v3954_v20 }
0x16e2   :  { %v3993_v51 = vmul.f32 %v4250_v47, %v3985_v62 }
0x16e3   :  { %v3992_v3 = vmul.f32 %v4250_v47, %v3983_v12 }
0x16e4   :  { %v4001_v54 = vadd.f32 %v4251_v49, %v3993_v51 }
0x16e5   :  { %v4000_v23 = vadd.f32 %v4251_v49, %v3992_v3 }
0x16e6   :  { %v4013_v55 = vsel %vm169_vm0, %v4001_v54, 0.0  ;;  %4003 = vst.msk [vmem:[#allocation14 + $0x8] sm:$0xff] %vm169_vm0, %v4001_v54 }
0x16e7   :  { %v4004_v56 = vsel %vm169_vm0, %v4000_v23, 0.0  ;;  %v4014_v59 = vrot.slane %v4013_v55, 4  ;;  %4002 = vst.msk [vmem:[#allocation14] sm:$0xff] %vm169_vm0, %v4000_v23 }
0x16e8   :  { %v4005_v1 = vrot.slane %v4004_v56, 4 }
0x16e9   :  { %v4015_v2 = vadd.f32 %v4014_v59, %v4013_v55 }
0x16ea   :  { %v4006_v4 = vadd.f32 %v4005_v1, %v4004_v56 }
0x16eb   :  { %v4016_v38 = vrot.slane %v4015_v2, 2 }
0x16ec   :  { %v4007_v61 = vrot.slane %v4006_v4, 2 }
0x16ed   :  { %v4017_v6 = vadd.f32 %v4016_v38, %v4015_v2 }
0x16ee   :  { %v4008_v5 = vadd.f32 %v4007_v61, %v4006_v4 }
0x16ef   :  { %v4018_v60 = vrot.slane %v4017_v6, 1 }
0x16f0   :  { %v4009_v7 = vrot.slane %v4008_v5, 1 }
0x16f1   :  { %v4019_v8 = vadd.f32 %v4018_v60, %v4017_v6 }
0x16f2   :  { %v4010_v52 = vadd.f32 %v4009_v7, %v4008_v5 }
0x16f3   :  { %v4020_v57 = vmul.f32 0.125, %v4019_v8 }
0x16f4   :  { %v4012_v9 = vmul.f32 0.125, %v4010_v52 }
0x16f6   :  { %v4022_v10 = vsel %vm4021_vm12, %v4012_v9, %v4020_v57 }
0x16f7   :  { %4652 = vmatmul.mubr.msk.f32.vlgmr.msra.gmra.mrb[44].mxu1 %vm169_vm0, %v4022_v10 }
0x16f8   :  { %5042 = shalt.err (!%p5039_p4)
}
0x16f9   :  { %s5043_s1 = scalar_lea.hbm %s5976_s20, 256 }
0x16fa   :  { %p5044_p5 = scmp.ne.s32.totalorder %s5976_s20, %s5043_s1  ;;  %p5047_p6 = scmp.lt.u32.totalorder %s5043_s1, %s5976_s20 }
0x16fc   :  { %p5049_p7 = pnand %p5047_p6, %p5044_p5 }
0x16fe   :  { %5052 = shalt.err (!%p5049_p7)
}
0x16ff   :  { %4121 = dma.vmem_to_hbm [thread:$0]  %s4116_s17, 256, %s5976_s20, [#allocation4], %s5093_s7, %s5093_s7, %s5094_s24   ;;  %vm4108_vm0 = vcmask 254976  }
0x1700   :  { %s6003_s13 = sld [smem:[#allocation29_spill]]  ;;  %s5109_s14 = smov [#allocation15]  }
0x1701   :  { %s4128_s15 = sshll.u32 %s5109_s14, 4  ;;  %s4129_s15 = int_to_ptr.vmem [resolvable:$true] %s4128_s15 }
0x1702   :  { %s5053_s12 = scalar_lea.vmem %s4129_s15, 32  ;;  %p5058_p9 = scmp.lt.s32.totalorder %s4129_s15, %s4129_s15 }
0x1703   :  { %p5054_p8 = scmp.ne.s32.totalorder %s4129_s15, %s5053_s12  ;;  %p5059_p10 = scmp.lt.s32.totalorder %s5053_s12, %s5053_s12 }
0x1705   :  { %p5060_p11 = por %p5059_p10, %p5058_p9 }
0x1706   :  { %v4252_v11 = vld [vmem:[%s6003_s13] ss:$0 sm:$0xff] }
0x1707   :  { %p5061_p12 = pnand %p5060_p11, %p5054_p8 }
0x17ca   :  { %v4103_v50 = vpop.f32.mrb[44].mxu1 }
0x17cb   :  { %v4104_v13 = vadd.f32 %v4252_v11, %v4103_v50  ;;  %v4653_v14 = vpop.f32.mrb[45].mxu1 }
0x17cd   :  { %4875 = vtanh.f32 %v4104_v13 }
0x17d7   :  { %v4876_v15 = vpop.eup %4875 }
0x17d8   :  { %4109 = vst.msk [vmem:[#allocation15] sm:$0x3] %vm4108_vm0, %v4876_v15 }
0x17d9   :  { %5064 = shalt.err (!%p5061_p12)
}
0x17da   :  { %s6004_s24 = sld [smem:[#allocation30_spill]] }
0x17e0   :  { %s5065_s4 = scalar_lea.hbm %s6004_s24, 32 }
0x17e1   :  { %p5066_p13 = scmp.ne.s32.totalorder %s6004_s24, %s5065_s4  ;;  %p5069_p0 = scmp.lt.u32.totalorder %s5065_s4, %s6004_s24 }
0x17e3   :  { %p5071_p1 = pnand %p5069_p0, %p5066_p13 }
0x17e5   :  { %5074 = shalt.err (!%p5071_p1)
}
0x17e6   :  { %4131 = dma.vmem_to_hbm [thread:$0]  %s4129_s15, 32, %s6004_s24, [#allocation16]  }
0x17e7   :  { %5083 = dma.done.wait [#allocation4], 256  }
0x17e8   :  { %5084 = vsyncadd [#allocation4], 4294967040 }
0x17e9   :  { %5085 = dma.done.wait [#allocation16], 32  }
0x17ea   :  { %5086 = vsyncadd [#allocation16], 4294967264 }
0x17eb   :  { %4138 = vsyncpa [#allocation3], 1 }
0x17ec   :  { %4139 = vsyncpa [#allocation6], 1 }
0x17ed   :  { %4140 = vsyncpa [#allocation9], 1 }
0x17ee   :  { %4141 = vsyncpa [#allocation12], 1 }
0x17ef   :  { %4142 = vsyncpa [#allocation4], 1 }
0x17f0   :  { %4143 = vsyncpa [#allocation16], 1 }

</bundles_post_ra>
